<compile_context>
chip_gen: v7x
topology: tpu7x:2x2x1
jax: 0.10.0
libtpu: 0.0.40
codegen_flags: <defaults>
</compile_context>

<pallas_src>
import functools
import math

import numpy as np
import jax
import jax.numpy as jnp
from jax.experimental import pallas as pl
from jax.experimental.pallas import tpu as pltpu


# ---------------------------------------------------------------------------
# helpers
# ---------------------------------------------------------------------------
def conv_out_len(kernel_size, stride, prev_length):
    return (prev_length - kernel_size) // stride + 1


def sinusoidal_pos(max_len, d):
    p = np.zeros((max_len, d), np.float32)
    pos = np.arange(max_len, dtype=np.float32)[:, None]
    i = np.arange(0, d, 2, dtype=np.float32)[None, :]
    angle = pos / np.power(10000.0, i / d)
    p[:, 0::2] = np.sin(angle)
    p[:, 1::2] = np.cos(angle)
    return p


def _full_spec(a):
    nd = a.ndim
    return pl.BlockSpec(a.shape, lambda i, _nd=nd: (0,) * _nd)


# ---------------------------------------------------------------------------
# Pallas kernel
# ---------------------------------------------------------------------------
def build_kernel(cfg):
    N, Cin = cfg["N"], cfg["Cin"]
    D = cfg["d_model"]
    nl = cfg["n_layers"]
    C1 = D // 2
    L1, L2, L3, L4 = cfg["L1"], cfg["L2"], cfg["L3"], cfg["L4"]
    eps = 1e-5
    slope = 0.01
    f32 = jnp.float32
    cdt = jnp.bfloat16                 # MXU operand dtype (weights pre-cast in wrapper)

    def kernel(xcl_ref, xt_ref, g1t_ref, b1t_ref,
               w1c_ref, b1c_ref, lc1g_ref, lc1b_ref,
               w2c_ref, b2c_ref, lc2g_ref, lc2b_ref,
               pos_ref, hmask_ref,
               wqkv_ref, bqkv_ref, wo_ref, bo_ref,
               wf1_ref, bf1_ref, wf2_ref, bf2_ref,
               n1g_ref, n1b_ref, n2g_ref, n2b_ref,
               hw_ref, hb_ref,
               out_ref):

        def ln_last(v, g, b):                     # LayerNorm over the last axis (f32)
            mu = jnp.mean(v, axis=-1, keepdims=True)
            var = jnp.mean((v - mu) ** 2, axis=-1, keepdims=True)
            return (v - mu) * jax.lax.rsqrt(var + eps) * g + b

        def leaky(v):
            return jnp.where(v >= 0, v, slope * v)

        # ---- input LayerNorm over L: stats from the full channel-last copy, applied
        #      per pre-gathered conv-1 tap (no gather matmuls, no im2col concat) ----
        xcl = xcl_ref[...]                                         # (N, L, Cin)
        mu0 = jnp.mean(xcl, axis=1, keepdims=True)                 # (N, 1, Cin)
        var0 = jnp.mean((xcl - mu0) ** 2, axis=1, keepdims=True)
        rstd0 = jax.lax.rsqrt(var0 + eps)

        # ---- conv1d_1 (k=3, s=2): accumulate tap contributions ----
        acc = None
        for k in range(3):
            tap = (xt_ref[k] - mu0) * rstd0 * g1t_ref[k] + b1t_ref[k]   # (N, L1, Cin)
            d = jnp.dot(tap.reshape(N * L1, Cin).astype(cdt), w1c_ref[k],
                        preferred_element_type=f32)
            acc = d if acc is None else acc + d
        h1 = leaky(acc + b1c_ref[...]).reshape(N, L1, C1)          # (N, L1, C1)

        # ---- maxpool1d_1 (k=2, s=2) via even/odd pair split + LayerNorm over C ----
        pp = h1[:, 0:2 * L2, :].reshape(N, L2, 2, C1)
        h1 = jnp.maximum(pp[:, :, 0, :], pp[:, :, 1, :])           # (N, L2, C1)
        h1 = ln_last(h1, lc1g_ref[...], lc1b_ref[...])

        # ---- conv1d_2 (k=3, s=2): taps via pair splits, accumulated dots ----
        qa = h1[:, 0:2 * L3, :].reshape(N, L3, 2, C1)
        qb = h1[:, 1:2 * L3 + 1, :].reshape(N, L3, 2, C1)
        u0 = qa[:, :, 0, :].reshape(N * L3, C1).astype(cdt)
        u1 = qa[:, :, 1, :].reshape(N * L3, C1).astype(cdt)
        u2 = qb[:, :, 1, :].reshape(N * L3, C1).astype(cdt)
        h2 = (jnp.dot(u0, w2c_ref[0], preferred_element_type=f32)
              + jnp.dot(u1, w2c_ref[1], preferred_element_type=f32)
              + jnp.dot(u2, w2c_ref[2], preferred_element_type=f32)
              + b2c_ref[...])
        h2 = leaky(h2).reshape(N, L3, D)

        # ---- maxpool1d_2 + LayerNorm over channels ----
        qq = h2[:, 0:2 * L4, :].reshape(N, L4, 2, D)
        h2 = jnp.maximum(qq[:, :, 0, :], qq[:, :, 1, :])           # (N, L4, D)
        h2 = ln_last(h2, lc2g_ref[...], lc2b_ref[...])

        # ---- sinusoidal positional encoding (per l4), flatten rows to (n, l4) ----
        xf = (h2 + pos_ref[...]).reshape(N * L4, D)                # (N*L4, D)

        hmask = hmask_ref[...]          # (D, D) block-ones: per-head lane segment sum

        # ---- transformer encoder (post-norm). batch_first=False: attention runs
        #      over axis 0 (= N), with L4 as the "batch". nl=2 statically unrolled. ----
        for l in range(nl):
            qkv = (jnp.dot(xf.astype(cdt), wqkv_ref[l], preferred_element_type=f32)
                   + bqkv_ref[l])                                  # (N*L4, 3D)
            q3 = qkv[:, 0:D].reshape(N, L4, D)   # q pre-scaled by 1/sqrt(Dh) in wrapper
            k3 = qkv[:, D:2 * D].reshape(N, L4, D)
            v3 = qkv[:, 2 * D:3 * D].reshape(N, L4, D)
            # VPU attention: lane products, per-head score = segment sum over that
            # head's Dh lanes (one tiny block-ones matmul), kept broadcast across the
            # head's lanes so no head concats / lane-splitting relayouts are needed.
            p = q3[:, None, :, :] * k3[None, :, :, :]              # (N, N, L4, D)
            s = jnp.dot(p.reshape(N * N * L4, D).astype(cdt), hmask,
                        preferred_element_type=f32).reshape(N, N, L4, D)
            s = s - jnp.max(s, axis=1, keepdims=True)
            e = jnp.exp(s)
            a = e * pl.reciprocal(jnp.sum(e, axis=1, keepdims=True), approx=True)
            ctx = jnp.sum(a * v3[None, :, :, :], axis=1)           # (N, L4, D)
            attn = (jnp.dot(ctx.reshape(N * L4, D).astype(cdt), wo_ref[l],
                            preferred_element_type=f32) + bo_ref[l])
            x1 = ln_last(xf + attn, n1g_ref[l], n1b_ref[l])
            hid = jnp.maximum(
                jnp.dot(x1.astype(cdt), wf1_ref[l], preferred_element_type=f32)
                + bf1_ref[l], 0.0)
            ff = (jnp.dot(hid.astype(cdt), wf2_ref[l], preferred_element_type=f32)
                  + bf2_ref[l])
            xf = ln_last(x1 + ff, n2g_ref[l], n2b_ref[l])

        # ---- final encoder LN (affine folded into the head), mean over L4, head ----
        mu = jnp.mean(xf, axis=-1, keepdims=True)
        var = jnp.mean((xf - mu) ** 2, axis=-1, keepdims=True)
        xfn = (xf - mu) * jax.lax.rsqrt(var + eps)                 # (N*L4, D)
        pooled = jnp.mean(xfn.reshape(N, L4, D), axis=1)           # (N, D)
        logit = (jnp.sum(pooled * hw_ref[...], axis=-1, keepdims=True)
                 + hb_ref[...])                                    # (N, 1)
        out_ref[...] = pl.reciprocal(1.0 + jnp.exp(-logit), approx=True)

    return kernel


# ---------------------------------------------------------------------------
# wrapper
# ---------------------------------------------------------------------------
def orpheus4_pallas(x, p, cfg, pos_table):
    N, Cin, L = cfg["N"], cfg["Cin"], cfg["L"]
    D, H = cfg["d_model"], cfg["nhead"]
    nl, dff = cfg["n_layers"], cfg["dff"]
    C1, Dh = D // 2, D // H
    L1, L4 = cfg["L1"], cfg["L4"]
    bf16 = jnp.bfloat16
    scale = 1.0 / math.sqrt(Dh)

    # channel-last input + the three stride-2 conv-1 tap slices and the matching
    # LN gamma/beta slices (pure layout plumbing, done by XLA outside the kernel)
    xcl = jnp.transpose(x.astype(jnp.float32), (0, 2, 1))                 # (N, L, Cin)
    xt = jnp.stack([xcl[:, k:k + 2 * L1:2, :] for k in range(3)])          # (3,N,L1,Cin)
    g1t = jnp.stack([p["ln_in_g"][k:k + 2 * L1:2].reshape(1, L1, 1) for k in range(3)])
    b1t = jnp.stack([p["ln_in_b"][k:k + 2 * L1:2].reshape(1, L1, 1) for k in range(3)])

    st = lambda name: jnp.stack([lp[name] for lp in p["layers"]])
    # fused QKV projection; q columns pre-scaled by 1/sqrt(Dh); bf16 weight slabs
    wqkv = jnp.concatenate(
        [jnp.transpose(st("wq"), (0, 2, 1)) * scale,
         jnp.transpose(st("wk"), (0, 2, 1)),
         jnp.transpose(st("wv"), (0, 2, 1))], axis=-1).astype(bf16)        # (nl, D, 3D)
    bqkv = jnp.concatenate([st("bq") * scale, st("bk"), st("bv")],
                           axis=-1).reshape(nl, 1, 3 * D)

    # block-ones mask: per-head segment sum over Dh lanes, broadcast back over the head
    hmask = jnp.asarray(
        np.kron(np.eye(H, dtype=np.float32), np.ones((Dh, Dh), np.float32))
    ).astype(bf16)                                                          # (D, D)

    # final encoder-LN affine folded into the classifier head (logit is linear in it)
    hw_eff = (p["fn_g"] * p["head_w"].reshape(-1)).reshape(1, D)
    hb_eff = (p["head_b"].reshape(-1)[0]
              + jnp.sum(p["head_w"].reshape(-1) * p["fn_b"])).reshape(1, 1)

    args = [
        xcl, xt, g1t, b1t,
        jnp.transpose(p["conv1_w"], (2, 1, 0)).astype(bf16),               # (3, Cin, C1)
        p["conv1_b"].reshape(1, C1),
        p["ln_c1_g"].reshape(1, C1), p["ln_c1_b"].reshape(1, C1),
        jnp.transpose(p["conv2_w"], (2, 1, 0)).astype(bf16),               # (3, C1, D)
        p["conv2_b"].reshape(1, D),
        p["ln_c2_g"].reshape(1, D), p["ln_c2_b"].reshape(1, D),
        pos_table[:L4].reshape(1, L4, D),
        hmask,
        wqkv, bqkv,
        jnp.transpose(st("wo"), (0, 2, 1)).astype(bf16), st("bo").reshape(nl, 1, D),
        jnp.transpose(st("w1"), (0, 2, 1)).astype(bf16), st("b1").reshape(nl, 1, dff),
        jnp.transpose(st("w2"), (0, 2, 1)).astype(bf16), st("b2").reshape(nl, 1, D),
        st("n1_g").reshape(nl, 1, D), st("n1_b").reshape(nl, 1, D),
        st("n2_g").reshape(nl, 1, D), st("n2_b").reshape(nl, 1, D),
        hw_eff, hb_eff,
    ]

    grid_spec = pltpu.PrefetchScalarGridSpec(
        num_scalar_prefetch=0,
        grid=(1,),
        in_specs=[_full_spec(a) for a in args],
        out_specs=pl.BlockSpec((N, 1), lambda i: (0, 0)),
    )
    fn = pl.pallas_call(
        build_kernel(cfg),
        grid_spec=grid_spec,
        out_shape=jax.ShapeDtypeStruct((N, 1), jnp.float32),
        compiler_params=pltpu.CompilerParams(dimension_semantics=("arbitrary",)),
    )
    return fn(*args)[:, 0]                                                  # (N,)


# ---------------------------------------------------------------------------
# pure-JAX f32 reference
# ---------------------------------------------------------------------------
def reference_forward(x, p, cfg, pos_table):
    eps = 1e-5
    D, H = cfg["d_model"], cfg["nhead"]
    Dh = D // H

    def ln(v, g, b):
        mu = v.mean(axis=-1, keepdims=True)
        var = ((v - mu) ** 2).mean(axis=-1, keepdims=True)
        return (v - mu) / jnp.sqrt(var + eps) * g + b

    def conv1d(v, w, bias, stride):
        n, cin, lin = v.shape
        cout, _, kk = w.shape
        lout = (lin - kk) // stride + 1
        out = jnp.zeros((n, cout, lout), jnp.float32)
        for k in range(kk):
            xs = v[:, :, k: k + stride * (lout - 1) + 1: stride]
            out = out + jnp.einsum("oc,ncl->nol", w[:, :, k], xs)
        return out + bias[None, :, None]

    def maxpool(v, kk, stride):
        n, c, lin = v.shape
        lout = (lin - kk) // stride + 1
        cands = [v[:, :, j: j + stride * (lout - 1) + 1: stride] for j in range(kk)]
        return functools.reduce(jnp.maximum, cands)

    def leaky(v):
        return jnp.where(v >= 0, v, 0.01 * v)

    x = ln(x, p["ln_in_g"], p["ln_in_b"])
    x = maxpool(leaky(conv1d(x, p["conv1_w"], p["conv1_b"], 2)), 2, 2)
    x = jnp.swapaxes(x, 1, 2)
    x = ln(x, p["ln_c1_g"], p["ln_c1_b"])
    x = jnp.swapaxes(x, 1, 2)
    x = maxpool(leaky(conv1d(x, p["conv2_w"], p["conv2_b"], 2)), 2, 2)
    x = jnp.swapaxes(x, 1, 2)                                       # (N, L4, D)
    x = ln(x, p["ln_c2_g"], p["ln_c2_b"])
    x = x + pos_table[None, : x.shape[1], :]

    def mha(v, lp):                                                 # v: (seq, batch, E)
        lq, nb, e = v.shape
        q = v @ lp["wq"].T + lp["bq"]
        k = v @ lp["wk"].T + lp["bk"]
        vv = v @ lp["wv"].T + lp["bv"]
        sp = lambda t: t.reshape(lq, nb, H, Dh).transpose(1, 2, 0, 3)
        qh, kh, vh = sp(q), sp(k), sp(vv)
        s = jnp.einsum("bhqd,bhkd->bhqk", qh, kh) / jnp.sqrt(Dh)
        a = jax.nn.softmax(s, axis=-1)
        o = jnp.einsum("bhqk,bhkd->bhqd", a, vh)
        o = o.transpose(2, 0, 1, 3).reshape(lq, nb, e)
        return o @ lp["wo"].T + lp["bo"]

    # batch_first=False semantics: dim0 = seq (= N), dim1 = batch (= L4)
    for lp in p["layers"]:
        x = ln(x + mha(x, lp), lp["n1_g"], lp["n1_b"])
        ff = jnp.maximum(x @ lp["w1"].T + lp["b1"], 0.0) @ lp["w2"].T + lp["b2"]
        x = ln(x + ff, lp["n2_g"], lp["n2_b"])
    x = ln(x, p["fn_g"], p["fn_b"])
    x = jnp.mean(x, axis=1)                                         # (N, D)
    logit = x @ p["head_w"].T + p["head_b"]
    return (1.0 / (1.0 + jnp.exp(-logit)))[:, 0]


# ---------------------------------------------------------------------------
# deterministic parameter init
# ---------------------------------------------------------------------------
def init_params(key, cfg):
    D, Cin, L = cfg["d_model"], cfg["Cin"], cfg["L"]
    C1, nl, dff = D // 2, cfg["n_layers"], cfg["dff"]
    keys = iter(jax.random.split(key, 64))

    def nrm(shape, scl):
        return scl * jax.random.normal(next(keys), shape, dtype=jnp.float32)

    def gamma(shape):
        return 1.0 + nrm(shape, 0.05)

    p = {
        "ln_in_g": gamma((L,)), "ln_in_b": nrm((L,), 0.05),
        "conv1_w": nrm((C1, Cin, 3), 1.0 / math.sqrt(Cin * 3)),
        "conv1_b": nrm((C1,), 0.05),
        "ln_c1_g": gamma((C1,)), "ln_c1_b": nrm((C1,), 0.05),
        "conv2_w": nrm((D, C1, 3), 1.0 / math.sqrt(C1 * 3)),
        "conv2_b": nrm((D,), 0.05),
        "ln_c2_g": gamma((D,)), "ln_c2_b": nrm((D,), 0.05),
        "fn_g": gamma((D,)), "fn_b": nrm((D,), 0.05),
        "head_w": nrm((1, D), 1.0 / math.sqrt(D)),
        "head_b": nrm((1,), 0.05),
        "layers": [],
    }
    for _ in range(nl):
        p["layers"].append({
            "wq": nrm((D, D), 1.0 / math.sqrt(D)), "bq": nrm((D,), 0.05),
            "wk": nrm((D, D), 1.0 / math.sqrt(D)), "bk": nrm((D,), 0.05),
            "wv": nrm((D, D), 1.0 / math.sqrt(D)), "bv": nrm((D,), 0.05),
            "wo": nrm((D, D), 1.0 / math.sqrt(D)), "bo": nrm((D,), 0.05),
            "w1": nrm((dff, D), 1.0 / math.sqrt(D)), "b1": nrm((dff,), 0.05),
            "w2": nrm((D, dff), 1.0 / math.sqrt(dff)), "b2": nrm((D,), 0.05),
            "n1_g": gamma((D,)), "n1_b": nrm((D,), 0.05),
            "n2_g": gamma((D,)), "n2_b": nrm((D,), 0.05),
        })
    return p


# ---------------------------------------------------------------------------
if __name__ == "__main__":
    cfg = dict(N=2, Cin=4, L=64, d_model=32, nhead=4, n_layers=2, dff=64)
    L1 = conv_out_len(3, 2, cfg["L"])
    L2 = conv_out_len(2, 2, L1)
    L3 = conv_out_len(3, 2, L2)
    L4 = conv_out_len(2, 2, L3)
    cfg.update(L1=L1, L2=L2, L3=L3, L4=L4)

    key = jax.random.PRNGKey(0)
    kp, kx = jax.random.split(key)
    params = init_params(kp, cfg)
    x = jax.random.normal(kx, (cfg["N"], cfg["Cin"], cfg["L"]), dtype=jnp.float32)
    pos_table = jnp.asarray(sinusoidal_pos(cfg["L"], cfg["d_model"]))

    out = orpheus4_pallas(x, params, cfg, pos_table)
    out = jax.block_until_ready(out)

    ref = reference_forward(x, params, cfg, pos_table)
    # Kernel feeds bf16 operands to the MXU and uses approximate (EUP) reciprocals
    # (per the perf review); reference is all-f32, so the previous 1e-3 tolerance is
    # relaxed to bf16-level accuracy on the sigmoid outputs.
    np.testing.assert_allclose(np.asarray(out), np.asarray(ref), rtol=2e-2, atol=2e-2)
    print("KERNEL_OK")
</pallas_src>

<mosaic_0001>
module attributes {stable_mosaic.version = 11 : i64} {
  func.func @kernel(%arg0: i32, %arg1: memref<2x64x4xf32, #tpu.memory_space<vmem>>, %arg2: memref<3x2x31x4xf32, #tpu.memory_space<vmem>>, %arg3: memref<3x1x31x1xf32, #tpu.memory_space<vmem>>, %arg4: memref<3x1x31x1xf32, #tpu.memory_space<vmem>>, %arg5: memref<3x4x16xbf16, #tpu.memory_space<vmem>>, %arg6: memref<1x16xf32, #tpu.memory_space<vmem>>, %arg7: memref<1x16xf32, #tpu.memory_space<vmem>>, %arg8: memref<1x16xf32, #tpu.memory_space<vmem>>, %arg9: memref<3x16x32xbf16, #tpu.memory_space<vmem>>, %arg10: memref<1x32xf32, #tpu.memory_space<vmem>>, %arg11: memref<1x32xf32, #tpu.memory_space<vmem>>, %arg12: memref<1x32xf32, #tpu.memory_space<vmem>>, %arg13: memref<1x3x32xf32, #tpu.memory_space<vmem>>, %arg14: memref<32x32xbf16, #tpu.memory_space<vmem>>, %arg15: memref<2x32x96xbf16, #tpu.memory_space<vmem>>, %arg16: memref<2x1x96xf32, #tpu.memory_space<vmem>>, %arg17: memref<2x32x32xbf16, #tpu.memory_space<vmem>>, %arg18: memref<2x1x32xf32, #tpu.memory_space<vmem>>, %arg19: memref<2x32x64xbf16, #tpu.memory_space<vmem>>, %arg20: memref<2x1x64xf32, #tpu.memory_space<vmem>>, %arg21: memref<2x64x32xbf16, #tpu.memory_space<vmem>>, %arg22: memref<2x1x32xf32, #tpu.memory_space<vmem>>, %arg23: memref<2x1x32xf32, #tpu.memory_space<vmem>>, %arg24: memref<2x1x32xf32, #tpu.memory_space<vmem>>, %arg25: memref<2x1x32xf32, #tpu.memory_space<vmem>>, %arg26: memref<2x1x32xf32, #tpu.memory_space<vmem>>, %arg27: memref<1x32xf32, #tpu.memory_space<vmem>>, %arg28: memref<1x1xf32, #tpu.memory_space<vmem>>, %arg29: memref<2x1xf32, #tpu.memory_space<vmem>>) attributes {dimension_semantics = [#tpu.dimension_semantics<arbitrary>], iteration_bounds = array<i64: 1>, scalar_prefetch = 0 : i64, scratch_operands = 0 : i64, tpu.core_type = #tpu.core_type<tc>, window_params = [{pipeline_mode = #tpu.pipeline_mode<synchronous>, transform_indices = @transform_0, window_bounds = array<i64: 2, 64, 4>}, {pipeline_mode = #tpu.pipeline_mode<synchronous>, transform_indices = @transform_1, window_bounds = array<i64: 3, 2, 31, 4>}, {pipeline_mode = #tpu.pipeline_mode<synchronous>, transform_indices = @transform_2, window_bounds = array<i64: 3, 1, 31, 1>}, {pipeline_mode = #tpu.pipeline_mode<synchronous>, transform_indices = @transform_3, window_bounds = array<i64: 3, 1, 31, 1>}, {pipeline_mode = #tpu.pipeline_mode<synchronous>, transform_indices = @transform_4, window_bounds = array<i64: 3, 4, 16>}, {pipeline_mode = #tpu.pipeline_mode<synchronous>, transform_indices = @transform_5, window_bounds = array<i64: 1, 16>}, {pipeline_mode = #tpu.pipeline_mode<synchronous>, transform_indices = @transform_6, window_bounds = array<i64: 1, 16>}, {pipeline_mode = #tpu.pipeline_mode<synchronous>, transform_indices = @transform_7, window_bounds = array<i64: 1, 16>}, {pipeline_mode = #tpu.pipeline_mode<synchronous>, transform_indices = @transform_8, window_bounds = array<i64: 3, 16, 32>}, {pipeline_mode = #tpu.pipeline_mode<synchronous>, transform_indices = @transform_9, window_bounds = array<i64: 1, 32>}, {pipeline_mode = #tpu.pipeline_mode<synchronous>, transform_indices = @transform_10, window_bounds = array<i64: 1, 32>}, {pipeline_mode = #tpu.pipeline_mode<synchronous>, transform_indices = @transform_11, window_bounds = array<i64: 1, 32>}, {pipeline_mode = #tpu.pipeline_mode<synchronous>, transform_indices = @transform_12, window_bounds = array<i64: 1, 3, 32>}, {pipeline_mode = #tpu.pipeline_mode<synchronous>, transform_indices = @transform_13, window_bounds = array<i64: 32, 32>}, {pipeline_mode = #tpu.pipeline_mode<synchronous>, transform_indices = @transform_14, window_bounds = array<i64: 2, 32, 96>}, {pipeline_mode = #tpu.pipeline_mode<synchronous>, transform_indices = @transform_15, window_bounds = array<i64: 2, 1, 96>}, {pipeline_mode = #tpu.pipeline_mode<synchronous>, transform_indices = @transform_16, window_bounds = array<i64: 2, 32, 32>}, {pipeline_mode = #tpu.pipeline_mode<synchronous>, transform_indices = @transform_17, window_bounds = array<i64: 2, 1, 32>}, {pipeline_mode = #tpu.pipeline_mode<synchronous>, transform_indices = @transform_18, window_bounds = array<i64: 2, 32, 64>}, {pipeline_mode = #tpu.pipeline_mode<synchronous>, transform_indices = @transform_19, window_bounds = array<i64: 2, 1, 64>}, {pipeline_mode = #tpu.pipeline_mode<synchronous>, transform_indices = @transform_20, window_bounds = array<i64: 2, 64, 32>}, {pipeline_mode = #tpu.pipeline_mode<synchronous>, transform_indices = @transform_21, window_bounds = array<i64: 2, 1, 32>}, {pipeline_mode = #tpu.pipeline_mode<synchronous>, transform_indices = @transform_22, window_bounds = array<i64: 2, 1, 32>}, {pipeline_mode = #tpu.pipeline_mode<synchronous>, transform_indices = @transform_23, window_bounds = array<i64: 2, 1, 32>}, {pipeline_mode = #tpu.pipeline_mode<synchronous>, transform_indices = @transform_24, window_bounds = array<i64: 2, 1, 32>}, {pipeline_mode = #tpu.pipeline_mode<synchronous>, transform_indices = @transform_25, window_bounds = array<i64: 2, 1, 32>}, {pipeline_mode = #tpu.pipeline_mode<synchronous>, transform_indices = @transform_26, window_bounds = array<i64: 1, 32>}, {pipeline_mode = #tpu.pipeline_mode<synchronous>, transform_indices = @transform_27, window_bounds = array<i64: 1, 1>}, {pipeline_mode = #tpu.pipeline_mode<synchronous>, transform_indices = @transform_28, window_bounds = array<i64: 2, 1>}]} {
    %c0 = arith.constant 0 : index
    %c0_0 = arith.constant 0 : index
    %c0_1 = arith.constant 0 : index
    %0 = vector.load %arg1[%c0, %c0_0, %c0_1] : memref<2x64x4xf32, #tpu.memory_space<vmem>>, vector<2x64x4xf32>
    %cst = arith.constant dense<0.000000e+00> : vector<2x4xf32>
    %1 = vector.multi_reduction <add>, %0, %cst [1] : vector<2x64x4xf32> to vector<2x4xf32>
    %2 = vector.shape_cast %1 : vector<2x4xf32> to vector<2x1x4xf32>
    %cst_2 = arith.constant 6.400000e+01 : f32
    %3 = vector.broadcast %cst_2 : f32 to vector<2x1x4xf32>
    %4 = arith.divf %2, %3 : vector<2x1x4xf32>
    %5 = vector.broadcast %4 : vector<2x1x4xf32> to vector<2x64x4xf32>
    %6 = arith.subf %0, %5 : vector<2x64x4xf32>
    %7 = arith.mulf %6, %6 : vector<2x64x4xf32>
    %cst_3 = arith.constant dense<0.000000e+00> : vector<2x4xf32>
    %8 = vector.multi_reduction <add>, %7, %cst_3 [1] : vector<2x64x4xf32> to vector<2x4xf32>
    %9 = vector.shape_cast %8 : vector<2x4xf32> to vector<2x1x4xf32>
    %cst_4 = arith.constant 6.400000e+01 : f32
    %10 = vector.broadcast %cst_4 : f32 to vector<2x1x4xf32>
    %11 = arith.divf %9, %10 : vector<2x1x4xf32>
    %cst_5 = arith.constant 9.99999974E-6 : f32
    %12 = vector.broadcast %cst_5 : f32 to vector<2x1x4xf32>
    %13 = arith.addf %11, %12 : vector<2x1x4xf32>
    %14 = math.rsqrt %13 : vector<2x1x4xf32>
    %c0_6 = arith.constant 0 : index
    %c0_7 = arith.constant 0 : index
    %c0_8 = arith.constant 0 : index
    %c0_9 = arith.constant 0 : index
    %15 = vector.load %arg2[%c0_6, %c0_7, %c0_8, %c0_9] : memref<3x2x31x4xf32, #tpu.memory_space<vmem>>, vector<1x2x31x4xf32>
    %16 = vector.shape_cast %15 : vector<1x2x31x4xf32> to vector<2x31x4xf32>
    %17 = vector.broadcast %4 : vector<2x1x4xf32> to vector<2x31x4xf32>
    %18 = arith.subf %16, %17 : vector<2x31x4xf32>
    %19 = vector.broadcast %14 : vector<2x1x4xf32> to vector<2x31x4xf32>
    %20 = arith.mulf %18, %19 : vector<2x31x4xf32>
    %c0_10 = arith.constant 0 : index
    %c0_11 = arith.constant 0 : index
    %c0_12 = arith.constant 0 : index
    %c0_13 = arith.constant 0 : index
    %21 = vector.load %arg3[%c0_10, %c0_11, %c0_12, %c0_13] : memref<3x1x31x1xf32, #tpu.memory_space<vmem>>, vector<1x1x31x1xf32>
    %22 = vector.shape_cast %21 : vector<1x1x31x1xf32> to vector<1x31x1xf32>
    %23 = vector.broadcast %22 : vector<1x31x1xf32> to vector<2x31x4xf32>
    %24 = arith.mulf %20, %23 : vector<2x31x4xf32>
    %c0_14 = arith.constant 0 : index
    %c0_15 = arith.constant 0 : index
    %c0_16 = arith.constant 0 : index
    %c0_17 = arith.constant 0 : index
    %25 = vector.load %arg4[%c0_14, %c0_15, %c0_16, %c0_17] : memref<3x1x31x1xf32, #tpu.memory_space<vmem>>, vector<1x1x31x1xf32>
    %26 = vector.shape_cast %25 : vector<1x1x31x1xf32> to vector<1x31x1xf32>
    %27 = vector.broadcast %26 : vector<1x31x1xf32> to vector<2x31x4xf32>
    %28 = arith.addf %24, %27 : vector<2x31x4xf32>
    %29 = vector.shape_cast %28 : vector<2x31x4xf32> to vector<62x4xf32>
    %30 = arith.truncf %29 : vector<62x4xf32> to vector<62x4xbf16>
    %c0_18 = arith.constant 0 : index
    %c0_19 = arith.constant 0 : index
    %c0_20 = arith.constant 0 : index
    %31 = vector.load %arg5[%c0_18, %c0_19, %c0_20] : memref<3x4x16xbf16, #tpu.memory_space<vmem>>, vector<1x4x16xbf16>
    %32 = vector.shape_cast %31 : vector<1x4x16xbf16> to vector<4x16xbf16>
    %cst_21 = arith.constant dense<0.000000e+00> : vector<62x16xf32>
    %33 = tpu.matmul %30, %32, %cst_21 {dimension_numbers = #tpu.dot_dimension_numbers<[1], [0], [0], [1], [0, 0, 1, 1], [], []>} : vector<62x4xbf16>, vector<4x16xbf16>, vector<62x16xf32> -> vector<62x16xf32>
    %c1 = arith.constant 1 : index
    %c0_22 = arith.constant 0 : index
    %c0_23 = arith.constant 0 : index
    %c0_24 = arith.constant 0 : index
    %34 = vector.load %arg2[%c1, %c0_22, %c0_23, %c0_24] : memref<3x2x31x4xf32, #tpu.memory_space<vmem>>, vector<1x2x31x4xf32>
    %35 = vector.shape_cast %34 : vector<1x2x31x4xf32> to vector<2x31x4xf32>
    %36 = vector.broadcast %4 : vector<2x1x4xf32> to vector<2x31x4xf32>
    %37 = arith.subf %35, %36 : vector<2x31x4xf32>
    %38 = vector.broadcast %14 : vector<2x1x4xf32> to vector<2x31x4xf32>
    %39 = arith.mulf %37, %38 : vector<2x31x4xf32>
    %c1_25 = arith.constant 1 : index
    %c0_26 = arith.constant 0 : index
    %c0_27 = arith.constant 0 : index
    %c0_28 = arith.constant 0 : index
    %40 = vector.load %arg3[%c1_25, %c0_26, %c0_27, %c0_28] : memref<3x1x31x1xf32, #tpu.memory_space<vmem>>, vector<1x1x31x1xf32>
    %41 = vector.shape_cast %40 : vector<1x1x31x1xf32> to vector<1x31x1xf32>
    %42 = vector.broadcast %41 : vector<1x31x1xf32> to vector<2x31x4xf32>
    %43 = arith.mulf %39, %42 : vector<2x31x4xf32>
    %c1_29 = arith.constant 1 : index
    %c0_30 = arith.constant 0 : index
    %c0_31 = arith.constant 0 : index
    %c0_32 = arith.constant 0 : index
    %44 = vector.load %arg4[%c1_29, %c0_30, %c0_31, %c0_32] : memref<3x1x31x1xf32, #tpu.memory_space<vmem>>, vector<1x1x31x1xf32>
    %45 = vector.shape_cast %44 : vector<1x1x31x1xf32> to vector<1x31x1xf32>
    %46 = vector.broadcast %45 : vector<1x31x1xf32> to vector<2x31x4xf32>
    %47 = arith.addf %43, %46 : vector<2x31x4xf32>
    %48 = vector.shape_cast %47 : vector<2x31x4xf32> to vector<62x4xf32>
    %49 = arith.truncf %48 : vector<62x4xf32> to vector<62x4xbf16>
    %c1_33 = arith.constant 1 : index
    %c0_34 = arith.constant 0 : index
    %c0_35 = arith.constant 0 : index
    %50 = vector.load %arg5[%c1_33, %c0_34, %c0_35] : memref<3x4x16xbf16, #tpu.memory_space<vmem>>, vector<1x4x16xbf16>
    %51 = vector.shape_cast %50 : vector<1x4x16xbf16> to vector<4x16xbf16>
    %cst_36 = arith.constant dense<0.000000e+00> : vector<62x16xf32>
    %52 = tpu.matmul %49, %51, %cst_36 {dimension_numbers = #tpu.dot_dimension_numbers<[1], [0], [0], [1], [0, 0, 1, 1], [], []>} : vector<62x4xbf16>, vector<4x16xbf16>, vector<62x16xf32> -> vector<62x16xf32>
    %53 = arith.addf %33, %52 : vector<62x16xf32>
    %c2 = arith.constant 2 : index
    %c0_37 = arith.constant 0 : index
    %c0_38 = arith.constant 0 : index
    %c0_39 = arith.constant 0 : index
    %54 = vector.load %arg2[%c2, %c0_37, %c0_38, %c0_39] : memref<3x2x31x4xf32, #tpu.memory_space<vmem>>, vector<1x2x31x4xf32>
    %55 = vector.shape_cast %54 : vector<1x2x31x4xf32> to vector<2x31x4xf32>
    %56 = vector.broadcast %4 : vector<2x1x4xf32> to vector<2x31x4xf32>
    %57 = arith.subf %55, %56 : vector<2x31x4xf32>
    %58 = vector.broadcast %14 : vector<2x1x4xf32> to vector<2x31x4xf32>
    %59 = arith.mulf %57, %58 : vector<2x31x4xf32>
    %c2_40 = arith.constant 2 : index
    %c0_41 = arith.constant 0 : index
    %c0_42 = arith.constant 0 : index
    %c0_43 = arith.constant 0 : index
    %60 = vector.load %arg3[%c2_40, %c0_41, %c0_42, %c0_43] : memref<3x1x31x1xf32, #tpu.memory_space<vmem>>, vector<1x1x31x1xf32>
    %61 = vector.shape_cast %60 : vector<1x1x31x1xf32> to vector<1x31x1xf32>
    %62 = vector.broadcast %61 : vector<1x31x1xf32> to vector<2x31x4xf32>
    %63 = arith.mulf %59, %62 : vector<2x31x4xf32>
    %c2_44 = arith.constant 2 : index
    %c0_45 = arith.constant 0 : index
    %c0_46 = arith.constant 0 : index
    %c0_47 = arith.constant 0 : index
    %64 = vector.load %arg4[%c2_44, %c0_45, %c0_46, %c0_47] : memref<3x1x31x1xf32, #tpu.memory_space<vmem>>, vector<1x1x31x1xf32>
    %65 = vector.shape_cast %64 : vector<1x1x31x1xf32> to vector<1x31x1xf32>
    %66 = vector.broadcast %65 : vector<1x31x1xf32> to vector<2x31x4xf32>
    %67 = arith.addf %63, %66 : vector<2x31x4xf32>
    %68 = vector.shape_cast %67 : vector<2x31x4xf32> to vector<62x4xf32>
    %69 = arith.truncf %68 : vector<62x4xf32> to vector<62x4xbf16>
    %c2_48 = arith.constant 2 : index
    %c0_49 = arith.constant 0 : index
    %c0_50 = arith.constant 0 : index
    %70 = vector.load %arg5[%c2_48, %c0_49, %c0_50] : memref<3x4x16xbf16, #tpu.memory_space<vmem>>, vector<1x4x16xbf16>
    %71 = vector.shape_cast %70 : vector<1x4x16xbf16> to vector<4x16xbf16>
    %cst_51 = arith.constant dense<0.000000e+00> : vector<62x16xf32>
    %72 = tpu.matmul %69, %71, %cst_51 {dimension_numbers = #tpu.dot_dimension_numbers<[1], [0], [0], [1], [0, 0, 1, 1], [], []>} : vector<62x4xbf16>, vector<4x16xbf16>, vector<62x16xf32> -> vector<62x16xf32>
    %73 = arith.addf %53, %72 : vector<62x16xf32>
    %c0_52 = arith.constant 0 : index
    %c0_53 = arith.constant 0 : index
    %74 = vector.load %arg6[%c0_52, %c0_53] : memref<1x16xf32, #tpu.memory_space<vmem>>, vector<1x16xf32>
    %75 = vector.broadcast %74 : vector<1x16xf32> to vector<62x16xf32>
    %76 = arith.addf %73, %75 : vector<62x16xf32>
    %cst_54 = arith.constant 0.000000e+00 : f32
    %77 = vector.broadcast %cst_54 : f32 to vector<62x16xf32>
    %78 = arith.cmpf oge, %76, %77 : vector<62x16xf32>
    %cst_55 = arith.constant 0.00999999977 : f32
    %79 = vector.broadcast %cst_55 : f32 to vector<62x16xf32>
    %80 = arith.mulf %79, %76 : vector<62x16xf32>
    %81 = arith.select %78, %76, %80 : vector<62x16xi1>, vector<62x16xf32>
    %82 = vector.shape_cast %81 : vector<62x16xf32> to vector<2x31x16xf32>
    %83 = vector.extract_strided_slice %82 {offsets = [0, 0, 0], sizes = [2, 30, 16], strides = [1, 1, 1]} : vector<2x31x16xf32> to vector<2x30x16xf32>
    %84 = vector.shape_cast %83 : vector<2x30x16xf32> to vector<2x15x2x16xf32>
    %85 = vector.extract_strided_slice %84 {offsets = [0, 0, 0, 0], sizes = [2, 15, 1, 16], strides = [1, 1, 1, 1]} : vector<2x15x2x16xf32> to vector<2x15x1x16xf32>
    %86 = vector.shape_cast %85 : vector<2x15x1x16xf32> to vector<2x15x16xf32>
    %87 = vector.extract_strided_slice %84 {offsets = [0, 0, 1, 0], sizes = [2, 15, 1, 16], strides = [1, 1, 1, 1]} : vector<2x15x2x16xf32> to vector<2x15x1x16xf32>
    %88 = vector.shape_cast %87 : vector<2x15x1x16xf32> to vector<2x15x16xf32>
    %89 = arith.maximumf %86, %88 : vector<2x15x16xf32>
    %c0_56 = arith.constant 0 : index
    %c0_57 = arith.constant 0 : index
    %90 = vector.load %arg7[%c0_56, %c0_57] : memref<1x16xf32, #tpu.memory_space<vmem>>, vector<1x16xf32>
    %c0_58 = arith.constant 0 : index
    %c0_59 = arith.constant 0 : index
    %91 = vector.load %arg8[%c0_58, %c0_59] : memref<1x16xf32, #tpu.memory_space<vmem>>, vector<1x16xf32>
    %cst_60 = arith.constant dense<0.000000e+00> : vector<2x15xf32>
    %92 = vector.multi_reduction <add>, %89, %cst_60 [2] : vector<2x15x16xf32> to vector<2x15xf32>
    %93 = vector.shape_cast %92 : vector<2x15xf32> to vector<2x15x1xf32>
    %cst_61 = arith.constant 1.600000e+01 : f32
    %94 = vector.broadcast %cst_61 : f32 to vector<2x15x1xf32>
    %95 = arith.divf %93, %94 : vector<2x15x1xf32>
    %96 = vector.broadcast %95 : vector<2x15x1xf32> to vector<2x15x16xf32>
    %97 = arith.subf %89, %96 : vector<2x15x16xf32>
    %98 = arith.mulf %97, %97 : vector<2x15x16xf32>
    %cst_62 = arith.constant dense<0.000000e+00> : vector<2x15xf32>
    %99 = vector.multi_reduction <add>, %98, %cst_62 [2] : vector<2x15x16xf32> to vector<2x15xf32>
    %100 = vector.shape_cast %99 : vector<2x15xf32> to vector<2x15x1xf32>
    %cst_63 = arith.constant 1.600000e+01 : f32
    %101 = vector.broadcast %cst_63 : f32 to vector<2x15x1xf32>
    %102 = arith.divf %100, %101 : vector<2x15x1xf32>
    %103 = vector.broadcast %95 : vector<2x15x1xf32> to vector<2x15x16xf32>
    %104 = arith.subf %89, %103 : vector<2x15x16xf32>
    %cst_64 = arith.constant 9.99999974E-6 : f32
    %105 = vector.broadcast %cst_64 : f32 to vector<2x15x1xf32>
    %106 = arith.addf %102, %105 : vector<2x15x1xf32>
    %107 = math.rsqrt %106 : vector<2x15x1xf32>
    %108 = vector.broadcast %107 : vector<2x15x1xf32> to vector<2x15x16xf32>
    %109 = arith.mulf %104, %108 : vector<2x15x16xf32>
    %110 = vector.shape_cast %90 : vector<1x16xf32> to vector<1x1x16xf32>
    %111 = vector.broadcast %110 : vector<1x1x16xf32> to vector<2x15x16xf32>
    %112 = arith.mulf %109, %111 : vector<2x15x16xf32>
    %113 = vector.shape_cast %91 : vector<1x16xf32> to vector<1x1x16xf32>
    %114 = vector.broadcast %113 : vector<1x1x16xf32> to vector<2x15x16xf32>
    %115 = arith.addf %112, %114 : vector<2x15x16xf32>
    %116 = vector.extract_strided_slice %115 {offsets = [0, 0, 0], sizes = [2, 14, 16], strides = [1, 1, 1]} : vector<2x15x16xf32> to vector<2x14x16xf32>
    %117 = vector.shape_cast %116 : vector<2x14x16xf32> to vector<2x7x2x16xf32>
    %118 = vector.extract_strided_slice %115 {offsets = [0, 1, 0], sizes = [2, 14, 16], strides = [1, 1, 1]} : vector<2x15x16xf32> to vector<2x14x16xf32>
    %119 = vector.shape_cast %118 : vector<2x14x16xf32> to vector<2x7x2x16xf32>
    %120 = vector.extract_strided_slice %117 {offsets = [0, 0, 0, 0], sizes = [2, 7, 1, 16], strides = [1, 1, 1, 1]} : vector<2x7x2x16xf32> to vector<2x7x1x16xf32>
    %121 = vector.shape_cast %120 : vector<2x7x1x16xf32> to vector<2x7x16xf32>
    %122 = vector.shape_cast %121 : vector<2x7x16xf32> to vector<14x16xf32>
    %123 = arith.truncf %122 : vector<14x16xf32> to vector<14x16xbf16>
    %124 = vector.extract_strided_slice %117 {offsets = [0, 0, 1, 0], sizes = [2, 7, 1, 16], strides = [1, 1, 1, 1]} : vector<2x7x2x16xf32> to vector<2x7x1x16xf32>
    %125 = vector.shape_cast %124 : vector<2x7x1x16xf32> to vector<2x7x16xf32>
    %126 = vector.shape_cast %125 : vector<2x7x16xf32> to vector<14x16xf32>
    %127 = arith.truncf %126 : vector<14x16xf32> to vector<14x16xbf16>
    %128 = vector.extract_strided_slice %119 {offsets = [0, 0, 1, 0], sizes = [2, 7, 1, 16], strides = [1, 1, 1, 1]} : vector<2x7x2x16xf32> to vector<2x7x1x16xf32>
    %129 = vector.shape_cast %128 : vector<2x7x1x16xf32> to vector<2x7x16xf32>
    %130 = vector.shape_cast %129 : vector<2x7x16xf32> to vector<14x16xf32>
    %131 = arith.truncf %130 : vector<14x16xf32> to vector<14x16xbf16>
    %c0_65 = arith.constant 0 : index
    %c0_66 = arith.constant 0 : index
    %c0_67 = arith.constant 0 : index
    %132 = vector.load %arg9[%c0_65, %c0_66, %c0_67] : memref<3x16x32xbf16, #tpu.memory_space<vmem>>, vector<1x16x32xbf16>
    %133 = vector.shape_cast %132 : vector<1x16x32xbf16> to vector<16x32xbf16>
    %cst_68 = arith.constant dense<0.000000e+00> : vector<14x32xf32>
    %134 = tpu.matmul %123, %133, %cst_68 {dimension_numbers = #tpu.dot_dimension_numbers<[1], [0], [0], [1], [0, 0, 1, 1], [], []>} : vector<14x16xbf16>, vector<16x32xbf16>, vector<14x32xf32> -> vector<14x32xf32>
    %c1_69 = arith.constant 1 : index
    %c0_70 = arith.constant 0 : index
    %c0_71 = arith.constant 0 : index
    %135 = vector.load %arg9[%c1_69, %c0_70, %c0_71] : memref<3x16x32xbf16, #tpu.memory_space<vmem>>, vector<1x16x32xbf16>
    %136 = vector.shape_cast %135 : vector<1x16x32xbf16> to vector<16x32xbf16>
    %cst_72 = arith.constant dense<0.000000e+00> : vector<14x32xf32>
    %137 = tpu.matmul %127, %136, %cst_72 {dimension_numbers = #tpu.dot_dimension_numbers<[1], [0], [0], [1], [0, 0, 1, 1], [], []>} : vector<14x16xbf16>, vector<16x32xbf16>, vector<14x32xf32> -> vector<14x32xf32>
    %138 = arith.addf %134, %137 : vector<14x32xf32>
    %c2_73 = arith.constant 2 : index
    %c0_74 = arith.constant 0 : index
    %c0_75 = arith.constant 0 : index
    %139 = vector.load %arg9[%c2_73, %c0_74, %c0_75] : memref<3x16x32xbf16, #tpu.memory_space<vmem>>, vector<1x16x32xbf16>
    %140 = vector.shape_cast %139 : vector<1x16x32xbf16> to vector<16x32xbf16>
    %cst_76 = arith.constant dense<0.000000e+00> : vector<14x32xf32>
    %141 = tpu.matmul %131, %140, %cst_76 {dimension_numbers = #tpu.dot_dimension_numbers<[1], [0], [0], [1], [0, 0, 1, 1], [], []>} : vector<14x16xbf16>, vector<16x32xbf16>, vector<14x32xf32> -> vector<14x32xf32>
    %142 = arith.addf %138, %141 : vector<14x32xf32>
    %c0_77 = arith.constant 0 : index
    %c0_78 = arith.constant 0 : index
    %143 = vector.load %arg10[%c0_77, %c0_78] : memref<1x32xf32, #tpu.memory_space<vmem>>, vector<1x32xf32>
    %144 = vector.broadcast %143 : vector<1x32xf32> to vector<14x32xf32>
    %145 = arith.addf %142, %144 : vector<14x32xf32>
    %cst_79 = arith.constant 0.000000e+00 : f32
    %146 = vector.broadcast %cst_79 : f32 to vector<14x32xf32>
    %147 = arith.cmpf oge, %145, %146 : vector<14x32xf32>
    %cst_80 = arith.constant 0.00999999977 : f32
    %148 = vector.broadcast %cst_80 : f32 to vector<14x32xf32>
    %149 = arith.mulf %148, %145 : vector<14x32xf32>
    %150 = arith.select %147, %145, %149 : vector<14x32xi1>, vector<14x32xf32>
    %151 = vector.shape_cast %150 : vector<14x32xf32> to vector<2x7x32xf32>
    %152 = vector.extract_strided_slice %151 {offsets = [0, 0, 0], sizes = [2, 6, 32], strides = [1, 1, 1]} : vector<2x7x32xf32> to vector<2x6x32xf32>
    %153 = vector.shape_cast %152 : vector<2x6x32xf32> to vector<2x3x2x32xf32>
    %154 = vector.extract_strided_slice %153 {offsets = [0, 0, 0, 0], sizes = [2, 3, 1, 32], strides = [1, 1, 1, 1]} : vector<2x3x2x32xf32> to vector<2x3x1x32xf32>
    %155 = vector.shape_cast %154 : vector<2x3x1x32xf32> to vector<2x3x32xf32>
    %156 = vector.extract_strided_slice %153 {offsets = [0, 0, 1, 0], sizes = [2, 3, 1, 32], strides = [1, 1, 1, 1]} : vector<2x3x2x32xf32> to vector<2x3x1x32xf32>
    %157 = vector.shape_cast %156 : vector<2x3x1x32xf32> to vector<2x3x32xf32>
    %158 = arith.maximumf %155, %157 : vector<2x3x32xf32>
    %c0_81 = arith.constant 0 : index
    %c0_82 = arith.constant 0 : index
    %159 = vector.load %arg11[%c0_81, %c0_82] : memref<1x32xf32, #tpu.memory_space<vmem>>, vector<1x32xf32>
    %c0_83 = arith.constant 0 : index
    %c0_84 = arith.constant 0 : index
    %160 = vector.load %arg12[%c0_83, %c0_84] : memref<1x32xf32, #tpu.memory_space<vmem>>, vector<1x32xf32>
    %cst_85 = arith.constant dense<0.000000e+00> : vector<2x3xf32>
    %161 = vector.multi_reduction <add>, %158, %cst_85 [2] : vector<2x3x32xf32> to vector<2x3xf32>
    %162 = vector.shape_cast %161 : vector<2x3xf32> to vector<2x3x1xf32>
    %cst_86 = arith.constant 3.200000e+01 : f32
    %163 = vector.broadcast %cst_86 : f32 to vector<2x3x1xf32>
    %164 = arith.divf %162, %163 : vector<2x3x1xf32>
    %165 = vector.broadcast %164 : vector<2x3x1xf32> to vector<2x3x32xf32>
    %166 = arith.subf %158, %165 : vector<2x3x32xf32>
    %167 = arith.mulf %166, %166 : vector<2x3x32xf32>
    %cst_87 = arith.constant dense<0.000000e+00> : vector<2x3xf32>
    %168 = vector.multi_reduction <add>, %167, %cst_87 [2] : vector<2x3x32xf32> to vector<2x3xf32>
    %169 = vector.shape_cast %168 : vector<2x3xf32> to vector<2x3x1xf32>
    %cst_88 = arith.constant 3.200000e+01 : f32
    %170 = vector.broadcast %cst_88 : f32 to vector<2x3x1xf32>
    %171 = arith.divf %169, %170 : vector<2x3x1xf32>
    %172 = vector.broadcast %164 : vector<2x3x1xf32> to vector<2x3x32xf32>
    %173 = arith.subf %158, %172 : vector<2x3x32xf32>
    %cst_89 = arith.constant 9.99999974E-6 : f32
    %174 = vector.broadcast %cst_89 : f32 to vector<2x3x1xf32>
    %175 = arith.addf %171, %174 : vector<2x3x1xf32>
    %176 = math.rsqrt %175 : vector<2x3x1xf32>
    %177 = vector.broadcast %176 : vector<2x3x1xf32> to vector<2x3x32xf32>
    %178 = arith.mulf %173, %177 : vector<2x3x32xf32>
    %179 = vector.shape_cast %159 : vector<1x32xf32> to vector<1x1x32xf32>
    %180 = vector.broadcast %179 : vector<1x1x32xf32> to vector<2x3x32xf32>
    %181 = arith.mulf %178, %180 : vector<2x3x32xf32>
    %182 = vector.shape_cast %160 : vector<1x32xf32> to vector<1x1x32xf32>
    %183 = vector.broadcast %182 : vector<1x1x32xf32> to vector<2x3x32xf32>
    %184 = arith.addf %181, %183 : vector<2x3x32xf32>
    %c0_90 = arith.constant 0 : index
    %c0_91 = arith.constant 0 : index
    %c0_92 = arith.constant 0 : index
    %185 = vector.load %arg13[%c0_90, %c0_91, %c0_92] : memref<1x3x32xf32, #tpu.memory_space<vmem>>, vector<1x3x32xf32>
    %186 = vector.broadcast %185 : vector<1x3x32xf32> to vector<2x3x32xf32>
    %187 = arith.addf %184, %186 : vector<2x3x32xf32>
    %188 = vector.shape_cast %187 : vector<2x3x32xf32> to vector<6x32xf32>
    %c0_93 = arith.constant 0 : index
    %c0_94 = arith.constant 0 : index
    %189 = vector.load %arg14[%c0_93, %c0_94] : memref<32x32xbf16, #tpu.memory_space<vmem>>, vector<32x32xbf16>
    %190 = arith.truncf %188 : vector<6x32xf32> to vector<6x32xbf16>
    %c0_95 = arith.constant 0 : index
    %c0_96 = arith.constant 0 : index
    %c0_97 = arith.constant 0 : index
    %191 = vector.load %arg15[%c0_95, %c0_96, %c0_97] : memref<2x32x96xbf16, #tpu.memory_space<vmem>>, vector<1x32x96xbf16>
    %192 = vector.shape_cast %191 : vector<1x32x96xbf16> to vector<32x96xbf16>
    %cst_98 = arith.constant dense<0.000000e+00> : vector<6x96xf32>
    %193 = tpu.matmul %190, %192, %cst_98 {dimension_numbers = #tpu.dot_dimension_numbers<[1], [0], [0], [1], [0, 0, 1, 1], [], []>} : vector<6x32xbf16>, vector<32x96xbf16>, vector<6x96xf32> -> vector<6x96xf32>
    %c0_99 = arith.constant 0 : index
    %c0_100 = arith.constant 0 : index
    %c0_101 = arith.constant 0 : index
    %194 = vector.load %arg16[%c0_99, %c0_100, %c0_101] : memref<2x1x96xf32, #tpu.memory_space<vmem>>, vector<1x1x96xf32>
    %195 = vector.shape_cast %194 : vector<1x1x96xf32> to vector<1x96xf32>
    %196 = vector.broadcast %195 : vector<1x96xf32> to vector<6x96xf32>
    %197 = arith.addf %193, %196 : vector<6x96xf32>
    %198 = vector.extract_strided_slice %197 {offsets = [0, 0], sizes = [6, 32], strides = [1, 1]} : vector<6x96xf32> to vector<6x32xf32>
    %199 = vector.shape_cast %198 : vector<6x32xf32> to vector<2x3x32xf32>
    %200 = vector.extract_strided_slice %197 {offsets = [0, 32], sizes = [6, 32], strides = [1, 1]} : vector<6x96xf32> to vector<6x32xf32>
    %201 = vector.shape_cast %200 : vector<6x32xf32> to vector<2x3x32xf32>
    %202 = vector.extract_strided_slice %197 {offsets = [0, 64], sizes = [6, 32], strides = [1, 1]} : vector<6x96xf32> to vector<6x32xf32>
    %203 = vector.shape_cast %202 : vector<6x32xf32> to vector<2x3x32xf32>
    %204 = vector.shape_cast %199 : vector<2x3x32xf32> to vector<2x1x3x32xf32>
    %205 = vector.shape_cast %201 : vector<2x3x32xf32> to vector<1x2x3x32xf32>
    %206 = vector.broadcast %204 : vector<2x1x3x32xf32> to vector<2x2x3x32xf32>
    %207 = vector.broadcast %205 : vector<1x2x3x32xf32> to vector<2x2x3x32xf32>
    %208 = arith.mulf %206, %207 : vector<2x2x3x32xf32>
    %209 = vector.shape_cast %208 : vector<2x2x3x32xf32> to vector<12x32xf32>
    %210 = arith.truncf %209 : vector<12x32xf32> to vector<12x32xbf16>
    %cst_102 = arith.constant dense<0.000000e+00> : vector<12x32xf32>
    %211 = tpu.matmul %210, %189, %cst_102 {dimension_numbers = #tpu.dot_dimension_numbers<[1], [0], [0], [1], [0, 0, 1, 1], [], []>} : vector<12x32xbf16>, vector<32x32xbf16>, vector<12x32xf32> -> vector<12x32xf32>
    %212 = vector.shape_cast %211 : vector<12x32xf32> to vector<2x2x3x32xf32>
    %cst_103 = arith.constant dense<0xFF800000> : vector<2x3x32xf32>
    %213 = vector.multi_reduction <maximumf>, %212, %cst_103 [1] : vector<2x2x3x32xf32> to vector<2x3x32xf32>
    %214 = vector.shape_cast %213 : vector<2x3x32xf32> to vector<2x1x3x32xf32>
    %215 = vector.broadcast %214 : vector<2x1x3x32xf32> to vector<2x2x3x32xf32>
    %216 = arith.subf %212, %215 : vector<2x2x3x32xf32>
    %217 = math.exp %216 : vector<2x2x3x32xf32>
    %cst_104 = arith.constant dense<0.000000e+00> : vector<2x3x32xf32>
    %218 = vector.multi_reduction <add>, %217, %cst_104 [1] : vector<2x2x3x32xf32> to vector<2x3x32xf32>
    %219 = vector.shape_cast %218 : vector<2x3x32xf32> to vector<2x1x3x32xf32>
    %220 = tpu.reciprocal %219 {approx = true} : vector<2x1x3x32xf32> -> vector<2x1x3x32xf32>
    %221 = vector.broadcast %220 : vector<2x1x3x32xf32> to vector<2x2x3x32xf32>
    %222 = arith.mulf %217, %221 : vector<2x2x3x32xf32>
    %223 = vector.shape_cast %203 : vector<2x3x32xf32> to vector<1x2x3x32xf32>
    %224 = vector.broadcast %223 : vector<1x2x3x32xf32> to vector<2x2x3x32xf32>
    %225 = arith.mulf %222, %224 : vector<2x2x3x32xf32>
    %cst_105 = arith.constant dense<0.000000e+00> : vector<2x3x32xf32>
    %226 = vector.multi_reduction <add>, %225, %cst_105 [1] : vector<2x2x3x32xf32> to vector<2x3x32xf32>
    %227 = vector.shape_cast %226 : vector<2x3x32xf32> to vector<6x32xf32>
    %228 = arith.truncf %227 : vector<6x32xf32> to vector<6x32xbf16>
    %c0_106 = arith.constant 0 : index
    %c0_107 = arith.constant 0 : index
    %c0_108 = arith.constant 0 : index
    %229 = vector.load %arg17[%c0_106, %c0_107, %c0_108] : memref<2x32x32xbf16, #tpu.memory_space<vmem>>, vector<1x32x32xbf16>
    %230 = vector.shape_cast %229 : vector<1x32x32xbf16> to vector<32x32xbf16>
    %cst_109 = arith.constant dense<0.000000e+00> : vector<6x32xf32>
    %231 = tpu.matmul %228, %230, %cst_109 {dimension_numbers = #tpu.dot_dimension_numbers<[1], [0], [0], [1], [0, 0, 1, 1], [], []>} : vector<6x32xbf16>, vector<32x32xbf16>, vector<6x32xf32> -> vector<6x32xf32>
    %c0_110 = arith.constant 0 : index
    %c0_111 = arith.constant 0 : index
    %c0_112 = arith.constant 0 : index
    %232 = vector.load %arg18[%c0_110, %c0_111, %c0_112] : memref<2x1x32xf32, #tpu.memory_space<vmem>>, vector<1x1x32xf32>
    %233 = vector.shape_cast %232 : vector<1x1x32xf32> to vector<1x32xf32>
    %234 = vector.broadcast %233 : vector<1x32xf32> to vector<6x32xf32>
    %235 = arith.addf %231, %234 : vector<6x32xf32>
    %236 = arith.addf %188, %235 : vector<6x32xf32>
    %c0_113 = arith.constant 0 : index
    %c0_114 = arith.constant 0 : index
    %c0_115 = arith.constant 0 : index
    %237 = vector.load %arg23[%c0_113, %c0_114, %c0_115] : memref<2x1x32xf32, #tpu.memory_space<vmem>>, vector<1x1x32xf32>
    %238 = vector.shape_cast %237 : vector<1x1x32xf32> to vector<1x32xf32>
    %c0_116 = arith.constant 0 : index
    %c0_117 = arith.constant 0 : index
    %c0_118 = arith.constant 0 : index
    %239 = vector.load %arg24[%c0_116, %c0_117, %c0_118] : memref<2x1x32xf32, #tpu.memory_space<vmem>>, vector<1x1x32xf32>
    %240 = vector.shape_cast %239 : vector<1x1x32xf32> to vector<1x32xf32>
    %cst_119 = arith.constant dense<0.000000e+00> : vector<6xf32>
    %241 = vector.multi_reduction <add>, %236, %cst_119 [1] : vector<6x32xf32> to vector<6xf32>
    %242 = vector.shape_cast %241 : vector<6xf32> to vector<6x1xf32>
    %cst_120 = arith.constant 3.200000e+01 : f32
    %243 = vector.broadcast %cst_120 : f32 to vector<6x1xf32>
    %244 = arith.divf %242, %243 : vector<6x1xf32>
    %245 = vector.broadcast %244 : vector<6x1xf32> to vector<6x32xf32>
    %246 = arith.subf %236, %245 : vector<6x32xf32>
    %247 = arith.mulf %246, %246 : vector<6x32xf32>
    %cst_121 = arith.constant dense<0.000000e+00> : vector<6xf32>
    %248 = vector.multi_reduction <add>, %247, %cst_121 [1] : vector<6x32xf32> to vector<6xf32>
    %249 = vector.shape_cast %248 : vector<6xf32> to vector<6x1xf32>
    %cst_122 = arith.constant 3.200000e+01 : f32
    %250 = vector.broadcast %cst_122 : f32 to vector<6x1xf32>
    %251 = arith.divf %249, %250 : vector<6x1xf32>
    %252 = vector.broadcast %244 : vector<6x1xf32> to vector<6x32xf32>
    %253 = arith.subf %236, %252 : vector<6x32xf32>
    %cst_123 = arith.constant 9.99999974E-6 : f32
    %254 = vector.broadcast %cst_123 : f32 to vector<6x1xf32>
    %255 = arith.addf %251, %254 : vector<6x1xf32>
    %256 = math.rsqrt %255 : vector<6x1xf32>
    %257 = vector.broadcast %256 : vector<6x1xf32> to vector<6x32xf32>
    %258 = arith.mulf %253, %257 : vector<6x32xf32>
    %259 = vector.broadcast %238 : vector<1x32xf32> to vector<6x32xf32>
    %260 = arith.mulf %258, %259 : vector<6x32xf32>
    %261 = vector.broadcast %240 : vector<1x32xf32> to vector<6x32xf32>
    %262 = arith.addf %260, %261 : vector<6x32xf32>
    %263 = arith.truncf %262 : vector<6x32xf32> to vector<6x32xbf16>
    %c0_124 = arith.constant 0 : index
    %c0_125 = arith.constant 0 : index
    %c0_126 = arith.constant 0 : index
    %264 = vector.load %arg19[%c0_124, %c0_125, %c0_126] : memref<2x32x64xbf16, #tpu.memory_space<vmem>>, vector<1x32x64xbf16>
    %265 = vector.shape_cast %264 : vector<1x32x64xbf16> to vector<32x64xbf16>
    %cst_127 = arith.constant dense<0.000000e+00> : vector<6x64xf32>
    %266 = tpu.matmul %263, %265, %cst_127 {dimension_numbers = #tpu.dot_dimension_numbers<[1], [0], [0], [1], [0, 0, 1, 1], [], []>} : vector<6x32xbf16>, vector<32x64xbf16>, vector<6x64xf32> -> vector<6x64xf32>
    %c0_128 = arith.constant 0 : index
    %c0_129 = arith.constant 0 : index
    %c0_130 = arith.constant 0 : index
    %267 = vector.load %arg20[%c0_128, %c0_129, %c0_130] : memref<2x1x64xf32, #tpu.memory_space<vmem>>, vector<1x1x64xf32>
    %268 = vector.shape_cast %267 : vector<1x1x64xf32> to vector<1x64xf32>
    %269 = vector.broadcast %268 : vector<1x64xf32> to vector<6x64xf32>
    %270 = arith.addf %266, %269 : vector<6x64xf32>
    %cst_131 = arith.constant 0.000000e+00 : f32
    %271 = vector.broadcast %cst_131 : f32 to vector<6x64xf32>
    %272 = arith.maximumf %270, %271 : vector<6x64xf32>
    %273 = arith.truncf %272 : vector<6x64xf32> to vector<6x64xbf16>
    %c0_132 = arith.constant 0 : index
    %c0_133 = arith.constant 0 : index
    %c0_134 = arith.constant 0 : index
    %274 = vector.load %arg21[%c0_132, %c0_133, %c0_134] : memref<2x64x32xbf16, #tpu.memory_space<vmem>>, vector<1x64x32xbf16>
    %275 = vector.shape_cast %274 : vector<1x64x32xbf16> to vector<64x32xbf16>
    %cst_135 = arith.constant dense<0.000000e+00> : vector<6x32xf32>
    %276 = tpu.matmul %273, %275, %cst_135 {dimension_numbers = #tpu.dot_dimension_numbers<[1], [0], [0], [1], [0, 0, 1, 1], [], []>} : vector<6x64xbf16>, vector<64x32xbf16>, vector<6x32xf32> -> vector<6x32xf32>
    %c0_136 = arith.constant 0 : index
    %c0_137 = arith.constant 0 : index
    %c0_138 = arith.constant 0 : index
    %277 = vector.load %arg22[%c0_136, %c0_137, %c0_138] : memref<2x1x32xf32, #tpu.memory_space<vmem>>, vector<1x1x32xf32>
    %278 = vector.shape_cast %277 : vector<1x1x32xf32> to vector<1x32xf32>
    %279 = vector.broadcast %278 : vector<1x32xf32> to vector<6x32xf32>
    %280 = arith.addf %276, %279 : vector<6x32xf32>
    %281 = arith.addf %262, %280 : vector<6x32xf32>
    %c0_139 = arith.constant 0 : index
    %c0_140 = arith.constant 0 : index
    %c0_141 = arith.constant 0 : index
    %282 = vector.load %arg25[%c0_139, %c0_140, %c0_141] : memref<2x1x32xf32, #tpu.memory_space<vmem>>, vector<1x1x32xf32>
    %283 = vector.shape_cast %282 : vector<1x1x32xf32> to vector<1x32xf32>
    %c0_142 = arith.constant 0 : index
    %c0_143 = arith.constant 0 : index
    %c0_144 = arith.constant 0 : index
    %284 = vector.load %arg26[%c0_142, %c0_143, %c0_144] : memref<2x1x32xf32, #tpu.memory_space<vmem>>, vector<1x1x32xf32>
    %285 = vector.shape_cast %284 : vector<1x1x32xf32> to vector<1x32xf32>
    %cst_145 = arith.constant dense<0.000000e+00> : vector<6xf32>
    %286 = vector.multi_reduction <add>, %281, %cst_145 [1] : vector<6x32xf32> to vector<6xf32>
    %287 = vector.shape_cast %286 : vector<6xf32> to vector<6x1xf32>
    %cst_146 = arith.constant 3.200000e+01 : f32
    %288 = vector.broadcast %cst_146 : f32 to vector<6x1xf32>
    %289 = arith.divf %287, %288 : vector<6x1xf32>
    %290 = vector.broadcast %289 : vector<6x1xf32> to vector<6x32xf32>
    %291 = arith.subf %281, %290 : vector<6x32xf32>
    %292 = arith.mulf %291, %291 : vector<6x32xf32>
    %cst_147 = arith.constant dense<0.000000e+00> : vector<6xf32>
    %293 = vector.multi_reduction <add>, %292, %cst_147 [1] : vector<6x32xf32> to vector<6xf32>
    %294 = vector.shape_cast %293 : vector<6xf32> to vector<6x1xf32>
    %cst_148 = arith.constant 3.200000e+01 : f32
    %295 = vector.broadcast %cst_148 : f32 to vector<6x1xf32>
    %296 = arith.divf %294, %295 : vector<6x1xf32>
    %297 = vector.broadcast %289 : vector<6x1xf32> to vector<6x32xf32>
    %298 = arith.subf %281, %297 : vector<6x32xf32>
    %cst_149 = arith.constant 9.99999974E-6 : f32
    %299 = vector.broadcast %cst_149 : f32 to vector<6x1xf32>
    %300 = arith.addf %296, %299 : vector<6x1xf32>
    %301 = math.rsqrt %300 : vector<6x1xf32>
    %302 = vector.broadcast %301 : vector<6x1xf32> to vector<6x32xf32>
    %303 = arith.mulf %298, %302 : vector<6x32xf32>
    %304 = vector.broadcast %283 : vector<1x32xf32> to vector<6x32xf32>
    %305 = arith.mulf %303, %304 : vector<6x32xf32>
    %306 = vector.broadcast %285 : vector<1x32xf32> to vector<6x32xf32>
    %307 = arith.addf %305, %306 : vector<6x32xf32>
    %308 = arith.truncf %307 : vector<6x32xf32> to vector<6x32xbf16>
    %c1_150 = arith.constant 1 : index
    %c0_151 = arith.constant 0 : index
    %c0_152 = arith.constant 0 : index
    %309 = vector.load %arg15[%c1_150, %c0_151, %c0_152] : memref<2x32x96xbf16, #tpu.memory_space<vmem>>, vector<1x32x96xbf16>
    %310 = vector.shape_cast %309 : vector<1x32x96xbf16> to vector<32x96xbf16>
    %cst_153 = arith.constant dense<0.000000e+00> : vector<6x96xf32>
    %311 = tpu.matmul %308, %310, %cst_153 {dimension_numbers = #tpu.dot_dimension_numbers<[1], [0], [0], [1], [0, 0, 1, 1], [], []>} : vector<6x32xbf16>, vector<32x96xbf16>, vector<6x96xf32> -> vector<6x96xf32>
    %c1_154 = arith.constant 1 : index
    %c0_155 = arith.constant 0 : index
    %c0_156 = arith.constant 0 : index
    %312 = vector.load %arg16[%c1_154, %c0_155, %c0_156] : memref<2x1x96xf32, #tpu.memory_space<vmem>>, vector<1x1x96xf32>
    %313 = vector.shape_cast %312 : vector<1x1x96xf32> to vector<1x96xf32>
    %314 = vector.broadcast %313 : vector<1x96xf32> to vector<6x96xf32>
    %315 = arith.addf %311, %314 : vector<6x96xf32>
    %316 = vector.extract_strided_slice %315 {offsets = [0, 0], sizes = [6, 32], strides = [1, 1]} : vector<6x96xf32> to vector<6x32xf32>
    %317 = vector.shape_cast %316 : vector<6x32xf32> to vector<2x3x32xf32>
    %318 = vector.extract_strided_slice %315 {offsets = [0, 32], sizes = [6, 32], strides = [1, 1]} : vector<6x96xf32> to vector<6x32xf32>
    %319 = vector.shape_cast %318 : vector<6x32xf32> to vector<2x3x32xf32>
    %320 = vector.extract_strided_slice %315 {offsets = [0, 64], sizes = [6, 32], strides = [1, 1]} : vector<6x96xf32> to vector<6x32xf32>
    %321 = vector.shape_cast %320 : vector<6x32xf32> to vector<2x3x32xf32>
    %322 = vector.shape_cast %317 : vector<2x3x32xf32> to vector<2x1x3x32xf32>
    %323 = vector.shape_cast %319 : vector<2x3x32xf32> to vector<1x2x3x32xf32>
    %324 = vector.broadcast %322 : vector<2x1x3x32xf32> to vector<2x2x3x32xf32>
    %325 = vector.broadcast %323 : vector<1x2x3x32xf32> to vector<2x2x3x32xf32>
    %326 = arith.mulf %324, %325 : vector<2x2x3x32xf32>
    %327 = vector.shape_cast %326 : vector<2x2x3x32xf32> to vector<12x32xf32>
    %328 = arith.truncf %327 : vector<12x32xf32> to vector<12x32xbf16>
    %cst_157 = arith.constant dense<0.000000e+00> : vector<12x32xf32>
    %329 = tpu.matmul %328, %189, %cst_157 {dimension_numbers = #tpu.dot_dimension_numbers<[1], [0], [0], [1], [0, 0, 1, 1], [], []>} : vector<12x32xbf16>, vector<32x32xbf16>, vector<12x32xf32> -> vector<12x32xf32>
    %330 = vector.shape_cast %329 : vector<12x32xf32> to vector<2x2x3x32xf32>
    %cst_158 = arith.constant dense<0xFF800000> : vector<2x3x32xf32>
    %331 = vector.multi_reduction <maximumf>, %330, %cst_158 [1] : vector<2x2x3x32xf32> to vector<2x3x32xf32>
    %332 = vector.shape_cast %331 : vector<2x3x32xf32> to vector<2x1x3x32xf32>
    %333 = vector.broadcast %332 : vector<2x1x3x32xf32> to vector<2x2x3x32xf32>
    %334 = arith.subf %330, %333 : vector<2x2x3x32xf32>
    %335 = math.exp %334 : vector<2x2x3x32xf32>
    %cst_159 = arith.constant dense<0.000000e+00> : vector<2x3x32xf32>
    %336 = vector.multi_reduction <add>, %335, %cst_159 [1] : vector<2x2x3x32xf32> to vector<2x3x32xf32>
    %337 = vector.shape_cast %336 : vector<2x3x32xf32> to vector<2x1x3x32xf32>
    %338 = tpu.reciprocal %337 {approx = true} : vector<2x1x3x32xf32> -> vector<2x1x3x32xf32>
    %339 = vector.broadcast %338 : vector<2x1x3x32xf32> to vector<2x2x3x32xf32>
    %340 = arith.mulf %335, %339 : vector<2x2x3x32xf32>
    %341 = vector.shape_cast %321 : vector<2x3x32xf32> to vector<1x2x3x32xf32>
    %342 = vector.broadcast %341 : vector<1x2x3x32xf32> to vector<2x2x3x32xf32>
    %343 = arith.mulf %340, %342 : vector<2x2x3x32xf32>
    %cst_160 = arith.constant dense<0.000000e+00> : vector<2x3x32xf32>
    %344 = vector.multi_reduction <add>, %343, %cst_160 [1] : vector<2x2x3x32xf32> to vector<2x3x32xf32>
    %345 = vector.shape_cast %344 : vector<2x3x32xf32> to vector<6x32xf32>
    %346 = arith.truncf %345 : vector<6x32xf32> to vector<6x32xbf16>
    %c1_161 = arith.constant 1 : index
    %c0_162 = arith.constant 0 : index
    %c0_163 = arith.constant 0 : index
    %347 = vector.load %arg17[%c1_161, %c0_162, %c0_163] : memref<2x32x32xbf16, #tpu.memory_space<vmem>>, vector<1x32x32xbf16>
    %348 = vector.shape_cast %347 : vector<1x32x32xbf16> to vector<32x32xbf16>
    %cst_164 = arith.constant dense<0.000000e+00> : vector<6x32xf32>
    %349 = tpu.matmul %346, %348, %cst_164 {dimension_numbers = #tpu.dot_dimension_numbers<[1], [0], [0], [1], [0, 0, 1, 1], [], []>} : vector<6x32xbf16>, vector<32x32xbf16>, vector<6x32xf32> -> vector<6x32xf32>
    %c1_165 = arith.constant 1 : index
    %c0_166 = arith.constant 0 : index
    %c0_167 = arith.constant 0 : index
    %350 = vector.load %arg18[%c1_165, %c0_166, %c0_167] : memref<2x1x32xf32, #tpu.memory_space<vmem>>, vector<1x1x32xf32>
    %351 = vector.shape_cast %350 : vector<1x1x32xf32> to vector<1x32xf32>
    %352 = vector.broadcast %351 : vector<1x32xf32> to vector<6x32xf32>
    %353 = arith.addf %349, %352 : vector<6x32xf32>
    %354 = arith.addf %307, %353 : vector<6x32xf32>
    %c1_168 = arith.constant 1 : index
    %c0_169 = arith.constant 0 : index
    %c0_170 = arith.constant 0 : index
    %355 = vector.load %arg23[%c1_168, %c0_169, %c0_170] : memref<2x1x32xf32, #tpu.memory_space<vmem>>, vector<1x1x32xf32>
    %356 = vector.shape_cast %355 : vector<1x1x32xf32> to vector<1x32xf32>
    %c1_171 = arith.constant 1 : index
    %c0_172 = arith.constant 0 : index
    %c0_173 = arith.constant 0 : index
    %357 = vector.load %arg24[%c1_171, %c0_172, %c0_173] : memref<2x1x32xf32, #tpu.memory_space<vmem>>, vector<1x1x32xf32>
    %358 = vector.shape_cast %357 : vector<1x1x32xf32> to vector<1x32xf32>
    %cst_174 = arith.constant dense<0.000000e+00> : vector<6xf32>
    %359 = vector.multi_reduction <add>, %354, %cst_174 [1] : vector<6x32xf32> to vector<6xf32>
    %360 = vector.shape_cast %359 : vector<6xf32> to vector<6x1xf32>
    %cst_175 = arith.constant 3.200000e+01 : f32
    %361 = vector.broadcast %cst_175 : f32 to vector<6x1xf32>
    %362 = arith.divf %360, %361 : vector<6x1xf32>
    %363 = vector.broadcast %362 : vector<6x1xf32> to vector<6x32xf32>
    %364 = arith.subf %354, %363 : vector<6x32xf32>
    %365 = arith.mulf %364, %364 : vector<6x32xf32>
    %cst_176 = arith.constant dense<0.000000e+00> : vector<6xf32>
    %366 = vector.multi_reduction <add>, %365, %cst_176 [1] : vector<6x32xf32> to vector<6xf32>
    %367 = vector.shape_cast %366 : vector<6xf32> to vector<6x1xf32>
    %cst_177 = arith.constant 3.200000e+01 : f32
    %368 = vector.broadcast %cst_177 : f32 to vector<6x1xf32>
    %369 = arith.divf %367, %368 : vector<6x1xf32>
    %370 = vector.broadcast %362 : vector<6x1xf32> to vector<6x32xf32>
    %371 = arith.subf %354, %370 : vector<6x32xf32>
    %cst_178 = arith.constant 9.99999974E-6 : f32
    %372 = vector.broadcast %cst_178 : f32 to vector<6x1xf32>
    %373 = arith.addf %369, %372 : vector<6x1xf32>
    %374 = math.rsqrt %373 : vector<6x1xf32>
    %375 = vector.broadcast %374 : vector<6x1xf32> to vector<6x32xf32>
    %376 = arith.mulf %371, %375 : vector<6x32xf32>
    %377 = vector.broadcast %356 : vector<1x32xf32> to vector<6x32xf32>
    %378 = arith.mulf %376, %377 : vector<6x32xf32>
    %379 = vector.broadcast %358 : vector<1x32xf32> to vector<6x32xf32>
    %380 = arith.addf %378, %379 : vector<6x32xf32>
    %381 = arith.truncf %380 : vector<6x32xf32> to vector<6x32xbf16>
    %c1_179 = arith.constant 1 : index
    %c0_180 = arith.constant 0 : index
    %c0_181 = arith.constant 0 : index
    %382 = vector.load %arg19[%c1_179, %c0_180, %c0_181] : memref<2x32x64xbf16, #tpu.memory_space<vmem>>, vector<1x32x64xbf16>
    %383 = vector.shape_cast %382 : vector<1x32x64xbf16> to vector<32x64xbf16>
    %cst_182 = arith.constant dense<0.000000e+00> : vector<6x64xf32>
    %384 = tpu.matmul %381, %383, %cst_182 {dimension_numbers = #tpu.dot_dimension_numbers<[1], [0], [0], [1], [0, 0, 1, 1], [], []>} : vector<6x32xbf16>, vector<32x64xbf16>, vector<6x64xf32> -> vector<6x64xf32>
    %c1_183 = arith.constant 1 : index
    %c0_184 = arith.constant 0 : index
    %c0_185 = arith.constant 0 : index
    %385 = vector.load %arg20[%c1_183, %c0_184, %c0_185] : memref<2x1x64xf32, #tpu.memory_space<vmem>>, vector<1x1x64xf32>
    %386 = vector.shape_cast %385 : vector<1x1x64xf32> to vector<1x64xf32>
    %387 = vector.broadcast %386 : vector<1x64xf32> to vector<6x64xf32>
    %388 = arith.addf %384, %387 : vector<6x64xf32>
    %cst_186 = arith.constant 0.000000e+00 : f32
    %389 = vector.broadcast %cst_186 : f32 to vector<6x64xf32>
    %390 = arith.maximumf %388, %389 : vector<6x64xf32>
    %391 = arith.truncf %390 : vector<6x64xf32> to vector<6x64xbf16>
    %c1_187 = arith.constant 1 : index
    %c0_188 = arith.constant 0 : index
    %c0_189 = arith.constant 0 : index
    %392 = vector.load %arg21[%c1_187, %c0_188, %c0_189] : memref<2x64x32xbf16, #tpu.memory_space<vmem>>, vector<1x64x32xbf16>
    %393 = vector.shape_cast %392 : vector<1x64x32xbf16> to vector<64x32xbf16>
    %cst_190 = arith.constant dense<0.000000e+00> : vector<6x32xf32>
    %394 = tpu.matmul %391, %393, %cst_190 {dimension_numbers = #tpu.dot_dimension_numbers<[1], [0], [0], [1], [0, 0, 1, 1], [], []>} : vector<6x64xbf16>, vector<64x32xbf16>, vector<6x32xf32> -> vector<6x32xf32>
    %c1_191 = arith.constant 1 : index
    %c0_192 = arith.constant 0 : index
    %c0_193 = arith.constant 0 : index
    %395 = vector.load %arg22[%c1_191, %c0_192, %c0_193] : memref<2x1x32xf32, #tpu.memory_space<vmem>>, vector<1x1x32xf32>
    %396 = vector.shape_cast %395 : vector<1x1x32xf32> to vector<1x32xf32>
    %397 = vector.broadcast %396 : vector<1x32xf32> to vector<6x32xf32>
    %398 = arith.addf %394, %397 : vector<6x32xf32>
    %399 = arith.addf %380, %398 : vector<6x32xf32>
    %c1_194 = arith.constant 1 : index
    %c0_195 = arith.constant 0 : index
    %c0_196 = arith.constant 0 : index
    %400 = vector.load %arg25[%c1_194, %c0_195, %c0_196] : memref<2x1x32xf32, #tpu.memory_space<vmem>>, vector<1x1x32xf32>
    %401 = vector.shape_cast %400 : vector<1x1x32xf32> to vector<1x32xf32>
    %c1_197 = arith.constant 1 : index
    %c0_198 = arith.constant 0 : index
    %c0_199 = arith.constant 0 : index
    %402 = vector.load %arg26[%c1_197, %c0_198, %c0_199] : memref<2x1x32xf32, #tpu.memory_space<vmem>>, vector<1x1x32xf32>
    %403 = vector.shape_cast %402 : vector<1x1x32xf32> to vector<1x32xf32>
    %cst_200 = arith.constant dense<0.000000e+00> : vector<6xf32>
    %404 = vector.multi_reduction <add>, %399, %cst_200 [1] : vector<6x32xf32> to vector<6xf32>
    %405 = vector.shape_cast %404 : vector<6xf32> to vector<6x1xf32>
    %cst_201 = arith.constant 3.200000e+01 : f32
    %406 = vector.broadcast %cst_201 : f32 to vector<6x1xf32>
    %407 = arith.divf %405, %406 : vector<6x1xf32>
    %408 = vector.broadcast %407 : vector<6x1xf32> to vector<6x32xf32>
    %409 = arith.subf %399, %408 : vector<6x32xf32>
    %410 = arith.mulf %409, %409 : vector<6x32xf32>
    %cst_202 = arith.constant dense<0.000000e+00> : vector<6xf32>
    %411 = vector.multi_reduction <add>, %410, %cst_202 [1] : vector<6x32xf32> to vector<6xf32>
    %412 = vector.shape_cast %411 : vector<6xf32> to vector<6x1xf32>
    %cst_203 = arith.constant 3.200000e+01 : f32
    %413 = vector.broadcast %cst_203 : f32 to vector<6x1xf32>
    %414 = arith.divf %412, %413 : vector<6x1xf32>
    %415 = vector.broadcast %407 : vector<6x1xf32> to vector<6x32xf32>
    %416 = arith.subf %399, %415 : vector<6x32xf32>
    %cst_204 = arith.constant 9.99999974E-6 : f32
    %417 = vector.broadcast %cst_204 : f32 to vector<6x1xf32>
    %418 = arith.addf %414, %417 : vector<6x1xf32>
    %419 = math.rsqrt %418 : vector<6x1xf32>
    %420 = vector.broadcast %419 : vector<6x1xf32> to vector<6x32xf32>
    %421 = arith.mulf %416, %420 : vector<6x32xf32>
    %422 = vector.broadcast %401 : vector<1x32xf32> to vector<6x32xf32>
    %423 = arith.mulf %421, %422 : vector<6x32xf32>
    %424 = vector.broadcast %403 : vector<1x32xf32> to vector<6x32xf32>
    %425 = arith.addf %423, %424 : vector<6x32xf32>
    %cst_205 = arith.constant dense<0.000000e+00> : vector<6xf32>
    %426 = vector.multi_reduction <add>, %425, %cst_205 [1] : vector<6x32xf32> to vector<6xf32>
    %427 = vector.shape_cast %426 : vector<6xf32> to vector<6x1xf32>
    %cst_206 = arith.constant 3.200000e+01 : f32
    %428 = vector.broadcast %cst_206 : f32 to vector<6x1xf32>
    %429 = arith.divf %427, %428 : vector<6x1xf32>
    %430 = vector.broadcast %429 : vector<6x1xf32> to vector<6x32xf32>
    %431 = arith.subf %425, %430 : vector<6x32xf32>
    %432 = arith.mulf %431, %431 : vector<6x32xf32>
    %cst_207 = arith.constant dense<0.000000e+00> : vector<6xf32>
    %433 = vector.multi_reduction <add>, %432, %cst_207 [1] : vector<6x32xf32> to vector<6xf32>
    %434 = vector.shape_cast %433 : vector<6xf32> to vector<6x1xf32>
    %cst_208 = arith.constant 3.200000e+01 : f32
    %435 = vector.broadcast %cst_208 : f32 to vector<6x1xf32>
    %436 = arith.divf %434, %435 : vector<6x1xf32>
    %437 = vector.broadcast %429 : vector<6x1xf32> to vector<6x32xf32>
    %438 = arith.subf %425, %437 : vector<6x32xf32>
    %cst_209 = arith.constant 9.99999974E-6 : f32
    %439 = vector.broadcast %cst_209 : f32 to vector<6x1xf32>
    %440 = arith.addf %436, %439 : vector<6x1xf32>
    %441 = math.rsqrt %440 : vector<6x1xf32>
    %442 = vector.broadcast %441 : vector<6x1xf32> to vector<6x32xf32>
    %443 = arith.mulf %438, %442 : vector<6x32xf32>
    %444 = vector.shape_cast %443 : vector<6x32xf32> to vector<2x3x32xf32>
    %cst_210 = arith.constant dense<0.000000e+00> : vector<2x32xf32>
    %445 = vector.multi_reduction <add>, %444, %cst_210 [1] : vector<2x3x32xf32> to vector<2x32xf32>
    %cst_211 = arith.constant 3.000000e+00 : f32
    %446 = vector.broadcast %cst_211 : f32 to vector<2x32xf32>
    %447 = arith.divf %445, %446 : vector<2x32xf32>
    %c0_212 = arith.constant 0 : index
    %c0_213 = arith.constant 0 : index
    %448 = vector.load %arg27[%c0_212, %c0_213] : memref<1x32xf32, #tpu.memory_space<vmem>>, vector<1x32xf32>
    %449 = vector.broadcast %448 : vector<1x32xf32> to vector<2x32xf32>
    %450 = arith.mulf %447, %449 : vector<2x32xf32>
    %cst_214 = arith.constant dense<0.000000e+00> : vector<2xf32>
    %451 = vector.multi_reduction <add>, %450, %cst_214 [1] : vector<2x32xf32> to vector<2xf32>
    %452 = vector.shape_cast %451 : vector<2xf32> to vector<2x1xf32>
    %c0_215 = arith.constant 0 : index
    %c0_216 = arith.constant 0 : index
    %453 = vector.load %arg28[%c0_215, %c0_216] : memref<1x1xf32, #tpu.memory_space<vmem>>, vector<1x1xf32>
    %454 = vector.broadcast %453 : vector<1x1xf32> to vector<2x1xf32>
    %455 = arith.addf %452, %454 : vector<2x1xf32>
    %cst_217 = arith.constant 0.000000e+00 : f32
    %456 = vector.broadcast %cst_217 : f32 to vector<2x1xf32>
    %457 = arith.subf %456, %455 : vector<2x1xf32>
    %458 = math.exp %457 : vector<2x1xf32>
    %cst_218 = arith.constant 1.000000e+00 : f32
    %459 = vector.broadcast %cst_218 : f32 to vector<2x1xf32>
    %460 = arith.addf %459, %458 : vector<2x1xf32>
    %461 = tpu.reciprocal %460 {approx = true} : vector<2x1xf32> -> vector<2x1xf32>
    %c0_219 = arith.constant 0 : index
    %c0_220 = arith.constant 0 : index
    %462 = vector.load %arg29[%c0_219, %c0_220] : memref<2x1xf32, #tpu.memory_space<vmem>>, vector<2x1xf32>
    tpu.vector_store %arg29[%c0_219, %c0_220], %461 {strides = array<i32>} : memref<2x1xf32, #tpu.memory_space<vmem>>, vector<2x1xf32>,
    return
  }
  func.func @transform_0(%arg0: i32) -> (i32, i32, i32) {
    %c0_i32 = arith.constant 0 : i32
    %c0_i32_0 = arith.constant 0 : i32
    %c0_i32_1 = arith.constant 0 : i32
    %c0_i32_2 = arith.constant 0 : i32
    return %c0_i32, %c0_i32_0, %c0_i32_1 : i32, i32, i32
  }
  func.func @transform_1(%arg0: i32) -> (i32, i32, i32, i32) {
    %c0_i32 = arith.constant 0 : i32
    %c0_i32_0 = arith.constant 0 : i32
    %c0_i32_1 = arith.constant 0 : i32
    %c0_i32_2 = arith.constant 0 : i32
    %c0_i32_3 = arith.constant 0 : i32
    return %c0_i32, %c0_i32_0, %c0_i32_1, %c0_i32_2 : i32, i32, i32, i32
  }
  func.func @transform_2(%arg0: i32) -> (i32, i32, i32, i32) {
    %c0_i32 = arith.constant 0 : i32
    %c0_i32_0 = arith.constant 0 : i32
    %c0_i32_1 = arith.constant 0 : i32
    %c0_i32_2 = arith.constant 0 : i32
    %c0_i32_3 = arith.constant 0 : i32
    return %c0_i32, %c0_i32_0, %c0_i32_1, %c0_i32_2 : i32, i32, i32, i32
  }
  func.func @transform_3(%arg0: i32) -> (i32, i32, i32, i32) {
    %c0_i32 = arith.constant 0 : i32
    %c0_i32_0 = arith.constant 0 : i32
    %c0_i32_1 = arith.constant 0 : i32
    %c0_i32_2 = arith.constant 0 : i32
    %c0_i32_3 = arith.constant 0 : i32
    return %c0_i32, %c0_i32_0, %c0_i32_1, %c0_i32_2 : i32, i32, i32, i32
  }
  func.func @transform_4(%arg0: i32) -> (i32, i32, i32) {
    %c0_i32 = arith.constant 0 : i32
    %c0_i32_0 = arith.constant 0 : i32
    %c0_i32_1 = arith.constant 0 : i32
    %c0_i32_2 = arith.constant 0 : i32
    return %c0_i32, %c0_i32_0, %c0_i32_1 : i32, i32, i32
  }
  func.func @transform_5(%arg0: i32) -> (i32, i32) {
    %c0_i32 = arith.constant 0 : i32
    %c0_i32_0 = arith.constant 0 : i32
    %c0_i32_1 = arith.constant 0 : i32
    return %c0_i32, %c0_i32_0 : i32, i32
  }
  func.func @transform_6(%arg0: i32) -> (i32, i32) {
    %c0_i32 = arith.constant 0 : i32
    %c0_i32_0 = arith.constant 0 : i32
    %c0_i32_1 = arith.constant 0 : i32
    return %c0_i32, %c0_i32_0 : i32, i32
  }
  func.func @transform_7(%arg0: i32) -> (i32, i32) {
    %c0_i32 = arith.constant 0 : i32
    %c0_i32_0 = arith.constant 0 : i32
    %c0_i32_1 = arith.constant 0 : i32
    return %c0_i32, %c0_i32_0 : i32, i32
  }
  func.func @transform_8(%arg0: i32) -> (i32, i32, i32) {
    %c0_i32 = arith.constant 0 : i32
    %c0_i32_0 = arith.constant 0 : i32
    %c0_i32_1 = arith.constant 0 : i32
    %c0_i32_2 = arith.constant 0 : i32
    return %c0_i32, %c0_i32_0, %c0_i32_1 : i32, i32, i32
  }
  func.func @transform_9(%arg0: i32) -> (i32, i32) {
    %c0_i32 = arith.constant 0 : i32
    %c0_i32_0 = arith.constant 0 : i32
    %c0_i32_1 = arith.constant 0 : i32
    return %c0_i32, %c0_i32_0 : i32, i32
  }
  func.func @transform_10(%arg0: i32) -> (i32, i32) {
    %c0_i32 = arith.constant 0 : i32
    %c0_i32_0 = arith.constant 0 : i32
    %c0_i32_1 = arith.constant 0 : i32
    return %c0_i32, %c0_i32_0 : i32, i32
  }
  func.func @transform_11(%arg0: i32) -> (i32, i32) {
    %c0_i32 = arith.constant 0 : i32
    %c0_i32_0 = arith.constant 0 : i32
    %c0_i32_1 = arith.constant 0 : i32
    return %c0_i32, %c0_i32_0 : i32, i32
  }
  func.func @transform_12(%arg0: i32) -> (i32, i32, i32) {
    %c0_i32 = arith.constant 0 : i32
    %c0_i32_0 = arith.constant 0 : i32
    %c0_i32_1 = arith.constant 0 : i32
    %c0_i32_2 = arith.constant 0 : i32
    return %c0_i32, %c0_i32_0, %c0_i32_1 : i32, i32, i32
  }
  func.func @transform_13(%arg0: i32) -> (i32, i32) {
    %c0_i32 = arith.constant 0 : i32
    %c0_i32_0 = arith.constant 0 : i32
    %c0_i32_1 = arith.constant 0 : i32
    return %c0_i32, %c0_i32_0 : i32, i32
  }
  func.func @transform_14(%arg0: i32) -> (i32, i32, i32) {
    %c0_i32 = arith.constant 0 : i32
    %c0_i32_0 = arith.constant 0 : i32
    %c0_i32_1 = arith.constant 0 : i32
    %c0_i32_2 = arith.constant 0 : i32
    return %c0_i32, %c0_i32_0, %c0_i32_1 : i32, i32, i32
  }
  func.func @transform_15(%arg0: i32) -> (i32, i32, i32) {
    %c0_i32 = arith.constant 0 : i32
    %c0_i32_0 = arith.constant 0 : i32
    %c0_i32_1 = arith.constant 0 : i32
    %c0_i32_2 = arith.constant 0 : i32
    return %c0_i32, %c0_i32_0, %c0_i32_1 : i32, i32, i32
  }
  func.func @transform_16(%arg0: i32) -> (i32, i32, i32) {
    %c0_i32 = arith.constant 0 : i32
    %c0_i32_0 = arith.constant 0 : i32
    %c0_i32_1 = arith.constant 0 : i32
    %c0_i32_2 = arith.constant 0 : i32
    return %c0_i32, %c0_i32_0, %c0_i32_1 : i32, i32, i32
  }
  func.func @transform_17(%arg0: i32) -> (i32, i32, i32) {
    %c0_i32 = arith.constant 0 : i32
    %c0_i32_0 = arith.constant 0 : i32
    %c0_i32_1 = arith.constant 0 : i32
    %c0_i32_2 = arith.constant 0 : i32
    return %c0_i32, %c0_i32_0, %c0_i32_1 : i32, i32, i32
  }
  func.func @transform_18(%arg0: i32) -> (i32, i32, i32) {
    %c0_i32 = arith.constant 0 : i32
    %c0_i32_0 = arith.constant 0 : i32
    %c0_i32_1 = arith.constant 0 : i32
    %c0_i32_2 = arith.constant 0 : i32
    return %c0_i32, %c0_i32_0, %c0_i32_1 : i32, i32, i32
  }
  func.func @transform_19(%arg0: i32) -> (i32, i32, i32) {
    %c0_i32 = arith.constant 0 : i32
    %c0_i32_0 = arith.constant 0 : i32
    %c0_i32_1 = arith.constant 0 : i32
    %c0_i32_2 = arith.constant 0 : i32
    return %c0_i32, %c0_i32_0, %c0_i32_1 : i32, i32, i32
  }
  func.func @transform_20(%arg0: i32) -> (i32, i32, i32) {
    %c0_i32 = arith.constant 0 : i32
    %c0_i32_0 = arith.constant 0 : i32
    %c0_i32_1 = arith.constant 0 : i32
    %c0_i32_2 = arith.constant 0 : i32
    return %c0_i32, %c0_i32_0, %c0_i32_1 : i32, i32, i32
  }
  func.func @transform_21(%arg0: i32) -> (i32, i32, i32) {
    %c0_i32 = arith.constant 0 : i32
    %c0_i32_0 = arith.constant 0 : i32
    %c0_i32_1 = arith.constant 0 : i32
    %c0_i32_2 = arith.constant 0 : i32
    return %c0_i32, %c0_i32_0, %c0_i32_1 : i32, i32, i32
  }
  func.func @transform_22(%arg0: i32) -> (i32, i32, i32) {
    %c0_i32 = arith.constant 0 : i32
    %c0_i32_0 = arith.constant 0 : i32
    %c0_i32_1 = arith.constant 0 : i32
    %c0_i32_2 = arith.constant 0 : i32
    return %c0_i32, %c0_i32_0, %c0_i32_1 : i32, i32, i32
  }
  func.func @transform_23(%arg0: i32) -> (i32, i32, i32) {
    %c0_i32 = arith.constant 0 : i32
    %c0_i32_0 = arith.constant 0 : i32
    %c0_i32_1 = arith.constant 0 : i32
    %c0_i32_2 = arith.constant 0 : i32
    return %c0_i32, %c0_i32_0, %c0_i32_1 : i32, i32, i32
  }
  func.func @transform_24(%arg0: i32) -> (i32, i32, i32) {
    %c0_i32 = arith.constant 0 : i32
    %c0_i32_0 = arith.constant 0 : i32
    %c0_i32_1 = arith.constant 0 : i32
    %c0_i32_2 = arith.constant 0 : i32
    return %c0_i32, %c0_i32_0, %c0_i32_1 : i32, i32, i32
  }
  func.func @transform_25(%arg0: i32) -> (i32, i32, i32) {
    %c0_i32 = arith.constant 0 : i32
    %c0_i32_0 = arith.constant 0 : i32
    %c0_i32_1 = arith.constant 0 : i32
    %c0_i32_2 = arith.constant 0 : i32
    return %c0_i32, %c0_i32_0, %c0_i32_1 : i32, i32, i32
  }
  func.func @transform_26(%arg0: i32) -> (i32, i32) {
    %c0_i32 = arith.constant 0 : i32
    %c0_i32_0 = arith.constant 0 : i32
    %c0_i32_1 = arith.constant 0 : i32
    return %c0_i32, %c0_i32_0 : i32, i32
  }
  func.func @transform_27(%arg0: i32) -> (i32, i32) {
    %c0_i32 = arith.constant 0 : i32
    %c0_i32_0 = arith.constant 0 : i32
    %c0_i32_1 = arith.constant 0 : i32
    return %c0_i32, %c0_i32_0 : i32, i32
  }
  func.func @transform_28(%arg0: i32) -> (i32, i32) {
    %c0_i32 = arith.constant 0 : i32
    %c0_i32_0 = arith.constant 0 : i32
    %c0_i32_1 = arith.constant 0 : i32
    return %c0_i32, %c0_i32_0 : i32, i32
  }
}

</mosaic_0001>

<bundles_post_ra>
// kernel: tpu_custom_call.1
= control target key start
LH: loop header
LB: loop body
LE: loop exit
PB: predicated region body
PF: predicated region fallthrough
CT: control target
= control target key end

     0   :  { %v10056_v0 = vmov 0   ;;  %vm108_vm0 = vcmask 31744   ;;  %vm2014_vm1 = vcmask 1041408   ;;  %vm3885_vm10 = vcmask 130048   ;;  %s13174_s2 = inlined_call_operand.vmem [shape: f32[3,1,31,1], index: 2, kind: input, shape index: {}]   ;;  %s13175_s3 = inlined_call_operand.vmem [shape: f32[3,1,31,1], index: 3, kind: input, shape index: {}]   ;;  %s13176_s0 = inlined_call_operand.vmem [shape: f32[2,64,4], index: 0, kind: input, shape index: {}]   ;;  %s13177_s4 = inlined_call_operand.vmem [shape: bf16[3,4,16], index: 4, kind: input, shape index: {}]   ;;  %s13178_s1 = inlined_call_operand.vmem [shape: f32[3,2,31,4], index: 1, kind: input, shape index: {}]   ;;  %s13179_s5 = inlined_call_operand.vmem [shape: f32[1,16], index: 5, kind: input, shape index: {}]   ;;  %s13180_s8 = inlined_call_operand.vmem [shape: bf16[3,16,32], index: 8, kind: input, shape index: {}]   ;;  %s13181_s6 = inlined_call_operand.vmem [shape: f32[1,16], index: 6, kind: input, shape index: {}]   ;;  %s13182_s7 = inlined_call_operand.vmem [shape: f32[1,16], index: 7, kind: input, shape index: {}]   ;;  %s13183_s9 = inlined_call_operand.vmem [shape: f32[1,32], index: 9, kind: input, shape index: {}]   ;;  %s13184_s14 = inlined_call_operand.vmem [shape: bf16[2,32,96], index: 14, kind: input, shape index: {}]   ;;  %s13185_s10 = inlined_call_operand.vmem [shape: f32[1,32], index: 10, kind: input, shape index: {}]   ;;  %s13186_s11 = inlined_call_operand.vmem [shape: f32[1,32], index: 11, kind: input, shape index: {}]   ;;  %s13187_s12 = inlined_call_operand.vmem [shape: f32[1,3,32], index: 12, kind: input, shape index: {}]   ;;  %s13188_s15 = inlined_call_operand.vmem [shape: f32[2,1,96], index: 15, kind: input, shape index: {}]   ;;  %s13189_s13 = inlined_call_operand.vmem [shape: bf16[32,32], index: 13, kind: input, shape index: {}]   ;;  %s13190_s16 = inlined_call_operand.vmem [shape: bf16[2,32,32], index: 16, kind: input, shape index: {}]   ;;  %s13191_s17 = inlined_call_operand.vmem [shape: f32[2,1,32], index: 17, kind: input, shape index: {}]   ;;  %s13192_s18 = inlined_call_operand.vmem [shape: bf16[2,32,64], index: 18, kind: input, shape index: {}]   ;;  %s13193_s20 = inlined_call_operand.vmem [shape: bf16[2,64,32], index: 20, kind: input, shape index: {}]   ;;  %s13194_s22 = inlined_call_operand.vmem [shape: f32[2,1,32], index: 22, kind: input, shape index: {}]   ;;  %s13195_s23 = inlined_call_operand.vmem [shape: f32[2,1,32], index: 23, kind: input, shape index: {}]   ;;  %s13196_s19 = inlined_call_operand.vmem [shape: f32[2,1,64], index: 19, kind: input, shape index: {}]   ;;  %s13197_s21 = inlined_call_operand.vmem [shape: f32[2,1,32], index: 21, kind: input, shape index: {}]   ;;  %s13198_s24 = inlined_call_operand.vmem [shape: f32[2,1,32], index: 24, kind: input, shape index: {}]   ;;  %s13199_s25 = inlined_call_operand.vmem [shape: f32[2,1,32], index: 25, kind: input, shape index: {}]   ;;  %s13200_s27 = inlined_call_operand.<no memory space> [shape: f32[1,1], index: 27, kind: input, shape index: {}]   ;;  %s13201_s26 = inlined_call_operand.vmem [shape: f32[1,32], index: 26, kind: input, shape index: {}]   ;;  %s13202_s28 = inlined_call_operand.vmem [shape: f32[2,1], index: 28, kind: output, shape index: {}]  }
   0x1   :  { %13238 = sst [smem:[#allocation25_spill]] %s13174_s2  ;;  %9942 = vset.pattern.permute.xlu1 %v10056_v0  ;;  %9941 = vset.pattern.permute.xlu0 %v10056_v0  ;;  %vm3889_vm11 = vcmask 129024   ;;  %vm10059_vm12 = vmmov 0   ;;  %vm4802_vm13 = vcmask 1041409   ;;  %vm4805_vm14 = vcmask 1042434  }
   0x2   :  { %13239 = sst [smem:[#allocation26_spill]] %s13175_s3  ;;  %vm4808_vm15 = vcmask 1043459  }
   0x3   :  { %13240 = sst [smem:[#allocation27_spill]] %s13176_s0 }
   0x4   :  { %13241 = sst [smem:[#allocation28_spill]] %s13177_s4 }
   0x5   :  { %13242 = sst [smem:[#allocation29_spill]] %s13178_s1  ;;  %s13254_s0 = sld [smem:[#allocation28_spill]] }
   0x6   :  { %13243 = sst [smem:[#allocation30_spill]] %s13179_s5  ;;  %s13253_s5 = sld [smem:[#allocation27_spill]] }
   0x7   :  { %13244 = sst [smem:[#allocation31_spill]] %s13180_s8  ;;  %s13255_s2 = sld [smem:[#allocation29_spill]] }
   0x8   :  { %13245 = sst [smem:[#allocation32_spill]] %s13181_s6  ;;  %s13252_s6 = sld [smem:[#allocation26_spill]] }
   0x9   :  { %13246 = sst [smem:[#allocation33_spill]] %s13182_s7  ;;  %s13351_s7 = sld [smem:[#allocation32_spill]] }
   0xa   :  { %13247 = sst [smem:[#allocation34_spill]] %s13183_s9  ;;  %s13251_s9 = sld [smem:[#allocation25_spill]] }
   0xb   :  { %13248 = sst [smem:[#allocation35_spill]] %s13184_s14  ;;  %s13367_s29 = sld [smem:[#allocation34_spill]] }
   0xc   :  { %13249 = sst [smem:[#allocation36_spill]] %s13185_s10  ;;  %v10228_v7 = vld [vmem:[%s13253_s5] sm:$0xff]  ;;  %v10233_v8 = vld [vmem:[%s13253_s5 + $0x8] sm:$0xff]  ;;  %v10238_v9 = vld [vmem:[%s13253_s5 + $0x10] sm:$0xff]  ;;  %s13341_s10 = sld [smem:[#allocation30_spill]] }
   0xd   :  { %13250 = sst [smem:[#allocation37_spill]] %s13186_s11  ;;  %v10246_v11 = vld [vmem:[%s13253_s5 + $0x18] sm:$0xff]  ;;  %v109_v12 = vsel %vm108_vm0, %v10228_v7, 0.0  ;;  %v110_v13 = vsel %vm108_vm0, %v10233_v8, 0.0  ;;  %v112_v14 = vsel %vm108_vm0, %v10238_v9, 0.0  ;;  %v10260_v16 = vld [vmem:[%s13253_s5 + $0x20] sm:$0xff] }
   0xe   :  { %v9583_v5 = vld [vmem:[%s13252_s6 + $0x28] sm:$0xff]  ;;  %v9582_v6 = vld [vmem:[%s13252_s6 + $0x20] sm:$0xff]  ;;  %v9585_v10 = vld [vmem:[%s13252_s6 + $0x38] sm:$0x7f]  ;;  %v111_v18 = vadd.f32 %v110_v13, %v109_v12  ;;  %v114_v22 = vsel %vm108_vm0, %v10246_v11, 0.0  ;;  %v116_v29 = vsel %vm108_vm0, %v10260_v16, 0.0 }
   0xf   :  { %v9584_v15 = vld [vmem:[%s13252_s6 + $0x30] sm:$0xff]  ;;  %v10265_v17 = vld [vmem:[%s13253_s5 + $0x40] sm:$0xff]  ;;  %v10270_v19 = vld [vmem:[%s13253_s5 + $0x48] sm:$0xff]  ;;  %s13350_s11 = sld [smem:[#allocation31_spill]]  ;;  %s10061_s1 = smov 64  }
  0x10   :  { %v9580_v1 = vld [vmem:[%s13251_s9 + $0x30] sm:$0xff]  ;;  %v9578_v2 = vld [vmem:[%s13251_s9 + $0x20] sm:$0xff]  ;;  %v9581_v3 = vld [vmem:[%s13251_s9 + $0x38] sm:$0x7f]  ;;  %v130_v23 = vsel %vm108_vm0, %v10265_v17, 0.0  ;;  %v113_v25 = vadd.f32 %v112_v14, %v111_v18  ;;  %v131_v26 = vsel %vm108_vm0, %v10270_v19, 0.0 }
  0x11   :  { %1158 = vperm.xlu1 %9942, %v9580_v1   ;;  %1148 = vperm.xlu0 %9941, %v9578_v2   ;;  %v9579_v4 = vld [vmem:[%s13251_s9 + $0x28] sm:$0xff]  ;;  %v10275_v20 = vld [vmem:[%s13253_s5 + $0x50] sm:$0xff]  ;;  %v10280_v21 = vld [vmem:[%s13253_s5 + $0x58] sm:$0xff]  ;;  %v132_v30 = vadd.f32 %v131_v26, %v130_v23 }
  0x12   :  { %v10289_v24 = vld [vmem:[%s13253_s5 + $0x28] sm:$0xff]  ;;  %v133_v27 = vsel %vm108_vm0, %v10275_v20, 0.0  ;;  %v10298_v28 = vld [vmem:[%s13253_s5 + $0x60] sm:$0xff]  ;;  %v10311_v33 = vld [vmem:[%s13253_s5 + $0x30] sm:$0xff]  ;;  %v115_v34 = vadd.f32 %v114_v22, %v113_v25  ;;  %v135_v35 = vsel %vm108_vm0, %v10280_v21, 0.0 }
  0x13   :  { %v259_v31 = vld [vmem:[%s13251_s9 + $0x8] sm:$0xff]  ;;  %v258_v32 = vld [vmem:[%s13251_s9] sm:$0xff]  ;;  %v118_v37 = vsel %vm108_vm0, %v10289_v24, 0.0  ;;  %v134_v38 = vadd.f32 %v133_v27, %v132_v30  ;;  %v10325_v39 = vld [vmem:[%s13253_s5 + $0x38] sm:$0xff]  ;;  %v137_v41 = vsel %vm108_vm0, %v10298_v28, 0.0  ;;  %v120_v43 = vsel %vm108_vm0, %v10311_v33, 0.0 }
  0x14   :  { %v10318_v36 = vld [vmem:[%s13253_s5 + $0x68] sm:$0xff]  ;;  %v117_v40 = vadd.f32 %v116_v29, %v115_v34  ;;  %v10332_v42 = vld [vmem:[%s13253_s5 + $0x70] sm:$0xff]  ;;  %v261_v45 = vld [vmem:[%s13251_s9 + $0x18] sm:$0x7f]  ;;  %v122_v50 = vsel %vm108_vm0, %v10325_v39, 0.0 }
  0x15   :  { %1163 = vperm.xlu1 %9942, %v9581_v3   ;;  %1153 = vperm.xlu0 %9941, %v9579_v4   ;;  %v136_v44 = vadd.f32 %v135_v35, %v134_v38  ;;  %v260_v46 = vld [vmem:[%s13251_s9 + $0x10] sm:$0xff]  ;;  %v139_v48 = vsel %vm108_vm0, %v10318_v36, 0.0  ;;  %v10347_v49 = vld [vmem:[%s13253_s5 + $0x78] sm:$0xff]  ;;  %v141_v53 = vsel %vm108_vm0, %v10332_v42, 0.0  ;;  %v291_v55 = vld [vmem:[%s13252_s6 + $0x8] sm:$0xff]  ;;  %s13369_s5 = sld [smem:[#allocation35_spill]] }
  0x16   :  { %v119_v47 = vadd.f32 %v118_v37, %v117_v40  ;;  %v290_v56 = vld [vmem:[%s13252_s6] sm:$0xff]  ;;  %v143_v58 = vsel %vm108_vm0, %v10347_v49, 0.0  ;;  %v293_v62 = vld [vmem:[%s13252_s6 + $0x18] sm:$0x7f]  ;;  %v292_v63 = vld [vmem:[%s13252_s6 + $0x10] sm:$0xff] }
  0x17   :  { %v138_v51 = vadd.f32 %v137_v41, %v136_v44  ;;  %v9611_v4 = vld [vmem:[%s13251_s9 + $0x48] sm:$0xff]  ;;  %v9613_v13 = vld [vmem:[%s13251_s9 + $0x58] sm:$0x7f]  ;;  %v9612_v14 = vld [vmem:[%s13251_s9 + $0x50] sm:$0xff] }
  0x18   :  { %v121_v52 = vadd.f32 %v120_v43, %v119_v47  ;;  %v9615_v22 = vld [vmem:[%s13252_s6 + $0x48] sm:$0xff]  ;;  %v9614_v23 = vld [vmem:[%s13252_s6 + $0x40] sm:$0xff]  ;;  %v9617_v27 = vld [vmem:[%s13252_s6 + $0x58] sm:$0x7f] }
  0x19   :  { %1186 = vperm.xlu1 %9942, %v9583_v5   ;;  %1181 = vperm.xlu0 %9941, %v9582_v6   ;;  %v140_v54 = vadd.f32 %v139_v48, %v138_v51  ;;  %v9610_v5 = vld [vmem:[%s13251_s9 + $0x40] sm:$0xff]  ;;  %v9616_v29 = vld [vmem:[%s13252_s6 + $0x50] sm:$0xff]  ;;  %s13352_s9 = sld [smem:[#allocation33_spill]]  ;;  %s13371_s6 = sld [smem:[#allocation37_spill]] }
  0x1a   :  { %v123_v57 = vadd.f32 %v122_v50, %v121_v52 }
  0x1b   :  { %v142_v59 = vadd.f32 %v141_v53, %v140_v54 }
  0x1c   :  { %v124_v60 = vrot.slane %v123_v57, 4 }
  0x1d   :  { %1196 = vperm.xlu1 %9942, %v9585_v10   ;;  %1191 = vperm.xlu0 %9941, %v9584_v15   ;;  %v144_v61 = vadd.f32 %v143_v58, %v142_v59 }
  0x1e   :  { %v125_v0 = vadd.f32 %v124_v60, %v123_v57 }
  0x1f   :  { %v145_v1 = vrot.slane %v144_v61, 4 }
  0x20   :  { %v126_v2 = vrot.slane %v125_v0, 2 }
  0x21   :  { %269 = vperm.xlu1 %9942, %v259_v31   ;;  %264 = vperm.xlu0 %9941, %v258_v32   ;;  %v146_v3 = vadd.f32 %v145_v1, %v144_v61 }
  0x22   :  { %v127_v10 = vadd.f32 %v126_v2, %v125_v0 }
  0x23   :  { %v147_v6 = vrot.slane %v146_v3, 2 }
  0x24   :  { %v128_v15 = vrot.slane %v127_v10, 1 }
  0x25   :  { %279 = vperm.xlu1 %9942, %v261_v45   ;;  %274 = vperm.xlu0 %9941, %v260_v46   ;;  %v148_v12 = vadd.f32 %v147_v6, %v146_v3 }
  0x26   :  { %v129_v25 = vadd.f32 %v128_v15, %v127_v10 }
  0x27   :  { %v149_v18 = vrot.slane %v148_v12, 1 }
  0x28   :  { %v10391_v30 = vmul.f32 0.015625, %v129_v25 }
  0x29   :  { %301 = vperm.xlu1 %9942, %v291_v55   ;;  %296 = vperm.xlu0 %9941, %v290_v56   ;;  %v150_v26 = vadd.f32 %v149_v18, %v148_v12 }
  0x2a   :  { %v154_v32 = vsub.f32 %v10228_v7, %v10391_v30  ;;  %v155_v34 = vsub.f32 %v10233_v8, %v10391_v30  ;;  %v156_v38 = vsub.f32 %v10238_v9, %v10391_v30  ;;  %v157_v7 = vsub.f32 %v10246_v11, %v10391_v30 }
  0x2b   :  { %v10393_v31 = vmul.f32 0.015625, %v150_v26  ;;  %v159_v56 = vsub.f32 %v10289_v24, %v10391_v30 }
  0x2c   :  { %v170_v40 = vmul.f32 %v154_v32, %v154_v32  ;;  %v171_v41 = vmul.f32 %v155_v34, %v155_v34  ;;  %v172_v8 = vmul.f32 %v156_v38, %v156_v38  ;;  %v173_v51 = vmul.f32 %v157_v7, %v157_v7 }
  0x2d   :  { %311 = vperm.xlu1 %9942, %v293_v62   ;;  %306 = vperm.xlu0 %9941, %v292_v63   ;;  %v162_v35 = vsub.f32 %v10265_v17, %v10393_v31  ;;  %v163_v37 = vsub.f32 %v10270_v19, %v10393_v31  ;;  %v164_v43 = vsub.f32 %v10275_v20, %v10393_v31 }
  0x2e   :  { %v186_v46 = vsel %vm108_vm0, %v170_v40, 0.0  ;;  %v187_v17 = vsel %vm108_vm0, %v171_v41, 0.0  ;;  %v165_v19 = vsub.f32 %v10280_v21, %v10393_v31  ;;  %v158_v20 = vsub.f32 %v10260_v16, %v10391_v30 }
  0x2f   :  { %v178_v44 = vmul.f32 %v162_v35, %v162_v35  ;;  %v179_v45 = vmul.f32 %v163_v37, %v163_v37  ;;  %v180_v47 = vmul.f32 %v164_v43, %v164_v43  ;;  %v188_v50 = vadd.f32 %v187_v17, %v186_v46 }
  0x30   :  { %v189_v11 = vsel %vm108_vm0, %v172_v8, 0.0  ;;  %v166_v53 = vsub.f32 %v10298_v28, %v10393_v31  ;;  %v181_v54 = vmul.f32 %v165_v19, %v165_v19  ;;  %v174_v57 = vmul.f32 %v158_v20, %v158_v20  ;;  %v10451_v8 = vld [vmem:[%s13254_s0] sm:$0x3] }
  0x31   :  { %2200 = vperm.xlu1 %9942, %v9611_v4   ;;  %2195 = vperm.xlu0 %9941, %v9610_v5   ;;  %v207_v9 = vsel %vm108_vm0, %v178_v44, 0.0  ;;  %v208_v48 = vsel %vm108_vm0, %v179_v45, 0.0  ;;  %v210_v55 = vsel %vm108_vm0, %v180_v47, 0.0  ;;  %v190_v21 = vadd.f32 %v189_v11, %v188_v50 }
  0x32   :  { %v209_v52 = vadd.f32 %v208_v48, %v207_v9  ;;  %v191_v58 = vsel %vm108_vm0, %v173_v51, 0.0  ;;  %v167_v16 = vsub.f32 %v10318_v36, %v10393_v31  ;;  %v182_v60 = vmul.f32 %v166_v53, %v166_v53  ;;  %v9575_v53 = vld [vmem:[%s13255_s2 + $0x68] sm:$0xff] }
  0x33   :  { %v212_v61 = vsel %vm108_vm0, %v181_v54, 0.0  ;;  %v192_v62 = vadd.f32 %v191_v58, %v190_v21  ;;  %v160_v28 = vsub.f32 %v10311_v33, %v10391_v30  ;;  %v175_v63 = vmul.f32 %v159_v56, %v159_v56  ;;  %v9570_v54 = vld [vmem:[%s13255_s2 + $0x40] sm:$0xff]  ;;  %v9572_v56 = vld [vmem:[%s13255_s2 + $0x50] sm:$0xff] }
  0x34   :  { %v211_v59 = vadd.f32 %v210_v55, %v209_v52  ;;  %v193_v0 = vsel %vm108_vm0, %v174_v57, 0.0  ;;  %v168_v24 = vsub.f32 %v10332_v42, %v10393_v31  ;;  %v183_v2 = vmul.f32 %v167_v16, %v167_v16  ;;  %v9571_v52 = vld [vmem:[%s13255_s2 + $0x48] sm:$0xff]  ;;  %v9573_v57 = vld [vmem:[%s13255_s2 + $0x58] sm:$0x7f] }
  0x35   :  { %2210 = vperm.xlu1 %9942, %v9613_v13   ;;  %2205 = vperm.xlu0 %9941, %v9612_v14   ;;  %v214_v3 = vsel %vm108_vm0, %v182_v60, 0.0  ;;  %v194_v4 = vadd.f32 %v193_v0, %v192_v62  ;;  %v161_v36 = vsub.f32 %v10325_v39, %v10391_v30  ;;  %v176_v5 = vmul.f32 %v160_v28, %v160_v28  ;;  %v9576_v60 = vld [vmem:[%s13255_s2 + $0x70] sm:$0xff]  ;;  %v235_v28 = vld [vmem:[%s13255_s2 + $0x8] sm:$0xff] }
  0x36   :  { %v213_v1 = vadd.f32 %v212_v61, %v211_v59  ;;  %v195_v6 = vsel %vm108_vm0, %v175_v63, 0.0  ;;  %v169_v33 = vsub.f32 %v10347_v49, %v10393_v31  ;;  %v184_v12 = vmul.f32 %v168_v24, %v168_v24  ;;  %v234_v63 = vld [vmem:[%s13255_s2] sm:$0xff]  ;;  %v237_v24 = vld [vmem:[%s13255_s2 + $0x18] sm:$0x7f] }
  0x37   :  { %v216_v13 = vsel %vm108_vm0, %v183_v2, 0.0  ;;  %v196_v14 = vadd.f32 %v195_v6, %v194_v4  ;;  %v177_v15 = vmul.f32 %v161_v36, %v161_v36  ;;  %v197_v42 = vsel %vm108_vm0, %v176_v5, 0.0  ;;  %v236_v2 = vld [vmem:[%s13255_s2 + $0x10] sm:$0xff]  ;;  %v9577_v36 = vld [vmem:[%s13255_s2 + $0x78] sm:$0x7f] }
  0x38   :  { %v215_v10 = vadd.f32 %v214_v3, %v213_v1  ;;  %v10057_v20 = vmov 1966171168   ;;  %v13210_v11 = vlaneseq  ;;  %v1126_v58 = vsub.f32 %v9571_v52, %v10391_v30  ;;  %v9574_v1 = vld [vmem:[%s13255_s2 + $0x60] sm:$0xff]  ;;  %v9607_v52 = vld [vmem:[%s13255_s2 + $0xa8] sm:$0xff] }
  0x39   :  { %2233 = vperm.xlu1 %9942, %v9615_v22   ;;  %2228 = vperm.xlu0 %9941, %v9614_v23   ;;  %v185_v22 = vmul.f32 %v169_v33, %v169_v33  ;;  %v218_v23 = vsel %vm108_vm0, %v184_v12, 0.0  ;;  %v198_v25 = vadd.f32 %v197_v42, %v196_v14  ;;  %v199_v39 = vsel %vm108_vm0, %v177_v15, 0.0  ;;  %v238_v33 = vld [vmem:[%s13255_s2 + $0x20] sm:$0xff]  ;;  %v241_v42 = vld [vmem:[%s13255_s2 + $0x38] sm:$0x7f] }
  0x3a   :  { %v217_v18 = vadd.f32 %v216_v13, %v215_v10  ;;  %v332_v51 = vunpack.c.l.s4 %v10057_v20  ;;  %v10465_v21 = vshrl.u32 %v13210_v11, 7  ;;  %v1130_v59 = vsub.f32 %v9575_v53, %v10393_v31  ;;  %v239_v10 = vld [vmem:[%s13255_s2 + $0x28] sm:$0xff] }
  0x3b   :  { %v220_v49 = vsel %vm108_vm0, %v185_v22, 0.0  ;;  %v200_v32 = vadd.f32 %v199_v39, %v198_v25  ;;  %v1125_v62 = vsub.f32 %v9570_v54, %v10391_v30  ;;  %v1127_v4 = vsub.f32 %v9572_v56, %v10391_v30  ;;  %v9602_v54 = vld [vmem:[%s13255_s2 + $0x80] sm:$0xff] }
  0x3c   :  { %v219_v26 = vadd.f32 %v218_v23, %v217_v18  ;;  %v333_v55 = vunpack.c.0.s8 %v332_v51  ;;  %13256 = vst [vmem:[#allocation3_spill] sm:$0xff] %v10465_v21  ;;  %v1128_v5 = vsub.f32 %v9573_v57, %v10391_v30  ;;  %v243_v14 = vsub.f32 %v235_v28, %v10391_v30  ;;  %v240_v18 = vld [vmem:[%s13255_s2 + $0x30] sm:$0xff] }
  0x3d   :  { %2243 = vperm.xlu1 %9942, %v9617_v27   ;;  %2238 = vperm.xlu0 %9941, %v9616_v29   ;;  %v9593_v27 = vld [vmem:[%s13254_s0 + $0x2] sm:$0x3]  ;;  %v201_v35 = vrot.slane %v200_v32, 4  ;;  %v242_v15 = vsub.f32 %v234_v63, %v10391_v30  ;;  %v1131_v22 = vsub.f32 %v9576_v60, %v10393_v31  ;;  %v9605_v60 = vld [vmem:[%s13255_s2 + $0x98] sm:$0x7f] }
  0x3e   :  { %9932 = vmatprep.subr.msk.bf16.mxu0 %vm2014_vm1, %v9593_v27  ;;  %v2016_v29 = vsel %vm2014_vm1, %v9593_v27, 0  ;;  %v221_v34 = vadd.f32 %v220_v49, %v219_v26  ;;  %v10508_v6 = vsub.s32 %v333_v55, %v10465_v21  ;;  %v245_v26 = vsub.f32 %v237_v24, %v10391_v30  ;;  %v9606_v55 = vld [vmem:[%s13255_s2 + $0xa0] sm:$0xff] }
  0x3f   :  { %9781 = vmatpush3.bf16.msra.mxu0 %v2016_v29  ;;  %v202_v38 = vadd.f32 %v201_v35, %v200_v32  ;;  %v244_v27 = vsub.f32 %v236_v2, %v10391_v30  ;;  %v1129_v49 = vsub.f32 %v9574_v1, %v10393_v31  ;;  %v1132_v29 = vsub.f32 %v9577_v36, %v10393_v31  ;;  %v9604_v2 = vld [vmem:[%s13255_s2 + $0x90] sm:$0xff] }
  0x40   :  { %v222_v37 = vrot.slane %v221_v34, 4  ;;  %9933 = vmatprep.subr.msk.bf16.mxu0 %vm2014_vm1, %v10451_v8  ;;  %13257 = vst [vmem:[#allocation4_spill] sm:$0xff] %v10508_v6  ;;  %v247_v32 = vsub.f32 %v239_v10, %v10393_v31  ;;  %v2172_v10 = vsub.f32 %v9602_v54, %v10391_v30 }
  0x41   :  { %v203_v41 = vrot.slane %v202_v38, 2 }
  0x42   :  { %v223_v40 = vadd.f32 %v222_v37, %v221_v34  ;;  %v246_v34 = vsub.f32 %v238_v33, %v10393_v31  ;;  %v2176_v33 = vsub.f32 %v9606_v55, %v10393_v31 }
  0x43   :  { %v204_v44 = vadd.f32 %v203_v41, %v202_v38  ;;  %v249_v38 = vsub.f32 %v241_v42, %v10393_v31  ;;  %v9603_v41 = vld [vmem:[%s13255_s2 + $0x88] sm:$0xff] }
  0x44   :  { %v224_v43 = vrot.slane %v223_v40, 2  ;;  %v2173_v53 = vsub.f32 %v9603_v41, %v10391_v30 }
  0x45   :  { %v205_v7 = vrot.slane %v204_v44, 1 }
  0x46   :  { %v225_v45 = vadd.f32 %v224_v43, %v223_v40  ;;  %v248_v40 = vsub.f32 %v240_v18, %v10393_v31 }
  0x47   :  { %v206_v17 = vadd.f32 %v205_v7, %v204_v44 }
  0x48   :  { %v226_v46 = vrot.slane %v225_v45, 1 }
  0x49   :  { %v228_v47 = vmul.f32 0.015625, %v206_v17 }
  0x4a   :  { %v227_v19 = vadd.f32 %v226_v46, %v225_v45 }
  0x4b   :  { %v230_v48 = vadd.f32 1e-05, %v228_v47 }
  0x4c   :  { %v229_v9 = vmul.f32 0.015625, %v227_v19 }
  0x4d   :  { %9968 = vrsqrt.f32 %v230_v48 }
  0x4e   :  { %v231_v50 = vadd.f32 1e-05, %v229_v9 }
  0x50   :  { %9970 = vrsqrt.f32 %v231_v50 }
  0x57   :  { %v10489_v0 = vpop.eup %9968 }
  0x58   :  { %v1134_v12 = vmul.f32 %v10489_v0, %v1126_v58  ;;  %v1133_v23 = vmul.f32 %v10489_v0, %v1125_v62  ;;  %v10537_v35 = vmul.f32 %v10489_v0, %v1127_v4  ;;  %v10540_v37 = vmul.f32 %v10489_v0, %v1128_v5  ;;  %v9609_v62 = vld [vmem:[%s13255_s2 + $0xb8] sm:$0x7f]  ;;  %v9608_v4 = vld [vmem:[%s13255_s2 + $0xb0] sm:$0xff] }
  0x59   :  { %v10548_v45 = vmul.f32 %v10489_v0, %v243_v14  ;;  %v10551_v7 = vmul.f32 %v10489_v0, %v242_v15  ;;  %v10556_v9 = vmul.f32 %v10489_v0, %v245_v26  ;;  %v10559_v48 = vmul.f32 %v10489_v0, %v244_v27 }
  0x5a   :  { %v10500_v3 = vpop.eup %9970  ;;  %v2177_v5 = vsub.f32 %v9607_v52, %v10393_v31  ;;  %v2175_v14 = vsub.f32 %v9605_v60, %v10391_v30  ;;  %v2179_v15 = vsub.f32 %v9609_v62, %v10393_v31 }
  0x5b   :  { %v1138_v13 = vmul.f32 %v10500_v3, %v1130_v59  ;;  %v1139_v46 = vmul.f32 %v10500_v3, %v1131_v22  ;;  %v1137_v50 = vmul.f32 %v10500_v3, %v1129_v49  ;;  %v1140_v56 = vmul.f32 %v10500_v3, %v1132_v29 }
  0x5c   :  { %v10574_v58 = vmul.f32 %v10500_v3, %v247_v32  ;;  %v10577_v59 = vmul.f32 %v10500_v3, %v246_v34  ;;  %v10594_v36 = vmul.f32 %v10500_v3, %v249_v38  ;;  %v2174_v22 = vsub.f32 %v9604_v2, %v10391_v30 }
  0x5d   :  { %v10613_v29 = vmul.f32 %v10500_v3, %v2177_v5  ;;  %v10616_v32 = vmul.f32 %v10489_v0, %v2172_v10  ;;  %v10619_v34 = vmul.f32 %v10500_v3, %v2176_v33  ;;  %v10629_v38 = vmul.f32 %v10489_v0, %v2175_v14 }
  0x5f   :  { %13258 = vst [vmem:[#allocation5_spill] sm:$0xff] %v10619_v34  ;;  %13260 = vst [vmem:[#allocation7_spill] sm:$0xff] %v10629_v38 }
  0x90   :  { %v10475_v16 = vpop.permute.xlu1 %1158  ;;  %v10480_v61 = vpop.permute.xlu0 %1148 }
  0x91   :  { %v1166_v17 = vmul.f32 %v10480_v61, %v1133_v23  ;;  %v1170_v42 = vmul.f32 %v10480_v61, %v1137_v50  ;;  %v2178_v23 = vsub.f32 %v9608_v4, %v10393_v31  ;;  %v10623_v61 = vsel %vm2014_vm1, %v10451_v8, 0 }
  0x92   :  { %13259 = vst [vmem:[#allocation6_spill] sm:$0xff] %v10623_v61 }
  0x94   :  { %v10528_v25 = vpop.permute.xlu1 %1163  ;;  %v1154_v39 = vpop.permute.xlu0 %1153 }
  0x95   :  { %v1167_v43 = vmul.f32 %v1154_v39, %v1134_v12  ;;  %v1171_v44 = vmul.f32 %v1154_v39, %v1138_v13  ;;  %v10600_v12 = vmul.f32 %v10500_v3, %v248_v40  ;;  %v10603_v13 = vmul.f32 %v10489_v0, %v2173_v53 }
  0x96   :  { %v10632_v40 = vmul.f32 %v10500_v3, %v2179_v15 }
  0x98   :  { %v1187_v19 = vpop.permute.xlu1 %1186  ;;  %v1182_v47 = vpop.permute.xlu0 %1181  ;;  %13261 = vst [vmem:[#allocation8_spill] sm:$0xff] %v10632_v40 }
  0x99   :  { %v1200_v20 = vadd.f32 %v1187_v19, %v1167_v43  ;;  %v1204_v51 = vadd.f32 %v1187_v19, %v1171_v44  ;;  %v1199_v57 = vadd.f32 %v1182_v47, %v1166_v17  ;;  %v1203_v31 = vadd.f32 %v1182_v47, %v1170_v42 }
  0x9a   :  { %v10636_v44 = vmul.f32 %v10489_v0, %v2174_v22  ;;  %v10639_v17 = vmul.f32 %v10500_v3, %v2178_v23  ;;  %v1169_v0 = vmul.f32 %v10528_v25, %v10540_v37 }
  0x9b   :  { %v1264_v28 = vcombine.high %v1200_v20, %v1200_v20  ;;  %v1271_v63 = vrot.slane %v1200_v20, %v10508_v6  ;;  %v1459_v1 = vcombine.high %v1204_v51, %v1204_v51  ;;  %v1466_v24 = vrot.slane %v1204_v51, %v10508_v6 }
  0x9c   :  { %v1215_v49 = vcombine.high %v1199_v57, %v1199_v57  ;;  %v1222_v43 = vrot.slane %v1199_v57, %v10508_v6  ;;  %13262 = vst [vmem:[#allocation9_spill] sm:$0xff] %v10636_v44  ;;  %13263 = vst [vmem:[#allocation10_spill] sm:$0xff] %v10639_v17  ;;  %v1168_v20 = vmul.f32 %v10475_v16, %v10537_v35  ;;  %v1197_v57 = vpop.permute.xlu1 %1196  ;;  %v1192_v33 = vpop.permute.xlu0 %1191 }
  0x9d   :  { %v1278_v18 = vrot.slane %v1264_v28, %v10508_v6  ;;  %v1279_v39 = vcombine.high %v1271_v63, %v1271_v63  ;;  %v1473_v26 = vrot.slane %v1459_v1, %v10508_v6  ;;  %v1474_v27 = vcombine.high %v1466_v24, %v1466_v24 }
  0x9e   :  { %v10626_v30 = vrot.slane %v1466_v24, %v10508_v6  ;;  %v1229_v50 = vrot.slane %v1215_v49, %v10508_v6  ;;  %v10649_v51 = vmul.f32 %v10475_v16, %v1139_v46  ;;  %v10655_v52 = vrot.slane %v1271_v63, %v10508_v6 }
  0x9f   :  { %v1280_v41 = vcombine.high %v1278_v18, %v1278_v18  ;;  %v10642_v8 = vrot.slane %v1279_v39, %v10508_v6  ;;  %v1475_v19 = vcombine.high %v1473_v26, %v1473_v26  ;;  %v1496_v47 = vrot.slane %v1474_v27, %v10508_v6 }
  0xa0   :  { %v1489_v3 = vrot.slane %v1473_v26, %v10508_v6  ;;  %v1504_v53 = vcombine.high %v10626_v30, %v10626_v30  ;;  %v1410_v54 = vcombine.high %v1203_v31, %v1203_v31  ;;  %v1417_v55 = vrot.slane %v1203_v31, %v10508_v6  ;;  %v10732_v21 = vpop.permute.xlu0 %264 }
  0xa1   :  { %v1173_v35 = vmul.f32 %v10528_v25, %v1140_v56  ;;  %v10662_v16 = vrot.slane %v1278_v18, %v10508_v6  ;;  %v10665_v46 = vrot.slane %v1280_v41, %v10508_v6  ;;  %v1230_v37 = vcombine.high %v1222_v43, %v1222_v43 }
  0xa2   :  { %v10668_v60 = vrot.slane %v1475_v19, %v10508_v6  ;;  %v1506_v62 = vcombine.high %v1496_v47, %v1496_v47  ;;  %v1231_v63 = vcombine.high %v1229_v50, %v1229_v50  ;;  %v1505_v1 = vcombine.high %v1489_v3, %v1489_v3 }
  0xa3   :  { %v1202_v25 = vadd.f32 %v1197_v57, %v1169_v0  ;;  %v1206_v56 = vadd.f32 %v1197_v57, %v1173_v35  ;;  %v10674_v2 = vcombine.low %v1496_v47, %v1504_v53  ;;  %v10677_v4 = vrot.slane %v1222_v43, %v10508_v6 }
  0xa4   :  { %v1424_v5 = vrot.slane %v1410_v54, %v10508_v6  ;;  %v1425_v10 = vcombine.high %v1417_v55, %v1417_v55  ;;  %v10685_v23 = vcombine.low %v1506_v62, %v1489_v3  ;;  %v10688_v39 = vrot.slane %v1230_v37, %v10508_v6 }
  0xa5   :  { %v1362_v15 = vcombine.high %v1202_v25, %v1202_v25  ;;  %v1369_v42 = vrot.slane %v1202_v25, %v10508_v6  ;;  %v1557_v18 = vcombine.high %v1206_v56, %v1206_v56  ;;  %v1564_v26 = vrot.slane %v1206_v56, %v10508_v6 }
  0xa6   :  { %v10692_v27 = vrot.slane %v1229_v50, %v10508_v6  ;;  %v1433_v49 = vrot.slane %v1417_v55, %v10508_v6  ;;  %v1201_v41 = vadd.f32 %v1192_v33, %v1168_v20  ;;  %v10697_v43 = vrot.slane %v1231_v63, %v10508_v6 }
  0xa7   :  { %v1376_v31 = vrot.slane %v1362_v15, %v10508_v6  ;;  %v1426_v19 = vcombine.high %v1424_v5, %v1424_v5  ;;  %v1447_v47 = vrot.slane %v1425_v10, %v10508_v6  ;;  %v1377_v0 = vcombine.high %v1369_v42, %v1369_v42  ;;  %v270_v15 = vpop.permute.xlu1 %269 }
  0xa8   :  { %v10701_v3 = vcombine.low %v10668_v60, %v1505_v1  ;;  %v1440_v50 = vrot.slane %v1424_v5, %v10508_v6  ;;  %v1571_v54 = vrot.slane %v1557_v18, %v10508_v6  ;;  %v1572_v35 = vcombine.high %v1564_v26, %v1564_v26 }
  0xa9   :  { %v1378_v57 = vcombine.high %v1376_v31, %v1376_v31  ;;  %v1455_v37 = vcombine.high %v1433_v49, %v1433_v49  ;;  %v1392_v63 = vrot.slane %v1376_v31, %v10508_v6  ;;  %v1313_v1 = vcombine.high %v1201_v41, %v1201_v41 }
  0xaa   :  { %v1454_v25 = vrot.slane %v1426_v19, %v10508_v6  ;;  %v1457_v56 = vcombine.high %v1447_v47, %v1447_v47  ;;  %v1399_v10 = vrot.slane %v1377_v0, %v10508_v6  ;;  %v1456_v18 = vcombine.high %v1440_v50, %v1440_v50 }
  0xab   :  { %v1573_v11 = vcombine.high %v1571_v54, %v1571_v54  ;;  %v10719_v53 = vrot.slane %v1564_v26, %v10508_v6  ;;  %v1320_v20 = vrot.slane %v1201_v41, %v10508_v6  ;;  %v1385_v22 = vrot.slane %v1369_v42, %v10508_v6 }
  0xac   :  { %v1406_v31 = vrot.slane %v1378_v57, %v10508_v6  ;;  %v1587_v19 = vrot.slane %v1571_v54, %v10508_v6  ;;  %v1594_v14 = vrot.slane %v1572_v35, %v10508_v6  ;;  %v10726_v24 = vcombine.low %v1447_v47, %v1455_v37 }
  0xad   :  { %v1408_v28 = vcombine.high %v1392_v63, %v1392_v63  ;;  %v1205_v0 = vadd.f32 %v1192_v33, %v10649_v51  ;;  %v1327_v5 = vrot.slane %v1313_v1, %v10508_v6  ;;  %v1458_v62 = vcombine.high %v1454_v25, %v1454_v25  ;;  %v10739_v1 = vpop.permute.xlu1 %279 }
  0xae   :  { %v10730_v26 = vcombine.low %v1457_v56, %v1440_v50  ;;  %v1752_v55 = vcombine.low %v1385_v22, %v1399_v10  ;;  %v9592_v41 = vcombine.high %v1385_v22, %v1399_v10  ;;  %v10734_v42 = vcombine.low %v1454_v25, %v1456_v18  ;;  %v10772_v10 = vpop.permute.xlu0 %274 }
  0xaf   :  { %v1601_v54 = vrot.slane %v1573_v11, %v10508_v6  ;;  %v1602_v47 = vcombine.high %v10719_v53, %v10719_v53  ;;  %v1328_v57 = vcombine.high %v1320_v20, %v1320_v20  ;;  %v1603_v35 = vcombine.high %v1587_v19, %v1587_v19 }
  0xb0   :  { %v1604_v37 = vcombine.high %v1594_v14, %v1594_v14  ;;  %v1754_v51 = vcombine.low %v1392_v63, %v1406_v31  ;;  %v1329_v33 = vcombine.high %v1327_v5, %v1327_v5  ;;  %v10743_v22 = vcombine.low %v1408_v28, %v1433_v49 }
  0xb1   :  { %v1508_v56 = vcombine.high %v1205_v0, %v1205_v0  ;;  %v1515_v25 = vrot.slane %v1205_v0, %v10508_v6  ;;  %v10747_v11 = vcombine.low %v1458_v62, %v10626_v30  ;;  %v10752_v18 = vrot.slane %v1752_v55, %v10508_v6 }
  0xb2   :  { %v10755_v63 = vrot.slane %v9592_v41, %v10508_v6  ;;  %v10761_v49 = vcombine.low %v1594_v14, %v1602_v47  ;;  %v1350_v30 = vrot.slane %v1328_v57, %v10508_v6  ;;  %v10765_v62 = vrot.slane %v1754_v51, %v10508_v6 }
  0xb3   :  { %v10767_v0 = vcombine.low %v1604_v37, %v1587_v19  ;;  %v10769_v55 = vcombine.low %v1601_v54, %v1603_v35  ;;  %v1357_v41 = vrot.slane %v1329_v33, %v10508_v6  ;;  %v1336_v28 = vrot.slane %v1320_v20, %v10508_v6  ;;  %v302_v37 = vpop.permute.xlu1 %301 }
  0xb4   :  { %13264 = vst [vmem:[#allocation11_spill] sm:$0xff] %v10761_v49  ;;  %v1522_v14 = vrot.slane %v1508_v56, %v10508_v6  ;;  %v1523_v47 = vcombine.high %v1515_v25, %v1515_v25  ;;  %v1343_v19 = vrot.slane %v1327_v5, %v10508_v6  ;;  %v1507_v54 = vcombine.high %v10668_v60, %v10668_v60 }
  0xb5   :  { %13265 = vst [vmem:[#allocation12_spill] sm:$0xff] %v10767_v0  ;;  %13266 = vst [vmem:[#allocation13_spill] sm:$0xff] %v10769_v55  ;;  %v1531_v35 = vrot.slane %v1515_v25, %v10508_v6  ;;  %v1703_v33 = vcombine.low %v1336_v28, %v1350_v30  ;;  %v9590_v31 = vcombine.high %v1336_v28, %v1350_v30 }
  0xb6   :  { %v283_v20 = vmul.f32 %v270_v15, %v10548_v45  ;;  %v1705_v50 = vcombine.low %v1343_v19, %v1357_v41  ;;  %v287_v57 = vmul.f32 %v270_v15, %v10574_v58  ;;  %v282_v5 = vmul.f32 %v10732_v21, %v10551_v7  ;;  %v297_v45 = vpop.permute.xlu0 %296 }
  0xb7   :  { %v1524_v60 = vcombine.high %v1522_v14, %v1522_v14  ;;  %v1545_v25 = vrot.slane %v1523_v47, %v10508_v6  ;;  %v9591_v55 = vcombine.high %v1343_v19, %v1357_v41  ;;  %v1538_v51 = vrot.slane %v1522_v14, %v10508_v6 }
  0xb8   :  { %v315_v17 = vadd.f32 %v302_v37, %v283_v20  ;;  %v1553_v49 = vcombine.high %v1531_v35, %v1531_v35  ;;  %v1853_v28 = vcombine.low %v1507_v54, %v1531_v35  ;;  %v319_v30 = vadd.f32 %v302_v37, %v287_v57 }
  0xb9   :  { %v10795_v44 = vrot.slane %v1703_v33, %v10508_v6  ;;  %v10798_v56 = vrot.slane %v9590_v31, %v10508_v6  ;;  %v10802_v15 = vrot.slane %v1705_v50, %v10508_v6  ;;  %v1874_v41 = vrot.slane %v10701_v3, %v10508_v6 }
  0xba   :  { %v379_v58 = vcombine.high %v315_v17, %v315_v17  ;;  %v386_v7 = vrot.slane %v315_v17, %v10508_v6  ;;  %v574_v14 = vcombine.high %v319_v30, %v319_v30  ;;  %v581_v47 = vrot.slane %v319_v30, %v10508_v6 }
  0xbb   :  { %v1552_v57 = vrot.slane %v1524_v60, %v10508_v6  ;;  %v1555_v19 = vcombine.high %v1545_v25, %v1545_v25  ;;  %v314_v35 = vadd.f32 %v297_v45, %v282_v5  ;;  %v1554_v31 = vcombine.high %v1538_v51, %v1538_v51 }
  0xbc   :  { %v393_v54 = vrot.slane %v379_v58, %v10508_v6  ;;  %v1881_v37 = vrot.slane %v1853_v28, %v10508_v6  ;;  %v10810_v33 = vcombine.low %v1545_v25, %v1553_v49  ;;  %v394_v17 = vcombine.high %v386_v7, %v386_v7  ;;  %v312_v25 = vpop.permute.xlu1 %311 }
  0xbd   :  { %v10813_v50 = vrot.slane %v9591_v55, %v10508_v6  ;;  %v588_v20 = vrot.slane %v574_v14, %v10508_v6  ;;  %v589_v30 = vcombine.high %v581_v47, %v581_v47  ;;  %v286_v60 = vmul.f32 %v10732_v21, %v10577_v59 }
  0xbe   :  { %13267 = vst [vmem:[#allocation14_spill] sm:$0xff] %v10810_v33  ;;  %v285_v5 = vmul.f32 %v10739_v1, %v10556_v9  ;;  %v395_v58 = vcombine.high %v393_v54, %v393_v54  ;;  %v10823_v49 = vrot.slane %v581_v47, %v10508_v6  ;;  %v1556_v28 = vcombine.high %v1552_v57, %v1552_v57 }
  0xbf   :  { %v10825_v55 = vcombine.low %v1555_v19, %v1538_v51  ;;  %v289_v3 = vmul.f32 %v10739_v1, %v10594_v36  ;;  %v330_v0 = vcombine.high %v314_v35, %v314_v35  ;;  %v10829_v14 = vcombine.low %v1874_v41, %v1881_v37 }
  0xc0   :  { %v10831_v40 = vcombine.low %v1552_v57, %v1554_v31  ;;  %v416_v9 = vrot.slane %v394_v17, %v10508_v6  ;;  %v590_v59 = vcombine.high %v588_v20, %v588_v20  ;;  %v611_v47 = vrot.slane %v589_v30, %v10508_v6 }
  0xc1   :  { %13268 = vst [vmem:[#allocation15_spill] sm:$0xff] %v10825_v55  ;;  %v337_v38 = vrot.slane %v314_v35, %v10508_v6  ;;  %v317_v51 = vadd.f32 %v312_v25, %v285_v5  ;;  %v402_v19 = vrot.slane %v386_v7, %v10508_v6  ;;  %v423_v36 = vrot.slane %v395_v58, %v10508_v6 }
  0xc2   :  { %13269 = vst [vmem:[#allocation16_spill] sm:$0xff] %v10831_v40  ;;  %v604_v1 = vrot.slane %v588_v20, %v10508_v6  ;;  %v619_v41 = vcombine.high %v10823_v49, %v10823_v49  ;;  %v10845_v57 = vmul.f32 %v10772_v10, %v10559_v48  ;;  %v10849_v31 = vmul.f32 %v10772_v10, %v10600_v12 }
  0xc3   :  { %v318_v37 = vadd.f32 %v297_v45, %v286_v60  ;;  %v344_v35 = vrot.slane %v330_v0, %v10508_v6  ;;  %v10853_v7 = vcombine.low %v1556_v28, %v10719_v53  ;;  %v409_v17 = vrot.slane %v393_v54, %v10508_v6 }
  0xc4   :  { %v769_v20 = vcombine.low %v402_v19, %v416_v9  ;;  %v9565_v30 = vcombine.high %v402_v19, %v416_v9  ;;  %v10857_v5 = vrot.slane %v590_v59, %v10508_v6  ;;  %v621_v58 = vcombine.high %v611_v47, %v611_v47 }
  0xc5   :  { %13270 = vst [vmem:[#allocation17_spill] sm:$0xff] %v10853_v7  ;;  %v345_v48 = vcombine.high %v337_v38, %v337_v38  ;;  %v477_v21 = vcombine.high %v317_v51, %v317_v51  ;;  %v620_v33 = vcombine.high %v604_v1, %v604_v1  ;;  %v771_v34 = vcombine.low %v409_v17, %v423_v36 }
  0xc6   :  { %v10859_v12 = vcombine.low %v611_v47, %v619_v41  ;;  %v484_v10 = vrot.slane %v317_v51, %v10508_v6  ;;  %v346_v0 = vcombine.high %v344_v35, %v344_v35  ;;  %v525_v45 = vcombine.high %v318_v37, %v318_v37 }
  0xc7   :  { %v532_v54 = vrot.slane %v318_v37, %v10508_v6  ;;  %v9566_v60 = vcombine.high %v409_v17, %v423_v36  ;;  %v10866_v28 = vrot.slane %v769_v20, %v10508_v6  ;;  %v10869_v9 = vrot.slane %v9565_v30, %v10508_v6 }
  0xc8   :  { %13271 = vst [vmem:[#allocation18_spill] sm:$0xff] %v10859_v12  ;;  %v491_v59 = vrot.slane %v477_v21, %v10508_v6  ;;  %v10874_v51 = vcombine.low %v621_v58, %v604_v1  ;;  %v367_v19 = vrot.slane %v345_v48, %v10508_v6  ;;  %v321_v41 = vadd.f32 %v312_v25, %v289_v3 }
  0xc9   :  { %13272 = vst [vmem:[#allocation19_spill] sm:$0xff] %v10866_v28  ;;  %13273 = vst [vmem:[#allocation20_spill] sm:$0xff] %v10869_v9  ;;  %v10878_v53 = vrot.slane %v771_v34, %v10508_v6  ;;  %v10881_v36 = vcombine.low %v10857_v5, %v620_v33  ;;  %v492_v17 = vcombine.high %v484_v10, %v484_v10 }
  0xca   :  { %13274 = vst [vmem:[#allocation21_spill] sm:$0xff] %v10874_v51  ;;  %v353_v21 = vrot.slane %v337_v38, %v10508_v6  ;;  %v10887_v20 = vrot.slane %v346_v0, %v10508_v6  ;;  %v539_v1 = vrot.slane %v525_v45, %v10508_v6  ;;  %v540_v30 = vcombine.high %v532_v54, %v532_v54  ;;  %v307_v0 = vpop.permute.xlu0 %306 }
  0xcb   :  { %13275 = vst [vmem:[#allocation22_spill] sm:$0xff] %v10878_v53  ;;  %13276 = vst [vmem:[#allocation23_spill] sm:$0xff] %v10881_v36  ;;  %v10891_v3 = vrot.slane %v9566_v60, %v10508_v6  ;;  %v493_v33 = vcombine.high %v491_v59, %v491_v59  ;;  %v507_v25 = vrot.slane %v491_v59, %v10508_v6 }
  0xcc   :  { %v360_v58 = vrot.slane %v344_v35, %v10508_v6  ;;  %v720_v48 = vcombine.low %v353_v21, %v367_v19  ;;  %v9563_v37 = vcombine.high %v353_v21, %v367_v19  ;;  %v672_v38 = vcombine.high %v321_v41, %v321_v41 }
  0xcd   :  { %13277 = vst [vmem:[#allocation24_spill] sm:$0xff] %v10891_v3  ;;  %v548_v45 = vrot.slane %v532_v54, %v10508_v6  ;;  %v514_v47 = vrot.slane %v492_v17, %v10508_v6  ;;  %v679_v60 = vrot.slane %v321_v41, %v10508_v6  ;;  %v541_v12 = vcombine.high %v539_v1, %v539_v1 }
  0xce   :  { %v555_v34 = vrot.slane %v539_v1, %v10508_v6  ;;  %v562_v9 = vrot.slane %v540_v30, %v10508_v6  ;;  %v722_v59 = vcombine.low %v360_v58, %v10887_v20  ;;  %v500_v35 = vrot.slane %v484_v10, %v10508_v6 }
  0xcf   :  { %v521_v19 = vrot.slane %v493_v33, %v10508_v6  ;;  %v523_v21 = vcombine.high %v507_v25, %v507_v25  ;;  %v687_v28 = vcombine.high %v679_v60, %v679_v60  ;;  %v9564_v54 = vcombine.high %v360_v58, %v10887_v20 }
  0xd0   :  { %v10909_v17 = vrot.slane %v720_v48, %v10508_v6  ;;  %v10912_v41 = vrot.slane %v9563_v37, %v10508_v6  ;;  %v686_v1 = vrot.slane %v672_v38, %v10508_v6  ;;  %v570_v30 = vcombine.high %v548_v45, %v548_v45 }
  0xd1   :  { %v10916_v51 = vrot.slane %v679_v60, %v10508_v6  ;;  %v867_v10 = vcombine.low %v500_v35, %v514_v47  ;;  %v9569_v53 = vcombine.high %v500_v35, %v514_v47  ;;  %v569_v33 = vrot.slane %v541_v12, %v10508_v6 }
  0xd2   :  { %v571_v3 = vcombine.high %v555_v34, %v555_v34  ;;  %v572_v40 = vcombine.high %v562_v9, %v562_v9  ;;  %v316_v20 = vadd.f32 %v307_v0, %v10845_v57  ;;  %v709_v58 = vrot.slane %v687_v28, %v10508_v6 }
  0xd3   :  { %v869_v48 = vcombine.low %v507_v25, %v521_v19  ;;  %v870_v55 = vcombine.low %v523_v21, %v548_v45  ;;  %v320_v37 = vadd.f32 %v307_v0, %v10849_v31  ;;  %v688_v7 = vcombine.high %v686_v1, %v686_v1 }
  0xd4   :  { %v702_v38 = vrot.slane %v686_v1, %v10508_v6  ;;  %v428_v36 = vcombine.high %v316_v20, %v316_v20  ;;  %v435_v60 = vrot.slane %v316_v20, %v10508_v6  ;;  %v717_v47 = vcombine.high %v10916_v51, %v10916_v51 }
  0xd5   :  { %v877_v12 = vrot.slane %v867_v10, %v10508_v6  ;;  %v884_v35 = vrot.slane %v9569_v53, %v10508_v6  ;;  %v623_v57 = vcombine.high %v320_v37, %v320_v37  ;;  %v573_v61 = vcombine.high %v569_v33, %v569_v33 }
  0xd6   :  { %v10928_v28 = vcombine.low %v562_v9, %v570_v30  ;;  %v10930_v25 = vcombine.low %v572_v40, %v555_v34  ;;  %v442_v31 = vrot.slane %v428_v36, %v10508_v6  ;;  %v10933_v0 = vcombine.low %v569_v33, %v571_v3 }
  0xd7   :  { %v719_v45 = vcombine.high %v709_v58, %v709_v58  ;;  %v891_v19 = vrot.slane %v869_v48, %v10508_v6  ;;  %v898_v21 = vrot.slane %v870_v55, %v10508_v6  ;;  %v716_v1 = vrot.slane %v688_v7, %v10508_v6 }
  0xd8   :  { %v718_v10 = vcombine.high %v702_v38, %v702_v38  ;;  %v443_v20 = vcombine.high %v435_v60, %v435_v60  ;;  %v630_v53 = vrot.slane %v320_v37, %v10508_v6  ;;  %v10940_v9 = vrot.slane %v722_v59, %v10508_v6  ;;  %v10997_v59 = vpop.permute.xlu0 %2195 }
  0xd9   :  { %v899_v40 = vcombine.low %v877_v12, %v884_v35  ;;  %v10942_v34 = vcombine.low %v709_v58, %v717_v47  ;;  %v637_v36 = vrot.slane %v623_v57, %v10508_v6  ;;  %v10946_v3 = vrot.slane %v9564_v54, %v10508_v6  ;;  %v2201_v35 = vpop.permute.xlu1 %2200 }
  0xda   :  { %v444_v30 = vcombine.high %v442_v31, %v442_v31  ;;  %v10953_v33 = vcombine.low %v573_v61, %v10823_v49  ;;  %v10957_v58 = vcombine.low %v891_v19, %v898_v21  ;;  %v10959_v48 = vcombine.low %v719_v45, %v702_v38 }
  0xdb   :  { %v10963_v37 = vcombine.low %v716_v1, %v718_v10  ;;  %v465_v47 = vrot.slane %v443_v20, %v10508_v6  ;;  %v638_v12 = vcombine.high %v630_v53, %v630_v53  ;;  %v10967_v57 = vrot.slane %v899_v40, %v10508_v6 }
  0xdc   :  { %v639_v49 = vcombine.high %v637_v36, %v637_v36  ;;  %v10972_v19 = vrot.slane %v630_v53, %v10508_v6  ;;  %v451_v38 = vrot.slane %v435_v60, %v10508_v6  ;;  %v472_v45 = vrot.slane %v444_v30, %v10508_v6 }
  0xdd   :  { %v13278_v1 = vcombine.low %v10677_v4, %v10688_v39  ;;  %v458_v53 = vrot.slane %v442_v31, %v10508_v6  ;;  %v10988_v60 = vrot.slane %v637_v36, %v10508_v6  ;;  %v10991_v30 = vrot.slane %v638_v12, %v10508_v6  ;;  %v11020_v31 = vpop.permute.xlu1 %2210 }
  0xde   :  { %v818_v61 = vcombine.low %v451_v38, %v465_v47  ;;  %v9567_v54 = vcombine.high %v451_v38, %v465_v47  ;;  %v11000_v55 = vrot.slane %v639_v49, %v10508_v6  ;;  %v13280_v36 = vcombine.low %v10692_v27, %v10697_v43 }
  0xdf   :  { %v1615_v10 = vrot.slane %v13278_v1, %v10508_v6  ;;  %v13279_v1 = vcombine.high %v10677_v4, %v10688_v39  ;;  %v13281_v47 = vcombine.high %v10692_v27, %v10697_v43  ;;  %v820_v4 = vcombine.low %v458_v53, %v472_v45 }
  0xe0   :  { %v1629_v12 = vrot.slane %v13280_v36, %v10508_v6  ;;  %v13282_v49 = vcombine.low %v10655_v52, %v10642_v8  ;;  %v13283_v40 = vcombine.high %v10655_v52, %v10642_v8  ;;  %v669_v36 = vcombine.high %v10988_v60, %v10988_v60 }
  0xe1   :  { %v1622_v7 = vrot.slane %v13279_v1, %v10508_v6  ;;  %v1636_v38 = vrot.slane %v13281_v47, %v10508_v6  ;;  %v13284_v27 = vcombine.low %v10662_v16, %v10665_v46  ;;  %v9568_v47 = vcombine.high %v458_v53, %v472_v45 }
  0xe2   :  { %v1664_v1 = vrot.slane %v13282_v49, %v10508_v6  ;;  %v1671_v20 = vrot.slane %v13283_v40, %v10508_v6  ;;  %v11033_v8 = vrot.slane %v818_v61, %v10508_v6  ;;  %v11036_v52 = vrot.slane %v9567_v54, %v10508_v6 }
  0xe3   :  { %v1637_v39 = vcombine.low %v1615_v10, %v1622_v7  ;;  %v1638_v21 = vcombine.low %v1629_v12, %v1636_v38  ;;  %v1678_v43 = vrot.slane %v13284_v27, %v10508_v6  ;;  %v13285_v7 = vcombine.high %v10662_v16, %v10665_v46 }
  0xe4   :  { %v1686_v40 = vcombine.low %v1664_v1, %v1671_v20  ;;  %v670_v12 = vcombine.high %v10991_v30, %v10991_v30  ;;  %v671_v16 = vcombine.high %v11000_v55, %v11000_v55  ;;  %v842_v46 = vrot.slane %v820_v4, %v10508_v6  ;;  %v11051_v20 = vpop.permute.xlu0 %2205 }
  0xe5   :  { %v1685_v10 = vrot.slane %v13285_v7, %v10508_v6  ;;  %v1645_v38 = vrot.slane %v1637_v39, %v10508_v6  ;;  %v1652_v49 = vrot.slane %v1638_v21, %v10508_v6  ;;  %v1736_v61 = vcombine.low %v10802_v15, %v10813_v50  ;;  %v2234_v7 = vpop.permute.xlu1 %2233 }
  0xe6   :  { %v13286_v54 = vrot.slane %v10743_v22, %v10508_v6  ;;  %v1694_v39 = vrot.slane %v1686_v40, %v10508_v6  ;;  %v2214_v1 = vmul.f32 %v2201_v35, %v10603_v13  ;;  %v13287_v4 = vcombine.low %v10795_v44, %v10798_v56 }
  0xe7   :  { %v1687_v27 = vcombine.low %v1678_v43, %v1685_v10  ;;  %v1653_v53 = vcombine.low %v1645_v38, %v1652_v49  ;;  %v1750_v15 = vrot.slane %v1736_v61, %v10508_v6  ;;  %v13288_v22 = vcombine.low %v10752_v18, %v10755_v63 }
  0xe8   :  { %v1785_v45 = vcombine.low %v10765_v62, %v13286_v54  ;;  %v1743_v43 = vrot.slane %v13287_v4, %v10508_v6  ;;  %v2218_v40 = vmul.f32 %v2201_v35, %v10613_v29  ;;  %v1832_v13 = vrot.slane %v10747_v11, %v10508_v6 }
  0xe9   :  { %v1701_v21 = vrot.slane %v1687_v27, %v10508_v6  ;;  %v1792_v62 = vrot.slane %v13288_v22, %v10508_v6  ;;  %v13289_v44 = vrot.slane %v10730_v26, %v10508_v6  ;;  %v13290_v56 = vrot.slane %v10726_v24, %v10508_v6 }
  0xea   :  { %v1799_v50 = vrot.slane %v1785_v45, %v10508_v6  ;;  %v1751_v49 = vcombine.low %v1743_v43, %v1750_v15  ;;  %v13291_v18 = vrot.slane %v10685_v23, %v10508_v6  ;;  %v13292_v63 = vrot.slane %v10674_v2, %v10508_v6  ;;  %v2229_v2 = vpop.permute.xlu0 %2228 }
  0xeb   :  { %v1702_v10 = vcombine.low %v1694_v39, %v1701_v21  ;;  %v1833_v38 = vcombine.low %v13290_v56, %v13289_v44  ;;  %v1897_v29 = vrot.slane %v10829_v14, %v10508_v6  ;;  %v849_v11 = vrot.slane %v9568_v47, %v10508_v6 }
  0xec   :  { %v1800_v27 = vcombine.low %v1792_v62, %v1799_v50  ;;  %v1882_v61 = vcombine.low %v13292_v63, %v13291_v18  ;;  %v13293_v26 = vrot.slane %v10734_v42, %v10508_v6  ;;  %v2247_v54 = vadd.f32 %v2234_v7, %v2214_v1  ;;  %v11097_v42 = vld [vmem:[%s13254_s0 + $0x4] sm:$0x3]  ;;  %v13295_v50 = vld [vmem:[#allocation6_spill] sm:$0xff] }
  0xed   :  { %v1996_v35 = vpack.c.bf16 %v1702_v10, %v1653_v53  ;;  %v2213_v45 = vmul.f32 %v10997_v59, %v10616_v32  ;;  %v2251_v21 = vadd.f32 %v2234_v7, %v2218_v40  ;;  %v1841_v14 = vrot.slane %v1833_v38, %v10508_v6 }
  0xee   :  { %v1834_v24 = vcombine.low %v13293_v26, %v1832_v13  ;;  %v1997_v39 = vpack.c.bf16 %v1800_v27, %v1751_v49  ;;  %v1890_v23 = vrot.slane %v1882_v61, %v10508_v6  ;;  %v2311_v53 = vcombine.high %v2247_v54, %v2247_v54 }
  0xef   :  { %9782 = vmatprep.mubr.msk.bf16.mxu0 %vm108_vm0, %v1996_v35  ;;  %v2318_v4 = vrot.slane %v2247_v54, %v10508_v6  ;;  %v13294_v32 = vcombine.high %v10857_v5, %v10857_v5  ;;  %v2506_v15 = vcombine.high %v2251_v21, %v2251_v21  ;;  %v2513_v22 = vrot.slane %v2251_v21, %v10508_v6 }
  0xf0   :  { %v1848_v47 = vrot.slane %v1834_v24, %v10508_v6  ;;  %9783 = vmatmul.mubr.msk.bf16.vlgmr.msra.gmra.mrb[0].mxu0 %vm108_vm0, %v1997_v39  ;;  %v1898_v43 = vcombine.low %v1890_v23, %v1897_v29  ;;  %v851_v62 = vcombine.low %v842_v46, %v849_v11  ;;  %v2325_v10 = vrot.slane %v2311_v53, %v10508_v6  ;;  %v13300_v53 = vld [vmem:[#allocation7_spill] sm:$0xff] }
  0xf1   :  { %v968_v1 = vcombine.low %v13294_v32, %v10972_v19  ;;  %9791 = vmatpush3.bf16.msra.mxu0 %v13295_v50  ;;  %v2246_v40 = vadd.f32 %v2229_v2, %v2213_v45  ;;  %v850_v13 = vcombine.low %v11033_v8, %v11036_v52  ;;  %v13296_v5 = vcombine.high %v10972_v19, %v10972_v19  ;;  %v13298_v8 = vld [vmem:[#allocation23_spill] sm:$0xff]  ;;  %v13301_v50 = vld [vmem:[#allocation17_spill] sm:$0xff] }
  0xf2   :  { %v1849_v7 = vcombine.low %v1841_v14, %v1848_v47  ;;  %v11116_v56 = vcombine.low %v11000_v55, %v669_v36  ;;  %v2326_v38 = vcombine.high %v2318_v4, %v2318_v4  ;;  %9934 = vmatprep.subr.msk.bf16.mxu0 %vm2014_vm1, %v11097_v42  ;;  %v13297_v46 = vrot.slane %v10957_v58, %v10508_v6 }
  0xf3   :  { %v11113_v44 = vcombine.low %v10991_v30, %v13296_v5  ;;  %v989_v52 = vrot.slane %v13298_v8, %v10508_v6  ;;  %v2521_v27 = vcombine.high %v2513_v22, %v2513_v22  ;;  %v996_v18 = vrot.slane %v968_v1, %v10508_v6  ;;  %v13299_v30 = vld [vmem:[#allocation5_spill] sm:$0xff] }
  0xf4   :  { %v11124_v49 = vcombine.low %v10967_v57, %v13297_v46  ;;  %v1998_v19 = vpack.c.bf16 %v1898_v43, %v1849_v7  ;;  %v2327_v63 = vcombine.high %v2325_v10, %v2325_v10  ;;  %v2520_v55 = vrot.slane %v2506_v15, %v10508_v6  ;;  %v13303_v46 = vld [vmem:[#allocation8_spill] sm:$0xff] }
  0xf5   :  { %v11131_v36 = vrot.slane %v2513_v22, %v10508_v6  ;;  %v11134_v61 = vrot.slane %v851_v62, %v10508_v6  ;;  %v11140_v58 = vcombine.low %v670_v12, %v10988_v60  ;;  %v11143_v57 = vcombine.low %v671_v16, %v10916_v51 }
  0xf6   :  { %9786 = vmatprep.mubr.msk.bf16.mxu0 %vm108_vm0, %v1998_v19  ;;  %v2262_v29 = vcombine.high %v2246_v40, %v2246_v40  ;;  %v11147_v11 = vrot.slane %v850_v13, %v10508_v6  ;;  %v2348_v24 = vrot.slane %v2326_v38, %v10508_v6  ;;  %v2217_v60 = vmul.f32 %v10997_v59, %v13299_v30 }
  0xf7   :  { %v2334_v51 = vrot.slane %v2318_v4, %v10508_v6  ;;  %v2543_v12 = vrot.slane %v2521_v27, %v10508_v6  ;;  %v2269_v16 = vrot.slane %v2246_v40, %v10508_v6  ;;  %v2355_v54 = vrot.slane %v2327_v63, %v10508_v6  ;;  %v13305_v27 = vld [vmem:[#allocation10_spill] sm:$0xff] }
  0xf8   :  { %v2522_v45 = vcombine.high %v2520_v55, %v2520_v55  ;;  %v2536_v39 = vrot.slane %v2520_v55, %v10508_v6  ;;  %v2551_v23 = vcombine.high %v11131_v36, %v11131_v36  ;;  %v11165_v14 = vcombine.low %v989_v52, %v996_v18  ;;  %v13304_v52 = vld [vmem:[#allocation9_spill] sm:$0xff]  ;;  %v13306_v55 = vld [vmem:[#allocation15_spill] sm:$0xff] }
  0xf9   :  { %v2276_v47 = vrot.slane %v2262_v29, %v10508_v6  ;;  %v2216_v4 = vmul.f32 %v11020_v31, %v13300_v53  ;;  %v2341_v32 = vrot.slane %v2325_v10, %v10508_v6  ;;  %v2701_v1 = vcombine.low %v2334_v51, %v2348_v24  ;;  %v2244_v53 = vpop.permute.xlu1 %2243 }
  0xfa   :  { %v2250_v43 = vadd.f32 %v2229_v2, %v2217_v60  ;;  %v2553_v15 = vcombine.high %v2543_v12, %v2543_v12  ;;  %v9620_v22 = vcombine.high %v2334_v51, %v2348_v24  ;;  %v2277_v62 = vcombine.high %v2269_v16, %v2269_v16  ;;  %v13308_v24 = vld [vmem:[#allocation14_spill] sm:$0xff] }
  0xfb   :  { %v1930_v7 = vrot.slane %v13301_v50, %v10508_v6  ;;  %v11176_v40 = vrot.slane %v2522_v45, %v10508_v6  ;;  %v2552_v13 = vcombine.high %v2536_v39, %v2536_v39  ;;  %v2703_v5 = vcombine.low %v2341_v32, %v2355_v54 }
  0xfc   :  { %v11178_v38 = vcombine.low %v2543_v12, %v2551_v23  ;;  %v2220_v8 = vmul.f32 %v11020_v31, %v13303_v46  ;;  %v2215_v10 = vmul.f32 %v11051_v20, %v13304_v52  ;;  %v9621_v2 = vcombine.high %v2341_v32, %v2355_v54  ;;  %v13310_v31 = vld [vmem:[#allocation16_spill] sm:$0xff] }
  0xfd   :  { %v2278_v19 = vcombine.high %v2276_v47, %v2276_v47  ;;  %v11186_v18 = vmul.f32 %v11051_v20, %v13305_v27  ;;  %v11189_v63 = vrot.slane %v2701_v1, %v10508_v6  ;;  %v13307_v29 = vrot.slane %v13306_v55, %v10508_v6  ;;  %v13313_v52 = vld [vmem:[#allocation12_spill] sm:$0xff]  ;;  %v13315_v55 = vld [vmem:[#allocation11_spill] sm:$0xff] }
  0xfe   :  { %13302 = vst [vmem:[#allocation6_spill] sm:$0xff] %v11178_v38  ;;  %v13309_v30 = vrot.slane %v13308_v24, %v10508_v6  ;;  %v13311_v51 = vrot.slane %v13310_v31, %v10508_v6  ;;  %v11201_v54 = vrot.slane %v9620_v22, %v10508_v6  ;;  %v11203_v45 = vcombine.low %v2553_v15, %v2536_v39 }
  0xff   :  { %v2299_v20 = vrot.slane %v2277_v62, %v10508_v6  ;;  %v2457_v23 = vcombine.high %v2250_v43, %v2250_v43  ;;  %v11207_v32 = vrot.slane %v2703_v5, %v10508_v6  ;;  %v11210_v1 = vcombine.low %v11176_v40, %v2552_v13 }
 0x100   :  { %v1931_v60 = vcombine.low %v13309_v30, %v13307_v29  ;;  %v1932_v12 = vcombine.low %v13311_v51, %v1930_v7  ;;  %v13312_v7 = vld [vmem:[#allocation13_spill] sm:$0xff]  ;;  %v11217_v22 = vrot.slane %v9621_v2, %v10508_v6  ;;  %v2285_v39 = vrot.slane %v2269_v16, %v10508_v6 }
 0x101   :  { %v1971_v46 = vrot.slane %v13312_v7, %v10508_v6  ;;  %v2306_v15 = vrot.slane %v2278_v19, %v10508_v6  ;;  %v2464_v62 = vrot.slane %v2250_v43, %v10508_v6  ;;  %v13314_v27 = vrot.slane %v13313_v52, %v10508_v6  ;;  %v2239_v7 = vpop.permute.xlu0 %2238 }
 0x102   :  { %v1939_v5 = vrot.slane %v1931_v60, %v10508_v6  ;;  %v1946_v13 = vrot.slane %v1932_v12, %v10508_v6  ;;  %v13316_v29 = vrot.slane %v13315_v55, %v10508_v6  ;;  %v2249_v30 = vadd.f32 %v2244_v53, %v2216_v4 }
 0x103   :  { %v2292_v16 = vrot.slane %v2276_v47, %v10508_v6  ;;  %v2471_v19 = vrot.slane %v2457_v23, %v10508_v6  ;;  %v2652_v43 = vcombine.low %v2285_v39, %v2299_v20  ;;  %v1986_v51 = vrot.slane %v1971_v46, %v10508_v6 }
 0x104   :  { %v1972_v24 = vcombine.low %v13316_v29, %v13314_v27  ;;  %v1947_v31 = vcombine.low %v1939_v5, %v1946_v13  ;;  %v2409_v12 = vcombine.high %v2249_v30, %v2249_v30  ;;  %v2472_v27 = vcombine.high %v2464_v62, %v2464_v62 }
 0x105   :  { %v9618_v4 = vcombine.high %v2285_v39, %v2299_v20  ;;  %v2416_v55 = vrot.slane %v2249_v30, %v10508_v6  ;;  %v11240_v29 = vrot.slane %v2464_v62, %v10508_v6  ;;  %v2654_v47 = vcombine.low %v2292_v16, %v2306_v15 }
 0x106   :  { %v1979_v60 = vrot.slane %v1972_v24, %v10508_v6  ;;  %v2423_v5 = vrot.slane %v2409_v12, %v10508_v6  ;;  %v9619_v13 = vcombine.high %v2292_v16, %v2306_v15  ;;  %v11244_v24 = vrot.slane %v2652_v43, %v10508_v6 }
 0x107   :  { %v2424_v46 = vcombine.high %v2416_v55, %v2416_v55  ;;  %v2248_v50 = vadd.f32 %v2239_v7, %v2215_v10  ;;  %v2473_v2 = vcombine.high %v2471_v19, %v2471_v19  ;;  %v11248_v39 = vrot.slane %v9618_v4, %v10508_v6 }
 0x108   :  { %v1987_v23 = vcombine.low %v1979_v60, %v1986_v51  ;;  %v2425_v52 = vcombine.high %v2423_v5, %v2423_v5  ;;  %v2439_v20 = vrot.slane %v2423_v5, %v10508_v6  ;;  %v2253_v62 = vadd.f32 %v2244_v53, %v2220_v8 }
 0x109   :  { %v2432_v30 = vrot.slane %v2416_v55, %v10508_v6  ;;  %v2446_v60 = vrot.slane %v2424_v46, %v10508_v6  ;;  %v2487_v15 = vrot.slane %v2471_v19, %v10508_v6  ;;  %v2494_v16 = vrot.slane %v2472_v27, %v10508_v6 }
 0x10a   :  { %v1999_v26 = vpack.c.bf16 %v1987_v23, %v1947_v31  ;;  %v2453_v10 = vrot.slane %v2425_v52, %v10508_v6  ;;  %v2455_v43 = vcombine.high %v2439_v20, %v2439_v20  ;;  %v2502_v31 = vcombine.high %v11240_v29, %v11240_v29 }
 0x10b   :  { %v2799_v51 = vcombine.low %v2432_v30, %v2446_v60  ;;  %v9624_v12 = vcombine.high %v2432_v30, %v2446_v60  ;;  %v2360_v4 = vcombine.high %v2248_v50, %v2248_v50  ;;  %v2501_v8 = vrot.slane %v2473_v2, %v10508_v6 }
 0x10c   :  { %9787 = vmatmul.mubr.msk.bf16.gmra.mrb[4].mxu0 %vm108_vm0, %v1999_v26  ;;  %v11260_v53 = vrot.slane %v2654_v47, %v10508_v6  ;;  %v2801_v55 = vcombine.low %v2439_v20, %v2453_v10  ;;  %v2802_v19 = vcombine.low %v2455_v43, %v11240_v29  ;;  %v11264_v27 = vrot.slane %v9619_v13, %v10508_v6 }
 0x10d   :  { %v2611_v26 = vrot.slane %v2253_v62, %v10508_v6  ;;  %v2809_v52 = vrot.slane %v2799_v51, %v10508_v6  ;;  %v2816_v23 = vrot.slane %v9624_v12, %v10508_v6  ;;  %v2252_v2 = vadd.f32 %v2239_v7, %v11186_v18 }
 0x10e   :  { %v2823_v5 = vrot.slane %v2801_v55, %v10508_v6  ;;  %v2830_v46 = vrot.slane %v2802_v19, %v10508_v6  ;;  %v2367_v47 = vrot.slane %v2248_v50, %v10508_v6  ;;  %v2504_v20 = vcombine.high %v2494_v16, %v2494_v16 }
 0x10f   :  { %v2831_v13 = vcombine.low %v2809_v52, %v2816_v23  ;;  %v2374_v30 = vrot.slane %v2360_v4, %v10508_v6  ;;  %v2503_v60 = vcombine.high %v2487_v15, %v2487_v15  ;;  %v2505_v10 = vcombine.high %v2501_v8, %v2501_v8 }
 0x110   :  { %v2832_v43 = vcombine.low %v2823_v5, %v2830_v46  ;;  %v2375_v51 = vcombine.high %v2367_v47, %v2367_v47  ;;  %v2604_v12 = vcombine.high %v2253_v62, %v2253_v62  ;;  %v2619_v35 = vcombine.high %v2611_v26, %v2611_v26 }
 0x111   :  { %v2839_v55 = vrot.slane %v2831_v13, %v10508_v6  ;;  %v2376_v19 = vcombine.high %v2374_v30, %v2374_v30  ;;  %v2555_v7 = vcombine.high %v2252_v2, %v2252_v2  ;;  %v2562_v59 = vrot.slane %v2252_v2, %v10508_v6 }
 0x112   :  { %v2846_v18 = vrot.slane %v2832_v43, %v10508_v6  ;;  %v2397_v50 = vrot.slane %v2375_v51, %v10508_v6  ;;  %v11280_v29 = vcombine.low %v2504_v20, %v2487_v15  ;;  %v2383_v4 = vrot.slane %v2367_v47, %v10508_v6 }
 0x113   :  { %v2390_v52 = vrot.slane %v2374_v30, %v10508_v6  ;;  %v2404_v23 = vrot.slane %v2376_v19, %v10508_v6  ;;  %v11285_v62 = vcombine.low %v2501_v8, %v2503_v60  ;;  %v2569_v46 = vrot.slane %v2555_v7, %v10508_v6 }
 0x114   :  { %v11287_v5 = vcombine.low %v2839_v55, %v2846_v18  ;;  %v2570_v13 = vcombine.high %v2562_v59, %v2562_v59  ;;  %v2750_v43 = vcombine.low %v2383_v4, %v2397_v50  ;;  %v9622_v51 = vcombine.high %v2383_v4, %v2397_v50 }
 0x115   :  { %v2752_v21 = vcombine.low %v2390_v52, %v2404_v23  ;;  %v9623_v38 = vcombine.high %v2390_v52, %v2404_v23  ;;  %v11291_v15 = vrot.slane %v2604_v12, %v10508_v6  ;;  %v11294_v2 = vrot.slane %v2619_v35, %v10508_v6 }
 0x116   :  { %v2571_v47 = vcombine.high %v2569_v46, %v2569_v46  ;;  %v753_v8 = vcombine.low %v10940_v9, %v10946_v3  ;;  %v2760_v20 = vrot.slane %v2750_v43, %v10508_v6  ;;  %v2767_v30 = vrot.slane %v9622_v51, %v10508_v6 }
 0x117   :  { %v2774_v60 = vrot.slane %v2752_v21, %v10508_v6  ;;  %v2781_v55 = vrot.slane %v9623_v38, %v10508_v6  ;;  %v11302_v19 = vcombine.low %v2494_v16, %v2502_v31  ;;  %v11305_v12 = vcombine.low %v2505_v10, %v11131_v36 }
 0x118   :  { %v11308_v35 = vrot.slane %v2569_v46, %v10508_v6  ;;  %v11311_v18 = vrot.slane %v2570_v13, %v10508_v6  ;;  %v2554_v9 = vcombine.high %v11176_v40, %v11176_v40  ;;  %v11316_v3 = vrot.slane %v2571_v47, %v10508_v6  ;;  %v13319_v47 = vld [vmem:[#allocation22_spill] sm:$0xff] }
 0x119   :  { %v2782_v21 = vcombine.low %v2760_v20, %v2767_v30  ;;  %v2783_v50 = vcombine.low %v2774_v60, %v2781_v55  ;;  %v2865_v38 = vrot.slane %v11280_v29, %v10508_v6  ;;  %v2872_v36 = vrot.slane %v11285_v62, %v10508_v6  ;;  %v13322_v55 = vld [vmem:[#allocation21_spill] sm:$0xff]  ;;  %v13339_v62 = vld [vmem:[#allocation6_spill] sm:$0xff] }
 0x11a   :  { %v11323_v16 = vrot.slane %v2611_v26, %v10508_v6  ;;  %v767_v31 = vrot.slane %v753_v8, %v10508_v6  ;;  %v2620_v10 = vcombine.high %v11291_v15, %v11291_v15  ;;  %v11330_v40 = vrot.slane %v11291_v15, %v10508_v6  ;;  %v13318_v15 = vld [vmem:[#allocation24_spill] sm:$0xff] }
 0x11b   :  { %v2651_v7 = vcombine.high %v11294_v2, %v11294_v2  ;;  %v11335_v4 = vrot.slane %v2562_v59, %v10508_v6  ;;  %v2601_v52 = vcombine.high %v11308_v35, %v11308_v35  ;;  %v2602_v26 = vcombine.high %v11311_v18, %v11311_v18 }
 0x11c   :  { %v2797_v23 = vrot.slane %v2783_v50, %v10508_v6  ;;  %v13317_v46 = vcombine.low %v10909_v17, %v10912_v41  ;;  %v2603_v43 = vcombine.high %v11316_v3, %v11316_v3  ;;  %v2790_v51 = vrot.slane %v2782_v21, %v10508_v6  ;;  %v13324_v21 = vld [vmem:[#allocation18_spill] sm:$0xff] }
 0x11d   :  { %v2900_v59 = vcombine.low %v2554_v9, %v11335_v4  ;;  %v802_v8 = vcombine.low %v13319_v47, %v13318_v15  ;;  %v947_v30 = vrot.slane %v10953_v33, %v10508_v6  ;;  %v13320_v60 = vrot.slane %v10930_v25, %v10508_v6  ;;  %v13326_v15 = vld [vmem:[#allocation19_spill] sm:$0xff] }
 0x11e   :  { %v760_v13 = vrot.slane %v13317_v46, %v10508_v6  ;;  %v13321_v17 = vrot.slane %v10928_v28, %v10508_v6  ;;  %v13323_v50 = vrot.slane %v13322_v55, %v10508_v6  ;;  %v13325_v9 = vrot.slane %v13324_v21, %v10508_v6 }
 0x11f   :  { %v816_v33 = vrot.slane %v802_v8, %v10508_v6  ;;  %v1012_v25 = vrot.slane %v11165_v14, %v10508_v6  ;;  %v1045_v28 = vrot.slane %v11143_v57, %v10508_v6  ;;  %v13331_v14 = vrot.slane %v11140_v58, %v10508_v6 }
 0x120   :  { %v768_v20 = vcombine.low %v760_v13, %v767_v31  ;;  %v948_v41 = vcombine.low %v13321_v17, %v13320_v60  ;;  %v997_v46 = vcombine.low %v13325_v9, %v13323_v50  ;;  %v13327_v31 = vld [vmem:[#allocation20_spill] sm:$0xff]  ;;  %v2798_v60 = vcombine.low %v2790_v51, %v2797_v23 }
 0x121   :  { %v13328_v13 = vcombine.low %v13326_v15, %v13327_v31  ;;  %v13329_v17 = vcombine.low %v11147_v11, %v11134_v61  ;;  %v13330_v50 = vrot.slane %v10933_v0, %v10508_v6  ;;  %v13332_v57 = vrot.slane %v11113_v44, %v10508_v6 }
 0x122   :  { %v1005_v9 = vrot.slane %v997_v46, %v10508_v6  ;;  %v956_v8 = vrot.slane %v948_v41, %v10508_v6  ;;  %v13333_v61 = vrot.slane %v11116_v56, %v10508_v6  ;;  %v13334_v51 = vrot.slane %v10959_v48, %v10508_v6 }
 0x123   :  { %v809_v47 = vrot.slane %v13328_v13, %v10508_v6  ;;  %v1112_v55 = vpack.c.bf16 %v11124_v49, %v13329_v17  ;;  %v949_v21 = vcombine.low %v13330_v50, %v947_v30  ;;  %v1046_v23 = vcombine.low %v13332_v57, %v13331_v14 }
 0x124   :  { %v1047_v49 = vcombine.low %v13333_v61, %v1045_v28  ;;  %v1013_v0 = vcombine.low %v1005_v9, %v1012_v25  ;;  %v13335_v30 = vrot.slane %v10942_v34, %v10508_v6  ;;  %v2685_v58 = vcombine.low %v11260_v53, %v11264_v27 }
 0x125   :  { %v817_v15 = vcombine.low %v809_v47, %v816_v33  ;;  %v963_v11 = vrot.slane %v949_v21, %v10508_v6  ;;  %v2928_v44 = vrot.slane %v2900_v59, %v10508_v6  ;;  %v3062_v56 = vsel %vm2014_vm1, %v11097_v42, 0 }
 0x126   :  { %v1087_v41 = vcombine.low %v13335_v30, %v13334_v51  ;;  %v1086_v31 = vrot.slane %v10963_v37, %v10508_v6  ;;  %v1061_v47 = vrot.slane %v1047_v49, %v10508_v6  ;;  %v2699_v48 = vrot.slane %v2685_v58, %v10508_v6 }
 0x127   :  { %v1111_v46 = vpack.c.bf16 %v817_v15, %v768_v20  ;;  %v964_v13 = vcombine.low %v956_v8, %v963_v11  ;;  %v2734_v34 = vcombine.low %v11207_v32, %v11217_v22  ;;  %v1054_v53 = vrot.slane %v1046_v23, %v10508_v6 }
 0x128   :  { %v13336_v27 = vcombine.low %v11244_v24, %v11248_v39  ;;  %v3044_v59 = vpack.c.bf16 %v11287_v5, %v2798_v60  ;;  %v2879_v37 = vrot.slane %v11305_v12, %v10508_v6  ;;  %v1094_v33 = vrot.slane %v1087_v41, %v10508_v6 }
 0x129   :  { %9792 = vmatprep.mubr.msk.bf16.mxu0 %vm108_vm0, %v1111_v46  ;;  %v1113_v20 = vpack.c.bf16 %v1013_v0, %v964_v13  ;;  %v13337_v32 = vcombine.low %v11189_v63, %v11201_v54  ;;  %v2748_v25 = vrot.slane %v2734_v34, %v10508_v6  ;;  %v2649_v24 = vcombine.high %v11323_v16, %v11323_v16 }
 0x12a   :  { %v2692_v42 = vrot.slane %v13336_v27, %v10508_v6  ;;  %9793 = vmatmul.mubr.msk.bf16.vlgmr.msra.gmra.mrb[0].mxu0 %vm108_vm0, %v1112_v55  ;;  %v2600_v39 = vcombine.high %v11335_v4, %v11335_v4  ;;  %v2921_v5 = vrot.slane %v11210_v1, %v10508_v6  ;;  %v2949_v28 = vcombine.low %v2603_v43, %v11323_v16 }
 0x12b   :  { %v2741_v22 = vrot.slane %v13337_v32, %v10508_v6  ;;  %9801 = vmatpush3.bf16.msra.mxu0 %v3062_v56  ;;  %9796 = vmatprep.mubr.msk.bf16.mxu0 %vm108_vm0, %v1113_v20  ;;  %v1062_v60 = vcombine.low %v1054_v53, %v1061_v47  ;;  %v1101_v63 = vrot.slane %v1086_v31, %v10508_v6  ;;  %vm4814_vm1 = vcmask 1045509  }
 0x12c   :  { %v2700_v12 = vcombine.low %v2692_v42, %v2699_v48  ;;  %v2858_v17 = vrot.slane %v11302_v19, %v10508_v6  ;;  %v2648_v55 = vrot.slane %v2620_v10, %v10508_v6  ;;  %v2930_v50 = vcombine.low %v2921_v5, %v2928_v44  ;;  %v11481_v48 = vld [vmem:[%s13341_s10] ss:$0 sm:$0xff] }
 0x12d   :  { %v2749_v54 = vcombine.low %v2741_v22, %v2748_v25  ;;  %v2881_v1 = vcombine.low %v2872_v36, %v2879_v37  ;;  %v2996_v4 = vcombine.low %v2651_v7, %v11330_v40  ;;  %v2947_v16 = vcombine.low %v2602_v26, %v11308_v35 }
 0x12e   :  { %v2948_v43 = vcombine.low %v11316_v3, %v2601_v52  ;;  %v1102_v21 = vcombine.low %v1094_v33, %v1101_v63  ;;  %v2650_v9 = vcombine.high %v11330_v40, %v11330_v40  ;;  %v2880_v19 = vcombine.low %v2858_v17, %v2865_v38 }
 0x12f   :  { %v3043_v15 = vpack.c.bf16 %v2749_v54, %v2700_v12  ;;  %v13338_v10 = vrot.slane %v11203_v45, %v10508_v6  ;;  %v13340_v36 = vrot.slane %v13339_v62, %v10508_v6  ;;  %v2995_v35 = vcombine.low %v11294_v2, %v2649_v24 }
 0x130   :  { %v2946_v3 = vcombine.low %v11311_v18, %v2600_v39  ;;  %v1114_v52 = vpack.c.bf16 %v1102_v21, %v1062_v60  ;;  %v2977_v26 = vrot.slane %v2949_v28, %v10508_v6  ;;  %v2895_v40 = vrot.slane %v2881_v1, %v10508_v6 }
 0x131   :  { %v2929_v7 = vcombine.low %v13340_v36, %v13338_v10  ;;  %v2944_v8 = vrot.slane %v2930_v50, %v10508_v6  ;;  %v3011_v29 = vrot.slane %v2996_v4, %v10508_v6  ;;  %v2963_v38 = vrot.slane %v2947_v16, %v10508_v6 }
 0x132   :  { %v2970_v45 = vrot.slane %v2948_v43, %v10508_v6  ;;  %9797 = vmatmul.mubr.msk.bf16.gmra.mrb[4].mxu0 %vm108_vm0, %v1114_v52  ;;  %v2888_v2 = vrot.slane %v2880_v19, %v10508_v6  ;;  %v2997_v14 = vcombine.low %v2648_v55, %v2650_v9  ;;  %v3004_v57 = vrot.slane %v2995_v35, %v10508_v6 }
 0x133   :  { %9802 = vmatprep.mubr.msk.bf16.mxu0 %vm108_vm0, %v3043_v15  ;;  %v2937_v18 = vrot.slane %v2929_v7, %v10508_v6  ;;  %v2956_v23 = vrot.slane %v2946_v3, %v10508_v6 }
 0x134   :  { %v2979_v61 = vcombine.low %v2970_v45, %v2977_v26  ;;  %v2896_v49 = vcombine.low %v2888_v2, %v2895_v40  ;;  %v3019_v51 = vcombine.low %v3004_v57, %v3011_v29  ;;  %v3018_v41 = vrot.slane %v2997_v14, %v10508_v6 }
 0x135   :  { %v2945_v11 = vcombine.low %v2937_v18, %v2944_v8  ;;  %v2978_v0 = vcombine.low %v2956_v23, %v2963_v38 }
 0x136   :  { %v2993_v30 = vrot.slane %v2979_v61, %v10508_v6  ;;  %v3026_v46 = vrot.slane %v3019_v51, %v10508_v6  ;;  %v3033_v31 = vrot.slane %v3018_v41, %v10508_v6 }
 0x137   :  { %v3045_v58 = vpack.c.bf16 %v2945_v11, %v2896_v49  ;;  %v2986_v44 = vrot.slane %v2978_v0, %v10508_v6 }
 0x138   :  { %v3034_v13 = vcombine.low %v3026_v46, %v3033_v31 }
 0x139   :  { %v2994_v56 = vcombine.low %v2986_v44, %v2993_v30 }
 0x13a   :  { %9803 = vmatmul.mubr.msk.bf16.vlgmr.msra.gmra.mrb[0].mxu0 %vm108_vm0, %v3044_v59 }
 0x13b   :  { %9806 = vmatprep.mubr.msk.bf16.mxu0 %vm108_vm0, %v3045_v58  ;;  %v3046_v47 = vpack.c.bf16 %v3034_v13, %v2994_v56 }
 0x142   :  { %9807 = vmatmul.mubr.msk.bf16.gmra.mrb[4].mxu0 %vm108_vm0, %v3046_v47  ;;  %vm4811_vm0 = vcmask 1044484  }
 0x20d   :  { %v9804_v34 = vpop.f32.mrb[0].mxu0 }
 0x20e   :  { %v3146_v53 = vadd.f32 %v9804_v34, %v11481_v48  ;;  %v3098_v27 = vpop.f32.mrb[1].mxu0 }
 0x20f   :  { %v3144_v42 = vadd.f32 %v11481_v48, %v3098_v27  ;;  %v9805_v59 = vpop.f32.mrb[2].mxu0 }
 0x210   :  { %vm3154_vm2 = vcmp.ge.f32.partialorder %v3146_v53, 0.0  ;;  %v3162_v37 = vmul.f32 0.01, %v3146_v53  ;;  %v3147_v20 = vadd.f32 %v9805_v59, %v11481_v48  ;;  %v3101_v33 = vpop.f32.mrb[3].mxu0 }
 0x211   :  { %vm3152_vm3 = vcmp.ge.f32.partialorder %v3144_v42, 0.0  ;;  %v3160_v32 = vmul.f32 0.01, %v3144_v42  ;;  %v3145_v22 = vadd.f32 %v11481_v48, %v3101_v33 }
 0x212   :  { %v3170_v25 = vsel %vm3154_vm2, %v3146_v53, %v3162_v37  ;;  %vm3155_vm4 = vcmp.ge.f32.partialorder %v3147_v20, 0.0  ;;  %v3163_v24 = vmul.f32 0.01, %v3147_v20  ;;  %vm4817_vm2 = vcmask 1046534  }
 0x213   :  { %v3282_v39 = vcombine.high %v3170_v25, %v3170_v25  ;;  %v3289_v5 = vrot.slane %v3170_v25, %v10508_v6  ;;  %v3168_v12 = vsel %vm3152_vm3, %v3144_v42, %v3160_v32  ;;  %vm3153_vm5 = vcmp.ge.f32.partialorder %v3145_v22, 0.0 }
 0x214   :  { %v3184_v28 = vcombine.high %v3168_v12, %v3168_v12  ;;  %v3191_v60 = vrot.slane %v3168_v12, %v10508_v6  ;;  %v3171_v63 = vsel %vm3155_vm4, %v3147_v20, %v3163_v24  ;;  %v3161_v54 = vmul.f32 0.01, %v3145_v22 }
 0x215   :  { %v3296_v17 = vrot.slane %v3282_v39, %v10508_v6  ;;  %v3297_v55 = vcombine.high %v3289_v5, %v3289_v5  ;;  %v3305_v50 = vrot.slane %v3289_v5, %v10508_v6  ;;  %v3331_v1 = vcombine.high %v3171_v63, %v3171_v63  ;;  %v9808_v4 = vpop.f32.mrb[4].mxu0 }
 0x216   :  { %v3198_v16 = vrot.slane %v3184_v28, %v10508_v6  ;;  %v3199_v43 = vcombine.high %v3191_v60, %v3191_v60  ;;  %v3207_v21 = vrot.slane %v3191_v60, %v10508_v6  ;;  %v3338_v9 = vrot.slane %v3171_v63, %v10508_v6  ;;  %v3114_v15 = vpop.f32.mrb[5].mxu0 }
 0x217   :  { %v3298_v19 = vcombine.high %v3296_v17, %v3296_v17  ;;  %v11495_v10 = vrot.slane %v3296_v17, %v10508_v6  ;;  %v3319_v62 = vrot.slane %v3297_v55, %v10508_v6  ;;  %v3327_v36 = vcombine.high %v3305_v50, %v3305_v50  ;;  %v9809_v7 = vpop.f32.mrb[6].mxu0 }
 0x218   :  { %v3200_v35 = vcombine.high %v3198_v16, %v3198_v16  ;;  %v11499_v3 = vrot.slane %v3198_v16, %v10508_v6  ;;  %v3221_v52 = vrot.slane %v3199_v43, %v10508_v6  ;;  %v3229_v26 = vcombine.high %v3207_v21, %v3207_v21  ;;  %v11502_v40 = vpop.f32.mrb[7].mxu0 }
 0x219   :  { %v11505_v8 = vrot.slane %v3298_v19, %v10508_v6  ;;  %v3328_v29 = vcombine.high %v11495_v10, %v11495_v10  ;;  %v3329_v38 = vcombine.high %v3319_v62, %v3319_v62  ;;  %v11509_v45 = vmax.f32 %v3305_v50, %v3319_v62 }
 0x21a   :  { %v3228_v2 = vrot.slane %v3200_v35, %v10508_v6  ;;  %v3230_v18 = vcombine.high %v11499_v3, %v11499_v3  ;;  %v3231_v14 = vcombine.high %v3221_v52, %v3221_v52  ;;  %v11514_v57 = vmax.f32 %v3207_v21, %v3221_v52 }
 0x21b   :  { %v3330_v23 = vcombine.high %v11505_v8, %v11505_v8  ;;  %v11518_v61 = vmax.f32 %v3327_v36, %v3329_v38  ;;  %v11522_v49 = vmax.f32 %v11495_v10, %v11505_v8  ;;  %v11525_v11 = vrot.slane %v3331_v1, %v10508_v6 }
 0x21c   :  { %v3232_v0 = vcombine.high %v3228_v2, %v3228_v2  ;;  %v11527_v51 = vmax.f32 %v3229_v26, %v3231_v14  ;;  %v11530_v30 = vmax.f32 %v11499_v3, %v3228_v2  ;;  %v3346_v41 = vcombine.high %v3338_v9, %v3338_v9 }
 0x21d   :  { %v3347_v58 = vcombine.high %v11525_v11, %v11525_v11  ;;  %v3354_v44 = vrot.slane %v3338_v9, %v10508_v6  ;;  %v3361_v46 = vrot.slane %v11525_v11, %v10508_v6  ;;  %v3169_v56 = vsel %vm3153_vm5, %v3145_v22, %v3161_v54 }
 0x21e   :  { %v3368_v31 = vrot.slane %v3346_v41, %v10508_v6  ;;  %v3233_v13 = vcombine.high %v3169_v56, %v3169_v56  ;;  %v3240_v47 = vrot.slane %v3169_v56, %v10508_v6  ;;  %v3150_v34 = vadd.f32 %v9808_v4, %v11481_v48 }
 0x21f   :  { %v11542_v53 = vrot.slane %v3347_v58, %v10508_v6  ;;  %v3376_v27 = vcombine.high %v3354_v44, %v3354_v44  ;;  %v3148_v42 = vadd.f32 %v11481_v48, %v3114_v15  ;;  %v3151_v59 = vadd.f32 %v9809_v7, %v11481_v48 }
 0x220   :  { %v3377_v37 = vcombine.high %v3368_v31, %v3368_v31  ;;  %v11546_v20 = vmax.f32 %v3354_v44, %v3368_v31  ;;  %v3247_v33 = vrot.slane %v3233_v13, %v10508_v6  ;;  %v3248_v32 = vcombine.high %v3240_v47, %v3240_v47 }
 0x221   :  { %v3256_v22 = vrot.slane %v3240_v47, %v10508_v6  ;;  %vm3158_vm6 = vcmp.ge.f32.partialorder %v3150_v34, 0.0  ;;  %v3166_v25 = vmul.f32 0.01, %v3150_v34  ;;  %vm3156_vm7 = vcmp.ge.f32.partialorder %v3148_v42, 0.0 }
 0x222   :  { %v11550_v24 = vmax.f32 %v3376_v27, %v3377_v37  ;;  %v3249_v39 = vcombine.high %v3247_v33, %v3247_v33  ;;  %v3263_v5 = vrot.slane %v3247_v33, %v10508_v6  ;;  %v3270_v12 = vrot.slane %v3248_v32, %v10508_v6 }
 0x223   :  { %v3278_v28 = vcombine.high %v3256_v22, %v3256_v22  ;;  %v3174_v60 = vsel %vm3158_vm6, %v3150_v34, %v3166_v25  ;;  %v3164_v63 = vmul.f32 0.01, %v3148_v42  ;;  %v3378_v54 = vcombine.high %v11542_v53, %v11542_v53 }
 0x224   :  { %v3277_v17 = vrot.slane %v3249_v39, %v10508_v6  ;;  %v3279_v55 = vcombine.high %v3263_v5, %v3263_v5  ;;  %v3280_v50 = vcombine.high %v3270_v12, %v3270_v12  ;;  %v11557_v1 = vmax.f32 %v3256_v22, %v3270_v12 }
 0x225   :  { %v3477_v4 = vcombine.high %v3174_v60, %v3174_v60  ;;  %v3484_v16 = vrot.slane %v3174_v60, %v10508_v6  ;;  %v3172_v43 = vsel %vm3156_vm7, %v3148_v42, %v3164_v63  ;;  %vm3159_vm8 = vcmp.ge.f32.partialorder %v3151_v59, 0.0 }
 0x226   :  { %v3281_v21 = vcombine.high %v3277_v17, %v3277_v17  ;;  %v11560_v9 = vmax.f32 %v3278_v28, %v3280_v50  ;;  %v11562_v15 = vmax.f32 %v3263_v5, %v3277_v17  ;;  %v3379_v19 = vcombine.high %v3172_v43, %v3172_v43 }
 0x227   :  { %v3491_v62 = vrot.slane %v3477_v4, %v10508_v6  ;;  %v3492_v36 = vcombine.high %v3484_v16, %v3484_v16  ;;  %v11566_v7 = vrot.slane %v3484_v16, %v10508_v6  ;;  %v3386_v35 = vrot.slane %v3172_v43, %v10508_v6 }
 0x228   :  { %v3393_v3 = vrot.slane %v3379_v19, %v10508_v6  ;;  %v3167_v52 = vmul.f32 0.01, %v3151_v59  ;;  %v3149_v26 = vadd.f32 %v11481_v48, %v11502_v40  ;;  %v11572_v38 = vmax.f32 %v3230_v18, %v3232_v0 }
 0x229   :  { %v3493_v2 = vcombine.high %v3491_v62, %v3491_v62  ;;  %v11575_v14 = vrot.slane %v3491_v62, %v10508_v6  ;;  %v3514_v41 = vrot.slane %v3492_v36, %v10508_v6  ;;  %v3522_v58 = vcombine.high %v11566_v7, %v11566_v7 }
 0x22a   :  { %v3394_v44 = vcombine.high %v3386_v35, %v3386_v35  ;;  %v3395_v56 = vcombine.high %v3393_v3, %v3393_v3  ;;  %v3402_v31 = vrot.slane %v3386_v35, %v10508_v6  ;;  %v11582_v13 = vrot.slane %v3393_v3, %v10508_v6 }
 0x22b   :  { %v11585_v48 = vrot.slane %v3493_v2, %v10508_v6  ;;  %v3523_v40 = vcombine.high %v11575_v14, %v11575_v14  ;;  %v3524_v18 = vcombine.high %v3514_v41, %v3514_v41  ;;  %v11589_v0 = vmax.f32 %v3514_v41, %v3522_v58 }
 0x22c   :  { %v3416_v47 = vrot.slane %v3394_v44, %v10508_v6  ;;  %v11593_v34 = vrot.slane %v3395_v56, %v10508_v6  ;;  %v3424_v27 = vcombine.high %v3402_v31, %v3402_v31  ;;  %v3425_v42 = vcombine.high %v11582_v13, %v11582_v13 }
 0x22d   :  { %v11598_v37 = vmax.f32 %v3524_v18, %v11575_v14  ;;  %v11600_v33 = vmax.f32 %v3378_v54, %v3402_v31  ;;  %v3175_v32 = vsel %vm3159_vm8, %v3151_v59, %v3167_v52  ;;  %v3525_v22 = vcombine.high %v11585_v48, %v11585_v48 }
 0x22e   :  { %v3426_v25 = vcombine.high %v3416_v47, %v3416_v47  ;;  %v11605_v39 = vmax.f32 %v3416_v47, %v3424_v27  ;;  %v3526_v5 = vcombine.high %v3175_v32, %v3175_v32  ;;  %v3533_v12 = vrot.slane %v3175_v32, %v10508_v6 }
 0x22f   :  { %vm3157_vm9 = vcmp.ge.f32.partialorder %v3149_v26, 0.0  ;;  %v3165_v28 = vmul.f32 0.01, %v3149_v26  ;;  %v3427_v60 = vcombine.high %v11593_v34, %v11593_v34  ;;  %v11610_v63 = vmax.f32 %v3279_v55, %v3281_v21 }
 0x230   :  { %v11613_v54 = vmax.f32 %v3426_v25, %v11582_v13  ;;  %v11616_v59 = vrot.slane %v3526_v5, %v10508_v6  ;;  %v3541_v17 = vcombine.high %v3533_v12, %v3533_v12  ;;  %v3548_v50 = vrot.slane %v3533_v12, %v10508_v6 }
 0x231   :  { %v3173_v4 = vsel %vm3157_vm9, %v3149_v26, %v3165_v28  ;;  %v3687_v16 = vcombine.low %v11514_v57, %v11527_v51  ;;  %v3688_v43 = vcombine.low %v11530_v30, %v11572_v38  ;;  %v3689_v55 = vcombine.low %v11557_v1, %v11560_v9 }
 0x232   :  { %v3555_v21 = vrot.slane %v11616_v59, %v10508_v6  ;;  %v3562_v19 = vrot.slane %v3541_v17, %v10508_v6  ;;  %v3563_v62 = vcombine.high %v3548_v50, %v3548_v50  ;;  %v11628_v36 = vmax.f32 %v3525_v22, %v3548_v50 }
 0x233   :  { %v3428_v35 = vcombine.high %v3173_v4, %v3173_v4  ;;  %v3435_v3 = vrot.slane %v3173_v4, %v10508_v6  ;;  %v3690_v52 = vcombine.low %v11562_v15, %v11610_v63  ;;  %v3697_v26 = vrot.slane %v3687_v16, %v10508_v6 }
 0x234   :  { %v3564_v2 = vcombine.high %v3562_v19, %v3562_v19  ;;  %v11634_v41 = vmax.f32 %v3562_v19, %v3563_v62  ;;  %v3704_v58 = vrot.slane %v3688_v43, %v10508_v6  ;;  %v3711_v44 = vrot.slane %v3689_v55, %v10508_v6 }
 0x235   :  { %v3442_v56 = vrot.slane %v3428_v35, %v10508_v6  ;;  %v3443_v31 = vcombine.high %v3435_v3, %v3435_v3  ;;  %v3451_v13 = vrot.slane %v3435_v3, %v10508_v6  ;;  %v3718_v18 = vrot.slane %v3690_v52, %v10508_v6 }
 0x236   :  { %v3719_v47 = vcombine.low %v3697_v26, %v3704_v58  ;;  %v11647_v27 = vmax.f32 %v3328_v29, %v3330_v23  ;;  %v11653_v32 = vmax.f32 %v3361_v46, %v11542_v53  ;;  %v3736_v22 = vcombine.low %v11509_v45, %v11518_v61 }
 0x237   :  { %v3444_v25 = vcombine.high %v3442_v56, %v3442_v56  ;;  %v3458_v5 = vrot.slane %v3442_v56, %v10508_v6  ;;  %v3465_v12 = vrot.slane %v3443_v31, %v10508_v6  ;;  %v3473_v8 = vcombine.high %v3451_v13, %v3451_v13 }
 0x238   :  { %v11659_v28 = vmax.f32 %v3427_v60, %v3451_v13  ;;  %v3720_v10 = vcombine.low %v3711_v44, %v3718_v18  ;;  %v3727_v29 = vrot.slane %v3719_v47, %v10508_v6  ;;  %v3737_v23 = vcombine.low %v11522_v49, %v11647_v27 }
 0x239   :  { %v3472_v11 = vrot.slane %v3444_v25, %v10508_v6  ;;  %v3474_v46 = vcombine.high %v3458_v5, %v3458_v5  ;;  %v3475_v53 = vcombine.high %v3465_v12, %v3465_v12  ;;  %v11665_v59 = vmax.f32 %v3465_v12, %v3473_v8 }
 0x23a   :  { %v3734_v17 = vrot.slane %v3720_v10, %v10508_v6  ;;  %v3738_v50 = vcombine.low %v11546_v20, %v11550_v24  ;;  %v3745_v60 = vrot.slane %v3736_v22, %v10508_v6  ;;  %v3752_v4 = vrot.slane %v3737_v23, %v10508_v6 }
 0x23b   :  { %v3476_v16 = vcombine.high %v3472_v11, %v3472_v11  ;;  %v11672_v43 = vmax.f32 %v3475_v53, %v3458_v5  ;;  %v3766_v55 = vrot.slane %v11653_v32, %v10508_v6  ;;  %v11677_v19 = vmax.f32 %v11593_v34, %v3425_v42 }
 0x23c   :  { %v3735_v62 = vcombine.low %v3727_v29, %v3734_v17  ;;  %v3759_v35 = vrot.slane %v3738_v50, %v10508_v6  ;;  %v3767_v3 = vcombine.low %v3745_v60, %v3752_v4  ;;  %v11680_v52 = vmax.f32 %v3472_v11, %v3474_v46 }
 0x23d   :  { %v3784_v26 = vcombine.low %v11600_v33, %v11605_v39  ;;  %v3785_v58 = vcombine.low %v11613_v54, %v11677_v19  ;;  %v3786_v44 = vcombine.low %v11659_v28, %v11665_v59  ;;  %v11689_v56 = vmax.f32 %v3476_v16, %v11566_v7 }
 0x23e   :  { %v3886_v34 = vsel %vm3885_vm10, %v3735_v62, 0.0  ;;  %v3768_v42 = vcombine.low %v3759_v35, %v3766_v55  ;;  %v3775_v31 = vrot.slane %v3767_v3, %v10508_v6  ;;  %v3787_v13 = vcombine.low %v11672_v43, %v11680_v52 }
 0x23f   :  { %3887 = vadd.xlane.f32.xlu0 %v3886_v34  ;;  %v3794_v18 = vrot.slane %v3784_v26, %v10508_v6  ;;  %v3801_v47 = vrot.slane %v3785_v58, %v10508_v6  ;;  %v3808_v22 = vrot.slane %v3786_v44, %v10508_v6  ;;  %v11702_v7 = vmax.f32 %v11585_v48, %v3523_v40  ;;  %v13342_v26 = vld [vmem:[#allocation3_spill] sm:$0xff] }
 0x240   :  { %v3782_v25 = vrot.slane %v3768_v42, %v10508_v6  ;;  %v3815_v5 = vrot.slane %v3787_v13, %v10508_v6  ;;  %v11706_v12 = vmax.f32 %v3564_v2, %v3555_v21  ;;  %v3833_v8 = vcombine.low %v11689_v56, %v11589_v0 }
 0x241   :  { %v3816_v10 = vcombine.low %v3794_v18, %v3801_v47  ;;  %v3834_v29 = vcombine.low %v11598_v37, %v11702_v7  ;;  %v3835_v14 = vcombine.low %v11628_v36, %v11634_v41  ;;  %v11727_v58 = vsub.s32 0, %v13342_v26 }
 0x242   :  { %v3783_v23 = vcombine.low %v3775_v31, %v3782_v25  ;;  %v3817_v48 = vcombine.low %v3808_v22, %v3815_v5  ;;  %v3842_v40 = vrot.slane %v3833_v8, %v10508_v6  ;;  %v3863_v2 = vrot.slane %v11706_v12, %v10508_v6 }
 0x243   :  { %v3849_v11 = vrot.slane %v3834_v29, %v10508_v6  ;;  %v3856_v21 = vrot.slane %v3835_v14, %v10508_v6  ;;  %v3824_v53 = vrot.slane %v3816_v10, %v10508_v6  ;;  %v11730_v44 = vsub.s32 1, %v13342_v26 }
 0x244   :  { %v3890_v46 = vsel %vm3889_vm11, %v3783_v23, 0.0  ;;  %v3831_v17 = vrot.slane %v3817_v48, %v10508_v6  ;;  %v11733_v34 = vsub.s32 2, %v13342_v26  ;;  %v11736_v42 = vsub.s32 3, %v13342_v26 }
 0x245   :  { %3891 = vadd.xlane.f32.xlu0 %v3890_v46  ;;  %v3864_v50 = vcombine.low %v3842_v40, %v3849_v11  ;;  %v3865_v60 = vcombine.low %v3856_v21, %v3863_v2  ;;  %v11739_v13 = vsub.s32 4, %v13342_v26  ;;  %v11742_v18 = vsub.s32 5, %v13342_v26 }
 0x246   :  { %v3832_v4 = vcombine.low %v3824_v53, %v3831_v17  ;;  %v11745_v47 = vsub.s32 6, %v13342_v26  ;;  %v11748_v22 = vsub.s32 7, %v13342_v26  ;;  %vm4820_vm3 = vcmask 1047559  }
 0x247   :  { %v3872_v16 = vrot.slane %v3864_v50, %v10508_v6  ;;  %v3879_v55 = vrot.slane %v3865_v60, %v10508_v6  ;;  %vm5248_vm6 = vcmask 256000   ;;  %vm5570_vm7 = vcmask 261120  }
 0x248   :  { %v3893_v62 = vsel %vm3885_vm10, %v3832_v4, 0.0  ;;  %vm6578_vm9 = vcmask 259072  }
 0x249   :  { %3894 = vadd.xlane.f32.xlu1 %v3893_v62  ;;  %v3880_v35 = vcombine.low %v3872_v16, %v3879_v55 }
 0x24b   :  { %v3896_v3 = vsel %vm3889_vm11, %v3880_v35, 0.0 }
 0x24c   :  { %3897 = vadd.xlane.f32.xlu0 %v3896_v3 }
 0x2cc   :  { %v3888_v31 = vpop.xlane.xlu0 %3887 }
 0x2cd   :  { %v3900_v25 = vmul.f32 0.0625, %v3888_v31 }
 0x2cf   :  { %v3911_v5 = vrot.slane %v3900_v25, %v11727_v58  ;;  %v3915_v8 = vrot.slane %v3900_v25, %v11730_v44  ;;  %v3919_v10 = vrot.slane %v3900_v25, %v11733_v34  ;;  %v3923_v29 = vrot.slane %v3900_v25, %v11736_v42 }
 0x2d0   :  { %v3927_v14 = vrot.slane %v3900_v25, %v11739_v13  ;;  %v3931_v23 = vrot.slane %v3900_v25, %v11742_v18  ;;  %v3935_v48 = vrot.slane %v3900_v25, %v11745_v47  ;;  %v3939_v40 = vrot.slane %v3900_v25, %v11748_v22 }
 0x2d1   :  { %v11759_v11 = vsub.f32 %v11514_v57, %v3911_v5  ;;  %v11762_v21 = vsub.f32 %v11527_v51, %v3915_v8  ;;  %v11765_v2 = vsub.f32 %v11530_v30, %v3919_v10  ;;  %v11768_v46 = vsub.f32 %v11572_v38, %v3923_v29 }
 0x2d2   :  { %v3892_v53 = vpop.xlane.xlu0 %3891  ;;  %v11771_v17 = vsub.f32 %v11557_v1, %v3927_v14  ;;  %v11774_v50 = vsub.f32 %v11560_v9, %v3931_v23  ;;  %v11777_v60 = vsub.f32 %v11562_v15, %v3935_v48  ;;  %v11780_v57 = vsub.f32 %v11610_v63, %v3939_v40 }
 0x2d3   :  { %v3901_v51 = vmul.f32 0.0625, %v3892_v53  ;;  %v4088_v30 = vmul.f32 %v11759_v11, %v11759_v11  ;;  %v4089_v38 = vmul.f32 %v11762_v21, %v11762_v21  ;;  %v4090_v1 = vmul.f32 %v11765_v2, %v11765_v2 }
 0x2d4   :  { %v4091_v9 = vmul.f32 %v11768_v46, %v11768_v46  ;;  %v4092_v15 = vmul.f32 %v11771_v17, %v11771_v17  ;;  %v4093_v63 = vmul.f32 %v11774_v50, %v11774_v50  ;;  %v4094_v4 = vmul.f32 %v11777_v60, %v11777_v60 }
 0x2d5   :  { %v4095_v16 = vmul.f32 %v11780_v57, %v11780_v57  ;;  %v4148_v55 = vcombine.low %v4088_v30, %v4089_v38  ;;  %v3943_v62 = vrot.slane %v3901_v51, %v11727_v58  ;;  %v3947_v35 = vrot.slane %v3901_v51, %v11730_v44 }
 0x2d6   :  { %v3895_v3 = vpop.xlane.xlu1 %3894  ;;  %v4149_v26 = vcombine.low %v4090_v1, %v4091_v9  ;;  %v4150_v31 = vcombine.low %v4092_v15, %v4093_v63  ;;  %v3951_v25 = vrot.slane %v3901_v51, %v11733_v34  ;;  %v3955_v5 = vrot.slane %v3901_v51, %v11736_v42 }
 0x2d7   :  { %v3902_v8 = vmul.f32 0.0625, %v3895_v3  ;;  %v4151_v10 = vcombine.low %v4094_v4, %v4095_v16  ;;  %v4158_v29 = vrot.slane %v4148_v55, %v10508_v6  ;;  %v3959_v14 = vrot.slane %v3901_v51, %v11739_v13 }
 0x2d8   :  { %v4165_v23 = vrot.slane %v4149_v26, %v10508_v6  ;;  %v4172_v48 = vrot.slane %v4150_v31, %v10508_v6  ;;  %v3963_v40 = vrot.slane %v3901_v51, %v11742_v18  ;;  %v3967_v53 = vrot.slane %v3901_v51, %v11745_v47 }
 0x2d9   :  { %v3898_v30 = vpop.xlane.xlu0 %3897  ;;  %v4179_v38 = vrot.slane %v4151_v10, %v10508_v6  ;;  %v11810_v1 = vsub.f32 %v11509_v45, %v3943_v62  ;;  %v11813_v9 = vsub.f32 %v11518_v61, %v3947_v35  ;;  %v11816_v15 = vsub.f32 %v11522_v49, %v3951_v25 }
 0x2da   :  { %v11818_v63 = vmul.f32 0.0625, %v3898_v30  ;;  %v4180_v4 = vcombine.low %v4158_v29, %v4165_v23  ;;  %v11821_v16 = vsub.f32 %v11647_v27, %v3955_v5  ;;  %v11824_v51 = vsub.f32 %v11546_v20, %v3959_v14 }
 0x2db   :  { %v4181_v55 = vcombine.low %v4172_v48, %v4179_v38  ;;  %v11827_v3 = vsub.f32 %v11550_v24, %v3963_v40  ;;  %v11830_v45 = vsub.f32 %v11653_v32, %v3967_v53  ;;  %v4096_v61 = vmul.f32 %v11810_v1, %v11810_v1 }
 0x2dc   :  { %v4188_v49 = vrot.slane %v4180_v4, %v10508_v6  ;;  %v4097_v62 = vmul.f32 %v11813_v9, %v11813_v9  ;;  %v4098_v27 = vmul.f32 %v11816_v15, %v11816_v15  ;;  %v4099_v20 = vmul.f32 %v11821_v16, %v11821_v16 }
 0x2dd   :  { %13343 = vst [vmem:[#allocation23_spill] sm:$0xff] %v11830_v45  ;;  %v4195_v24 = vrot.slane %v4181_v55, %v10508_v6  ;;  %v4100_v32 = vmul.f32 %v11824_v51, %v11824_v51  ;;  %v4101_v35 = vmul.f32 %v11827_v3, %v11827_v3  ;;  %v4102_v26 = vmul.f32 %v11830_v45, %v11830_v45 }
 0x2de   :  { %v4197_v31 = vcombine.low %v4096_v61, %v4097_v62  ;;  %v4198_v25 = vcombine.low %v4098_v27, %v4099_v20  ;;  %v3971_v5 = vrot.slane %v3902_v8, %v11727_v58  ;;  %v3975_v10 = vrot.slane %v3902_v8, %v11730_v44 }
 0x2df   :  { %v4196_v29 = vcombine.low %v4188_v49, %v4195_v24  ;;  %v4199_v14 = vcombine.low %v4100_v32, %v4101_v35  ;;  %v4227_v23 = vrot.slane %v4102_v26, %v10508_v6  ;;  %v3979_v48 = vrot.slane %v3902_v8, %v11733_v34 }
 0x2e0   :  { %v4206_v40 = vrot.slane %v4197_v31, %v10508_v6  ;;  %v4213_v53 = vrot.slane %v4198_v25, %v10508_v6  ;;  %v3983_v30 = vrot.slane %v3902_v8, %v11736_v42  ;;  %v3987_v38 = vrot.slane %v3902_v8, %v11739_v13 }
 0x2e1   :  { %v4346_v4 = vsel %vm3885_vm10, %v4196_v29, 0.0  ;;  %v4220_v55 = vrot.slane %v4199_v14, %v10508_v6  ;;  %v3991_v61 = vrot.slane %v3902_v8, %v11742_v18  ;;  %v3995_v49 = vrot.slane %v3902_v8, %v11745_v47 }
 0x2e2   :  { %4347 = vadd.xlane.f32.xlu1 %v4346_v4  ;;  %v4228_v62 = vcombine.low %v4206_v40, %v4213_v53  ;;  %v3999_v27 = vrot.slane %v3902_v8, %v11748_v22  ;;  %v11862_v20 = vsub.f32 %v11600_v33, %v3971_v5  ;;  %v11865_v24 = vsub.f32 %v11605_v39, %v3975_v10 }
 0x2e3   :  { %v4229_v32 = vcombine.low %v4220_v55, %v4227_v23  ;;  %v11868_v35 = vsub.f32 %v11613_v54, %v3979_v48  ;;  %v11871_v26 = vsub.f32 %v11677_v19, %v3983_v30  ;;  %v11874_v31 = vsub.f32 %v11659_v28, %v3987_v38 }
 0x2e4   :  { %v4236_v25 = vrot.slane %v4228_v62, %v10508_v6  ;;  %v11878_v8 = vsub.f32 %v11665_v59, %v3991_v61  ;;  %v11881_v33 = vsub.f32 %v11672_v43, %v3995_v49  ;;  %v11884_v39 = vsub.f32 %v11680_v52, %v3999_v27 }
 0x2e5   :  { %v4243_v54 = vrot.slane %v4229_v32, %v10508_v6  ;;  %v4103_v19 = vmul.f32 %v11862_v20, %v11862_v20  ;;  %v4104_v28 = vmul.f32 %v11865_v24, %v11865_v24  ;;  %v4105_v5 = vmul.f32 %v11868_v35, %v11868_v35 }
 0x2e6   :  { %v4106_v59 = vmul.f32 %v11871_v26, %v11871_v26  ;;  %v4107_v43 = vmul.f32 %v11874_v31, %v11874_v31  ;;  %v4108_v52 = vmul.f32 %v11878_v8, %v11878_v8  ;;  %v4109_v10 = vmul.f32 %v11881_v33, %v11881_v33 }
 0x2e7   :  { %v4244_v29 = vcombine.low %v4236_v25, %v4243_v54  ;;  %v4110_v14 = vmul.f32 %v11884_v39, %v11884_v39  ;;  %v4245_v23 = vcombine.low %v4103_v19, %v4104_v28  ;;  %v4003_v48 = vrot.slane %v11818_v63, %v11727_v58 }
 0x2e8   :  { %v4246_v40 = vcombine.low %v4105_v5, %v4106_v59  ;;  %v4247_v53 = vcombine.low %v4107_v43, %v4108_v52  ;;  %v4007_v30 = vrot.slane %v11818_v63, %v11730_v44  ;;  %v4011_v38 = vrot.slane %v11818_v63, %v11733_v34 }
 0x2e9   :  { %v4349_v4 = vsel %vm3889_vm11, %v4244_v29, 0.0  ;;  %v4248_v55 = vcombine.low %v4109_v10, %v4110_v14  ;;  %v4255_v61 = vrot.slane %v4245_v23, %v10508_v6  ;;  %v4015_v49 = vrot.slane %v11818_v63, %v11736_v42 }
 0x2ea   :  { %4350 = vadd.xlane.f32.xlu1 %v4349_v4  ;;  %v4262_v62 = vrot.slane %v4246_v40, %v10508_v6  ;;  %v4269_v27 = vrot.slane %v4247_v53, %v10508_v6  ;;  %v4019_v32 = vrot.slane %v11818_v63, %v11739_v13  ;;  %v4023_v25 = vrot.slane %v11818_v63, %v11742_v18 }
 0x2eb   :  { %v4276_v54 = vrot.slane %v4248_v55, %v10508_v6  ;;  %v4027_v19 = vrot.slane %v11818_v63, %v11745_v47  ;;  %v11923_v28 = vsub.f32 %v11689_v56, %v4003_v48  ;;  %v11926_v5 = vsub.f32 %v11589_v0, %v4007_v30 }
 0x2ec   :  { %v4277_v59 = vcombine.low %v4255_v61, %v4262_v62  ;;  %v11929_v43 = vsub.f32 %v11598_v37, %v4011_v38  ;;  %v11932_v52 = vsub.f32 %v11702_v7, %v4015_v49  ;;  %v11935_v10 = vsub.f32 %v11628_v36, %v4019_v32 }
 0x2ed   :  { %13344 = vst [vmem:[#allocation5_spill] sm:$0xff] %v11923_v28  ;;  %v4278_v29 = vcombine.low %v4269_v27, %v4276_v54  ;;  %v11938_v14 = vsub.f32 %v11634_v41, %v4023_v25  ;;  %v11941_v56 = vsub.f32 %v11706_v12, %v4027_v19  ;;  %v4111_v0 = vmul.f32 %v11923_v28, %v11923_v28 }
 0x2ee   :  { %13345 = vst [vmem:[#allocation7_spill] sm:$0xff] %v11929_v43  ;;  %13346 = vst [vmem:[#allocation17_spill] sm:$0xff] %v11932_v52  ;;  %v4285_v63 = vrot.slane %v4277_v59, %v10508_v6  ;;  %v4112_v37 = vmul.f32 %v11926_v5, %v11926_v5  ;;  %v4113_v7 = vmul.f32 %v11929_v43, %v11929_v43 }
 0x2ef   :  { %13347 = vst [vmem:[#allocation8_spill] sm:$0xff] %v11935_v10  ;;  %13348 = vst [vmem:[#allocation9_spill] sm:$0xff] %v11938_v14  ;;  %v4114_v36 = vmul.f32 %v11932_v52, %v11932_v52  ;;  %v4292_v41 = vrot.slane %v4278_v29, %v10508_v6  ;;  %v4115_v12 = vmul.f32 %v11935_v10, %v11935_v10  ;;  %v13223_v29 = vmov 0.0  }
 0x2f0   :  { %13349 = vst [vmem:[#allocation10_spill] sm:$0xff] %v11941_v56  ;;  %v4116_v23 = vmul.f32 %v11938_v14, %v11938_v14  ;;  %v4117_v48 = vmul.f32 %v11941_v56, %v11941_v56  ;;  %v4294_v40 = vcombine.low %v4111_v0, %v4112_v37  ;;  %9810 = vmatprep.subr.bf16.mxu1 %v13223_v29  ;;  %v9943_v0 = vld [vmem:[%s13350_s11 + $0x8] sm:$0xff]   ;;  %v9632_v37 = vld [vmem:[%s13352_s9] ss:$0 sm:$0xff]  ;;  %s13370_s9 = sld [smem:[#allocation36_spill]] }
 0x2f1   :  { %v4295_v53 = vcombine.low %v4113_v7, %v4114_v36  ;;  %v4293_v30 = vcombine.low %v4285_v63, %v4292_v41  ;;  %9812 = vmatprep.mubr.msk.bf16.mxu1 %vm10059_vm12, %v13223_v29  ;;  %9852 = vmatprep.subr.bf16.mxu0 %v13223_v29  ;;  %v9631_v63 = vld [vmem:[%s13351_s7] ss:$0 sm:$0xff]  ;;  %v4651_v36 = vcombine.high %v9632_v37, %v9632_v37 }
 0x2f2   :  { %v4296_v38 = vcombine.low %v4115_v12, %v4116_v23  ;;  %v4303_v4 = vrot.slane %v4294_v40, %v10508_v6  ;;  %v4324_v62 = vrot.slane %v4117_v48, %v10508_v6  ;;  %9856 = vmatprep.mubr.msk.bf16.mxu0 %vm10059_vm12, %v13223_v29  ;;  %9811 = vmatpush3.bf16.msra.mxu1 %v9943_v0 }
 0x2f3   :  { %v4310_v55 = vrot.slane %v4295_v53, %v10508_v6  ;;  %v4352_v61 = vsel %vm3885_vm10, %v4293_v30, 0.0  ;;  %9816 = vmatprep.subr.bf16.mxu1 %v13223_v29  ;;  %v4559_v7 = vcombine.high %v9631_v63, %v9631_v63  ;;  %v4566_v23 = vrot.slane %v9631_v63, %v10508_v6 }
 0x2f4   :  { %v4317_v49 = vrot.slane %v4296_v38, %v10508_v6  ;;  %4353 = vadd.xlane.f32.xlu0 %v4352_v61  ;;  %v4658_v40 = vrot.slane %v9632_v37, %v10508_v6  ;;  %v4665_v53 = vrot.slane %v4651_v36, %v10508_v6 }
 0x2f5   :  { %v4325_v27 = vcombine.low %v4303_v4, %v4310_v55  ;;  %v4573_v48 = vrot.slane %v4559_v7, %v10508_v6  ;;  %v4574_v38 = vcombine.high %v4566_v23, %v4566_v23 }
 0x2f6   :  { %v4326_v32 = vcombine.low %v4317_v49, %v4324_v62  ;;  %v4666_v55 = vcombine.high %v4658_v40, %v4658_v40  ;;  %v4667_v61 = vcombine.high %v4665_v53, %v4665_v53  ;;  %v12006_v63 = vrot.slane %v4658_v40, %v10508_v6 }
 0x2f7   :  { %v4333_v25 = vrot.slane %v4325_v27, %v10508_v6  ;;  %v4575_v4 = vcombine.high %v4573_v48, %v4573_v48  ;;  %v11988_v27 = vrot.slane %v4574_v38, %v10508_v6  ;;  %v12003_v0 = vrot.slane %v4573_v48, %v10508_v6 }
 0x2f8   :  { %v4340_v54 = vrot.slane %v4326_v32, %v10508_v6  ;;  %v12009_v37 = vrot.slane %v4665_v53, %v10508_v6  ;;  %v12037_v53 = vcombine.high %v12006_v63, %v12006_v63 }
 0x2f9   :  { %v11991_v32 = vrot.slane %v4575_v4, %v10508_v6  ;;  %v12013_v7 = vcombine.high %v11988_v27, %v11988_v27  ;;  %v12033_v40 = vcombine.high %v12003_v0, %v12003_v0 }
 0x2fa   :  { %v4341_v19 = vcombine.low %v4333_v25, %v4340_v54  ;;  %v11994_v25 = vrot.slane %v4666_v55, %v10508_v6  ;;  %v11997_v54 = vrot.slane %v4667_v61, %v10508_v6  ;;  %13353 = vst [vmem:[#allocation15_spill] sm:$0xff] %v12009_v37  ;;  %13354 = vst [vmem:[#allocation14_spill] sm:$0xff] %v12037_v53 }
 0x2fb   :  { %v12017_v36 = vcombine.high %v11991_v32, %v11991_v32 }
 0x2fc   :  { %v4355_v59 = vsel %vm3889_vm11, %v4341_v19, 0.0  ;;  %v12000_v19 = vrot.slane %v4566_v23, %v10508_v6  ;;  %vm9540_vm11 = vcmask 254976  }
 0x2fd   :  { %4356 = vadd.xlane.f32.xlu0 %v4355_v59 }
 0x2fe   :  { %v12029_v48 = vcombine.high %v12000_v19, %v12000_v19 }
 0x36f   :  { %v4348_v41 = vpop.xlane.xlu1 %4347 }
 0x370   :  { %v4358_v12 = vmul.f32 0.0625, %v4348_v41  ;;  %v12021_v41 = vcombine.high %v11994_v25, %v11994_v25 }
 0x372   :  { %v4362_v30 = vadd.f32 1e-05, %v4358_v12  ;;  %v12025_v12 = vcombine.high %v11997_v54, %v11997_v54 }
 0x374   :  { %9972 = vrsqrt.f32 %v4362_v30  ;;  %v12041_v30 = vcombine.high %v12009_v37, %v12009_v37 }
 0x376   :  { %13355 = vst [vmem:[#allocation16_spill] sm:$0xff] %v12041_v30 }
 0x377   :  { %v4351_v49 = vpop.xlane.xlu1 %4350 }
 0x378   :  { %v4359_v62 = vmul.f32 0.0625, %v4351_v49 }
 0x37a   :  { %v4363_v59 = vadd.f32 1e-05, %v4359_v62 }
 0x37c   :  { %9974 = vrsqrt.f32 %v4363_v59 }
 0x37e   :  { %v9973_v23 = vpop.eup %9972 }
 0x37f   :  { %v4381_v38 = vrot.slane %v9973_v23, %v11730_v44  ;;  %v4389_v4 = vrot.slane %v9973_v23, %v11736_v42  ;;  %v4397_v55 = vrot.slane %v9973_v23, %v11742_v18  ;;  %v4405_v61 = vrot.slane %v9973_v23, %v11748_v22 }
 0x380   :  { %v4377_v49 = vrot.slane %v9973_v23, %v11727_v58  ;;  %v4385_v62 = vrot.slane %v9973_v23, %v11733_v34  ;;  %v4393_v59 = vrot.slane %v9973_v23, %v11739_v13  ;;  %v4401_v29 = vrot.slane %v9973_v23, %v11745_v47 }
 0x381   :  { %v4354_v6 = vpop.xlane.xlu0 %4353  ;;  %v4525_v56 = vmul.f32 %v4381_v38, %v11762_v21  ;;  %v4527_v45 = vmul.f32 %v4389_v4, %v11768_v46  ;;  %v4529_v30 = vmul.f32 %v4397_v55, %v11774_v50  ;;  %v4531_v37 = vmul.f32 %v4405_v61, %v11780_v57 }
 0x382   :  { %v4360_v53 = vmul.f32 0.0625, %v4354_v6  ;;  %v4524_v10 = vmul.f32 %v4377_v49, %v11759_v11  ;;  %v4526_v43 = vmul.f32 %v4385_v62, %v11765_v2  ;;  %v4528_v28 = vmul.f32 %v4393_v59, %v11771_v17 }
 0x383   :  { %v4617_v14 = vmul.f32 %v11988_v27, %v4525_v56  ;;  %v4619_v23 = vmul.f32 %v12013_v7, %v4527_v45  ;;  %v4621_v52 = vmul.f32 %v11991_v32, %v4529_v30  ;;  %v4623_v21 = vmul.f32 %v12017_v36, %v4531_v37 }
 0x384   :  { %v4364_v46 = vadd.f32 1e-05, %v4360_v53  ;;  %v4530_v50 = vmul.f32 %v4401_v29, %v11777_v60  ;;  %v4616_v6 = vmul.f32 %v12000_v19, %v4524_v10  ;;  %v12065_v11 = vmul.f32 %v12029_v48, %v4526_v43 }
 0x385   :  { %v4709_v2 = vadd.f32 %v11994_v25, %v4617_v14  ;;  %v4711_v17 = vadd.f32 %v12021_v41, %v4619_v23  ;;  %v4713_v57 = vadd.f32 %v11997_v54, %v4621_v52  ;;  %v4715_v45 = vadd.f32 %v12025_v12, %v4623_v21 }
 0x386   :  { %v12071_v56 = vpop.eup %9974  ;;  %9976 = vrsqrt.f32 %v4364_v46  ;;  %v12074_v37 = vmul.f32 %v12003_v0, %v4528_v28  ;;  %v12077_v60 = vmul.f32 %v12033_v40, %v4530_v50  ;;  %v12080_v43 = vadd.f32 %v12006_v63, %v4616_v6 }
 0x387   :  { %v4413_v10 = vrot.slane %v12071_v56, %v11730_v44  ;;  %v4421_v52 = vrot.slane %v12071_v56, %v11736_v42  ;;  %v4429_v14 = vrot.slane %v12071_v56, %v11742_v18  ;;  %v4752_v29 = vpack.c.bf16 %v4709_v2, %v4709_v2 }
 0x388   :  { %v4753_v53 = vpack.c.bf16 %v4711_v17, %v4711_v17  ;;  %v4754_v30 = vpack.c.bf16 %v4713_v57, %v4713_v57  ;;  %v4755_v28 = vpack.c.bf16 %v4715_v45, %v4715_v45  ;;  %v4409_v38 = vrot.slane %v12071_v56, %v11727_v58 }
 0x389   :  { %v4533_v55 = vmul.f32 %v4413_v10, %v11813_v9  ;;  %v4535_v61 = vmul.f32 %v4421_v52, %v11821_v16  ;;  %v4537_v49 = vmul.f32 %v4429_v14, %v11827_v3  ;;  %v4787_v62 = vunpack.c.l.b16 %v4752_v29 }
 0x38a   :  { %v4357_v4 = vpop.xlane.xlu0 %4356  ;;  %v4788_v23 = vunpack.c.l.b16 %v4753_v53  ;;  %v4789_v21 = vunpack.c.l.b16 %v4754_v30  ;;  %v4790_v46 = vunpack.c.l.b16 %v4755_v28  ;;  %v4417_v17 = vrot.slane %v12071_v56, %v11733_v34 }
 0x38b   :  { %v4361_v59 = vmul.f32 0.0625, %v4357_v4  ;;  %v4625_v50 = vmul.f32 %v11988_v27, %v4533_v55  ;;  %v4627_v6 = vmul.f32 %v12013_v7, %v4535_v61  ;;  %v4629_v2 = vmul.f32 %v11991_v32, %v4537_v49 }
 0x38c   :  { %v4801_v57 = vrot.slane %v4788_v23, 7  ;;  %v4804_v16 = vrot.slane %v4789_v21, 6  ;;  %v4807_v45 = vrot.slane %v4790_v46, 5  ;;  %v4425_v14 = vrot.slane %v12071_v56, %v11739_v13 }
 0x38d   :  { %v4365_v9 = vadd.f32 1e-05, %v4361_v59  ;;  %v4717_v3 = vadd.f32 %v11994_v25, %v4625_v50  ;;  %v4719_v10 = vadd.f32 %v12021_v41, %v4627_v6  ;;  %v4721_v52 = vadd.f32 %v11997_v54, %v4629_v2 }
 0x38e   :  { %v4803_v29 = vsel %vm4802_vm13, %v4801_v57, %v4787_v62  ;;  %v4532_v53 = vmul.f32 %v4409_v38, %v11810_v1  ;;  %v4534_v30 = vmul.f32 %v4417_v17, %v11816_v15  ;;  %v12109_v23 = vmul.f32 %v4425_v14, %v11824_v51 }
 0x38f   :  { %9978 = vrsqrt.f32 %v4365_v9  ;;  %v4756_v28 = vpack.c.bf16 %v4717_v3, %v4717_v3  ;;  %v4757_v4 = vpack.c.bf16 %v4719_v10, %v4719_v10  ;;  %v4758_v55 = vpack.c.bf16 %v4721_v52, %v4721_v52 }
 0x390   :  { %v4806_v61 = vsel %vm4805_vm14, %v4804_v16, %v4803_v29  ;;  %v9977_v49 = vpop.eup %9976  ;;  %v12112_v21 = vmul.f32 %v12000_v19, %v4532_v53  ;;  %v12115_v62 = vmul.f32 %v12029_v48, %v4534_v30 }
 0x391   :  { %v4809_v59 = vsel %vm4808_vm15, %v4807_v45, %v4806_v61  ;;  %v4441_v1 = vrot.slane %v9977_v49, %v11730_v44  ;;  %v4449_v15 = vrot.slane %v9977_v49, %v11736_v42  ;;  %v4457_v38 = vrot.slane %v9977_v49, %v11742_v18 }
 0x392   :  { %v4465_v46 = vrot.slane %v9977_v49, %v11748_v22  ;;  %v4791_v50 = vunpack.c.l.b16 %v4756_v28  ;;  %v4792_v6 = vunpack.c.l.b16 %v4757_v4  ;;  %v4793_v2 = vunpack.c.l.b16 %v4758_v55 }
 0x393   :  { %v4437_v51 = vrot.slane %v9977_v49, %v11727_v58  ;;  %v4540_v17 = vmul.f32 %v4441_v1, %v11865_v24  ;;  %v4542_v9 = vmul.f32 %v4449_v15, %v11871_v26  ;;  %v4544_v57 = vmul.f32 %v4457_v38, %v11878_v8 }
 0x394   :  { %v4546_v16 = vmul.f32 %v4465_v46, %v11884_v39  ;;  %v4810_v45 = vrot.slane %v4791_v50, 4  ;;  %v4813_v3 = vrot.slane %v4792_v6, 3  ;;  %v4816_v10 = vrot.slane %v4793_v2, 2 }
 0x395   :  { %v4445_v52 = vrot.slane %v9977_v49, %v11733_v34  ;;  %v4632_v22 = vmul.f32 %v11988_v27, %v4540_v17  ;;  %v4634_v14 = vmul.f32 %v12013_v7, %v4542_v9  ;;  %v4636_v29 = vmul.f32 %v11991_v32, %v4544_v57 }
 0x396   :  { %v4638_v24 = vmul.f32 %v12017_v36, %v4546_v16  ;;  %v4812_v26 = vsel %vm4811_vm0, %v4810_v45, %v4809_v59  ;;  %v4453_v8 = vrot.slane %v9977_v49, %v11739_v13  ;;  %v4461_v39 = vrot.slane %v9977_v49, %v11745_v47 }
 0x397   :  { %v4539_v53 = vmul.f32 %v4437_v51, %v11862_v20  ;;  %v4724_v30 = vadd.f32 %v11994_v25, %v4632_v22  ;;  %v4726_v28 = vadd.f32 %v12021_v41, %v4634_v14  ;;  %v4728_v4 = vadd.f32 %v11997_v54, %v4636_v29 }
 0x398   :  { %v4730_v55 = vadd.f32 %v12025_v12, %v4638_v24  ;;  %v4815_v36 = vsel %vm4814_vm1, %v4813_v3, %v4812_v26  ;;  %v4541_v59 = vmul.f32 %v4445_v52, %v11868_v35  ;;  %v4543_v1 = vmul.f32 %v4453_v8, %v11874_v31  ;;  %v13356_v31 = vld [vmem:[#allocation17_spill] sm:$0xff] }
 0x399   :  { %v12139_v61 = vpop.eup %9978  ;;  %v4545_v49 = vmul.f32 %v4461_v39, %v11881_v33  ;;  %v4759_v12 = vpack.c.bf16 %v4724_v30, %v4724_v30  ;;  %v4760_v46 = vpack.c.bf16 %v4726_v28, %v4726_v28  ;;  %v4761_v50 = vpack.c.bf16 %v4728_v4, %v4728_v4  ;;  %v13357_v33 = vld [vmem:[#allocation9_spill] sm:$0xff]  ;;  %v13359_v4 = vld [vmem:[#allocation7_spill] sm:$0xff] }
 0x39a   :  { %v4473_v20 = vrot.slane %v12139_v61, %v11730_v44  ;;  %v4481_v15 = vrot.slane %v12139_v61, %v11736_v42  ;;  %v4489_v38 = vrot.slane %v12139_v61, %v11742_v18  ;;  %v4762_v6 = vpack.c.bf16 %v4730_v55, %v4730_v55 }
 0x39b   :  { %v4818_v2 = vsel %vm4817_vm2, %v4816_v10, %v4815_v36  ;;  %v4794_v9 = vunpack.c.l.b16 %v4759_v12  ;;  %v4795_v57 = vunpack.c.l.b16 %v4760_v46  ;;  %v4796_v16 = vunpack.c.l.b16 %v4761_v50  ;;  %v13360_v36 = vld [vmem:[#allocation8_spill] sm:$0xff] }
 0x39c   :  { %v4548_v35 = vmul.f32 %v4473_v20, %v11926_v5  ;;  %v4550_v51 = vmul.f32 %v4481_v15, %v13356_v31  ;;  %v4552_v17 = vmul.f32 %v4489_v38, %v13357_v33  ;;  %v4797_v45 = vunpack.c.l.b16 %v4762_v6 }
 0x39d   :  { %v4469_v3 = vrot.slane %v12139_v61, %v11727_v58  ;;  %v4819_v10 = vrot.slane %v4794_v9, 1  ;;  %v4822_v29 = vrot.slane %v4796_v16, 7  ;;  %v4477_v24 = vrot.slane %v12139_v61, %v11733_v34  ;;  %v13361_v9 = vld [vmem:[#allocation14_spill] sm:$0xff] }
 0x39e   :  { %v4640_v52 = vmul.f32 %v11988_v27, %v4548_v35  ;;  %v4642_v22 = vmul.f32 %v12013_v7, %v4550_v51  ;;  %v4644_v14 = vmul.f32 %v11991_v32, %v4552_v17  ;;  %v4824_v5 = vrot.slane %v4797_v45, 6  ;;  %v13358_v32 = vld [vmem:[#allocation5_spill] sm:$0xff]  ;;  %v13363_v45 = vld [vmem:[#allocation16_spill] sm:$0xff] }
 0x39f   :  { %v4485_v26 = vrot.slane %v12139_v61, %v11739_v13  ;;  %v4821_v27 = vsel %vm4820_vm3, %v4819_v10, %v4818_v2  ;;  %v4823_v7 = vsel %vm4802_vm13, %v4822_v29, %v4795_v57  ;;  %v4547_v28 = vmul.f32 %v4469_v3, %v13358_v32  ;;  %v9944_v10 = vld [vmem:[%s13350_s11] sm:$0xff]  }
 0x3a0   :  { %v4732_v8 = vadd.f32 %v11994_v25, %v4640_v52  ;;  %v4734_v39 = vadd.f32 %v12021_v41, %v4642_v22  ;;  %v4736_v30 = vadd.f32 %v11997_v54, %v4644_v14  ;;  %v4549_v55 = vmul.f32 %v4477_v24, %v13359_v4 }
 0x3a1   :  { %v4551_v20 = vmul.f32 %v4485_v26, %v13360_v36  ;;  %v4825_v46 = vsel %vm4805_vm14, %v4824_v5, %v4823_v7  ;;  %v4628_v25 = vmul.f32 %v12003_v0, %v12109_v23  ;;  %v4631_v54 = vmul.f32 %v12000_v19, %v4539_v53 }
 0x3a2   :  { %v4763_v15 = vpack.c.bf16 %v4732_v8, %v4732_v8  ;;  %v4764_v38 = vpack.c.bf16 %v4734_v39, %v4734_v39  ;;  %v4765_v12 = vpack.c.bf16 %v4736_v30, %v4736_v30  ;;  %v4633_v41 = vmul.f32 %v12029_v48, %v4541_v59  ;;  %v13362_v59 = vld [vmem:[#allocation15_spill] sm:$0xff] }
 0x3a3   :  { %v4635_v50 = vmul.f32 %v12003_v0, %v4543_v1  ;;  %v4637_v31 = vmul.f32 %v12033_v40, %v4545_v49  ;;  %v4639_v51 = vmul.f32 %v12000_v19, %v4547_v28  ;;  %v4641_v33 = vmul.f32 %v12029_v48, %v4549_v55 }
 0x3a4   :  { %v4798_v6 = vunpack.c.l.b16 %v4763_v15  ;;  %v4799_v2 = vunpack.c.l.b16 %v4764_v38  ;;  %v4800_v35 = vunpack.c.l.b16 %v4765_v12  ;;  %v4643_v17 = vmul.f32 %v12003_v0, %v4551_v20 }
 0x3a5   :  { %v4710_v23 = vadd.f32 %v13361_v9, %v12065_v11  ;;  %v4712_v1 = vadd.f32 %v13362_v59, %v12074_v37  ;;  %v4714_v3 = vadd.f32 %v13363_v45, %v12077_v60  ;;  %v4716_v49 = vadd.f32 %v12006_v63, %v12112_v21 }
 0x3a6   :  { %v4826_v57 = vrot.slane %v4798_v6, 5  ;;  %v4828_v53 = vrot.slane %v4799_v2, 4  ;;  %v4830_v16 = vrot.slane %v4800_v35, 3  ;;  %v4718_v19 = vadd.f32 %v13361_v9, %v12115_v62 }
 0x3a7   :  { %v4720_v0 = vadd.f32 %v13362_v59, %v4628_v25  ;;  %v4723_v11 = vadd.f32 %v12006_v63, %v4631_v54  ;;  %v4725_v52 = vadd.f32 %v13361_v9, %v4633_v41  ;;  %v4727_v22 = vadd.f32 %v13362_v59, %v4635_v50 }
 0x3a8   :  { %v4827_v48 = vsel %vm4808_vm15, %v4826_v57, %v4825_v46  ;;  %v4729_v60 = vadd.f32 %v13363_v45, %v4637_v31  ;;  %v4731_v14 = vadd.f32 %v12006_v63, %v4639_v51  ;;  %v4733_v21 = vadd.f32 %v13361_v9, %v4641_v33 }
 0x3a9   :  { %v4829_v37 = vsel %vm4811_vm0, %v4828_v53, %v4827_v48  ;;  %v4735_v29 = vadd.f32 %v13362_v59, %v4643_v17  ;;  %v4738_v5 = vpack.c.bf16 %v12080_v43, %v12080_v43  ;;  %v4739_v24 = vpack.c.bf16 %v4710_v23, %v4710_v23 }
 0x3aa   :  { %v4831_v62 = vsel %vm4814_vm1, %v4830_v16, %v4829_v37  ;;  %v4740_v8 = vpack.c.bf16 %v4712_v1, %v4712_v1  ;;  %v4741_v39 = vpack.c.bf16 %v4714_v3, %v4714_v3  ;;  %v4742_v30 = vpack.c.bf16 %v4716_v49, %v4716_v49 }
 0x3ab   :  { %v4832_v26 = vpack.c.b16 %v4831_v62, %v4821_v27  ;;  %v4743_v7 = vpack.c.bf16 %v4718_v19, %v4718_v19  ;;  %v4744_v63 = vpack.c.bf16 %v4720_v0, %v4720_v0  ;;  %v4745_v32 = vpack.c.bf16 %v4723_v11, %v4723_v11 }
 0x3ac   :  { %v4746_v28 = vpack.c.bf16 %v4725_v52, %v4725_v52  ;;  %v4747_v4 = vpack.c.bf16 %v4727_v22, %v4727_v22  ;;  %v4748_v55 = vpack.c.bf16 %v4729_v60, %v4729_v60  ;;  %v4749_v36 = vpack.c.bf16 %v4731_v14, %v4731_v14 }
 0x3ad   :  { %9813 = vmatmul.mubr.msk.bf16.vlgmr.msra.gmra.mrb[0].mxu1 %vm3885_vm10, %v4832_v26  ;;  %v4750_v20 = vpack.c.bf16 %v4733_v21, %v4733_v21  ;;  %v13364_v15 = vmov 0.0   ;;  %v4751_v43 = vpack.c.bf16 %v4735_v29, %v4735_v29  ;;  %v4897_v38 = vunpack.c.l.b16 %v4738_v5  ;;  %v13365_v5 = vld [vmem:[#allocation23_spill] sm:$0xff] }
 0x3ae   :  { %9817 = vmatpush3.bf16.msra.mxu1 %v9944_v10  ;;  %9818 = vmatprep.mubr.msk.bf16.mxu1 %vm10059_vm12, %v13364_v15  ;;  %v4898_v27 = vunpack.c.l.b16 %v4739_v24  ;;  %v4899_v12 = vunpack.c.l.b16 %v4740_v8  ;;  %v4900_v46 = vunpack.c.l.b16 %v4741_v39  ;;  %v4901_v25 = vunpack.c.l.b16 %v4742_v30 }
 0x3af   :  { %9822 = vmatprep.subr.bf16.mxu1 %v13364_v15  ;;  %v4902_v54 = vunpack.c.l.b16 %v4743_v7  ;;  %v12212_v41 = vunpack.c.l.b16 %v4744_v63  ;;  %v4904_v50 = vunpack.c.l.b16 %v4745_v32  ;;  %v12214_v6 = vunpack.c.l.b16 %v4746_v28 }
 0x3b0   :  { %v4906_v2 = vunpack.c.l.b16 %v4747_v4  ;;  %v4907_v35 = vunpack.c.l.b16 %v4748_v55  ;;  %v4908_v31 = vunpack.c.l.b16 %v4749_v36  ;;  %v4909_v51 = vunpack.c.l.b16 %v4750_v20 }
 0x3b1   :  { %v12216_v33 = vunpack.c.l.b16 %v4751_v43  ;;  %v4911_v17 = vrot.slane %v4898_v27, 7  ;;  %v4913_v9 = vrot.slane %v4899_v12, 6  ;;  %v4915_v23 = vrot.slane %v4900_v46, 5 }
 0x3b2   :  { %v4917_v57 = vrot.slane %v4901_v25, 4  ;;  %v4919_v53 = vrot.slane %v4902_v54, 3  ;;  %v4921_v59 = vrot.slane %v12212_v41, 2  ;;  %v4923_v1 = vrot.slane %v4904_v50, 1 }
 0x3b3   :  { %v4912_v16 = vsel %vm4802_vm13, %v4911_v17, %v4897_v38  ;;  %v4925_v3 = vrot.slane %v4906_v2, 7  ;;  %v4927_v19 = vrot.slane %v4907_v35, 6  ;;  %v4929_v0 = vrot.slane %v4908_v31, 5 }
 0x3b4   :  { %v4914_v49 = vsel %vm4805_vm14, %v4913_v9, %v4912_v16  ;;  %v4931_v48 = vrot.slane %v4909_v51, 4  ;;  %v4933_v22 = vrot.slane %v12216_v33, 3  ;;  %v4433_v37 = vrot.slane %v12071_v56, %v11745_v47  ;;  %v13366_v56 = vld [vmem:[#allocation10_spill] sm:$0xff] }
 0x3b5   :  { %v4916_v11 = vsel %vm4808_vm15, %v4915_v23, %v4914_v49  ;;  %v4926_v52 = vsel %vm4802_vm13, %v4925_v3, %v12214_v6  ;;  %v4493_v21 = vrot.slane %v12139_v61, %v11745_v47  ;;  %v4993_v62 = vrot.slane %v4899_v12, 7  ;;  %v9945_v61 = vld [vmem:[%s13350_s11 + $0x10] sm:$0xff]  }
 0x3b6   :  { %v4918_v60 = vsel %vm4811_vm0, %v4917_v57, %v4916_v11  ;;  %v4928_v14 = vsel %vm4805_vm14, %v4927_v19, %v4926_v52  ;;  %v4538_v24 = vmul.f32 %v4433_v37, %v13365_v5  ;;  %v4995_v26 = vrot.slane %v4900_v46, 6 }
 0x3b7   :  { %v4920_v10 = vsel %vm4814_vm1, %v4919_v53, %v4918_v60  ;;  %v4930_v29 = vsel %vm4808_vm15, %v4929_v0, %v4928_v14  ;;  %v4553_v30 = vmul.f32 %v4493_v21, %v13366_v56  ;;  %v4994_v7 = vsel %vm4802_vm13, %v4993_v62, %v4898_v27  ;;  %v9643_v21 = vld [vmem:[%s13367_s29] ss:$0 sm:$0xff]  ;;  %s10060_s29 = smov 96  }
 0x3b8   :  { %v4922_v8 = vsel %vm4817_vm2, %v4921_v59, %v4920_v10  ;;  %v4932_v39 = vsel %vm4811_vm0, %v4931_v48, %v4930_v29  ;;  %v4630_v32 = vmul.f32 %v12033_v40, %v4538_v24  ;;  %v4997_v55 = vrot.slane %v4901_v25, 5 }
 0x3b9   :  { %v4924_v63 = vsel %vm4820_vm3, %v4923_v1, %v4922_v8  ;;  %v4934_v47 = vsel %vm4814_vm1, %v4933_v22, %v4932_v39  ;;  %v4645_v4 = vmul.f32 %v12033_v40, %v4553_v30  ;;  %v4999_v36 = vrot.slane %v4902_v54, 4 }
 0x3ba   :  { %v4935_v28 = vpack.c.b16 %v4934_v47, %v4924_v63  ;;  %v4722_v20 = vadd.f32 %v13363_v45, %v4630_v32  ;;  %v4996_v43 = vsel %vm4805_vm14, %v4995_v26, %v4994_v7  ;;  %v5007_v38 = vrot.slane %v4907_v35, 7  ;;  %v13368_v63 = vld [vmem:[#allocation4_spill] sm:$0xff] }
 0x3bb   :  { %v4737_v27 = vadd.f32 %v13363_v45, %v4645_v4  ;;  %v4998_v12 = vsel %vm4808_vm15, %v4997_v55, %v4996_v43  ;;  %v5009_v46 = vrot.slane %v4908_v31, 6  ;;  %v5011_v50 = vrot.slane %v4909_v51, 5 }
 0x3bc   :  { %9819 = vmatmul.mubr.msk.bf16.vlgmr.msra.gmra.mrb[4].mxu1 %vm3885_vm10, %v4935_v28  ;;  %v4766_v40 = vpack.c.bf16 %v4722_v20, %v4722_v20  ;;  %v5000_v25 = vsel %vm4811_vm0, %v4999_v36, %v4998_v12  ;;  %v5008_v54 = vsel %vm4802_vm13, %v5007_v38, %v4906_v2  ;;  %v5001_v35 = vrot.slane %v12212_v41, 3 }
 0x3bd   :  { %9823 = vmatpush3.bf16.msra.mxu1 %v9945_v61  ;;  %9824 = vmatprep.mubr.msk.bf16.mxu1 %vm10059_vm12, %v13364_v15  ;;  %v4767_v17 = vpack.c.bf16 %v4737_v27, %v4737_v27  ;;  %v5010_v9 = vsel %vm4805_vm14, %v5009_v46, %v5008_v54  ;;  %v5013_v51 = vrot.slane %v12216_v33, 4  ;;  %v5005_v2 = vrot.slane %v12214_v6, 1 }
 0x3be   :  { %9828 = vmatprep.subr.bf16.mxu1 %v13364_v15  ;;  %v4991_v45 = vunpack.c.l.b16 %v4766_v40  ;;  %v5012_v31 = vsel %vm4808_vm15, %v5011_v50, %v5010_v9  ;;  %v5002_v57 = vsel %vm4814_vm1, %v5001_v35, %v5000_v25 }
 0x3bf   :  { %v4992_v23 = vunpack.c.l.b16 %v4767_v17  ;;  %v5014_v16 = vsel %vm4811_vm0, %v5013_v51, %v5012_v31 }
 0x3c0   :  { %v5003_v53 = vrot.slane %v4991_v45, 2 }
 0x3c1   :  { %v5015_v59 = vrot.slane %v4992_v23, 3 }
 0x3c2   :  { %v5004_v41 = vsel %vm4817_vm2, %v5003_v53, %v5002_v57 }
 0x3c3   :  { %v5006_v1 = vsel %vm4820_vm3, %v5005_v2, %v5004_v41  ;;  %v5016_v3 = vsel %vm4814_vm1, %v5015_v59, %v5014_v16 }
 0x3c4   :  { %v5017_v49 = vpack.c.b16 %v5016_v3, %v5006_v1 }
 0x3c6   :  { %9825 = vmatmul.mubr.msk.bf16.vlgmr.msra.gmra.mrb[8].mxu1 %vm3885_vm10, %v5017_v49  ;;  %vm6980_vm10 = vcmask 523264  }
 0x3c7   :  { %9832 = vmatprep.mubr.msk.bf16.mxu1 %vm10059_vm12, %v13364_v15 }
 0x480   :  { %v4876_v33 = vpop.f32.mrb[0].mxu1 }
 0x481   :  { %v9814_v19 = vpop.f32.mrb[1].mxu1 }
 0x482   :  { %v4879_v0 = vpop.f32.mrb[2].mxu1 }
 0x483   :  { %v9815_v48 = vpop.f32.mrb[3].mxu1 }
 0x48f   :  { %v4979_v11 = vpop.f32.mrb[4].mxu1 }
 0x490   :  { %v4980_v52 = vadd.f32 %v4979_v11, %v4876_v33  ;;  %v9820_v6 = vpop.f32.mrb[5].mxu1 }
 0x491   :  { %v4982_v22 = vpop.f32.mrb[6].mxu1 }
 0x492   :  { %v4983_v37 = vadd.f32 %v4982_v22, %v4879_v0  ;;  %v9821_v60 = vpop.f32.mrb[7].mxu1 }
 0x499   :  { %v5061_v14 = vpop.f32.mrb[8].mxu1 }
 0x49a   :  { %v5068_v62 = vadd.f32 %v5061_v14, %v4980_v52  ;;  %v9826_v10 = vpop.f32.mrb[9].mxu1 }
 0x49b   :  { %v5064_v29 = vpop.f32.mrb[10].mxu1 }
 0x49c   :  { %v5077_v5 = vadd.f32 %v9643_v21, %v5068_v62  ;;  %v5069_v24 = vadd.f32 %v5064_v29, %v4983_v37  ;;  %v9827_v26 = vpop.f32.mrb[11].mxu1 }
 0x49e   :  { %vm5079_vm4 = vcmp.ge.f32.partialorder %v5077_v5, 0.0  ;;  %v5081_v8 = vmul.f32 0.01, %v5077_v5  ;;  %v5078_v39 = vadd.f32 %v9643_v21, %v5069_v24 }
 0x4a0   :  { %v5083_v56 = vsel %vm5079_vm4, %v5077_v5, %v5081_v8  ;;  %vm5080_vm5 = vcmp.ge.f32.partialorder %v5078_v39, 0.0  ;;  %v5082_v30 = vmul.f32 0.01, %v5078_v39 }
 0x4a1   :  { %v5087_v7 = vcombine.high %v5083_v56, %v5083_v56  ;;  %v5094_v47 = vrot.slane %v5083_v56, %v13368_v63 }
 0x4a2   :  { %v5084_v61 = vsel %vm5080_vm5, %v5078_v39, %v5082_v30 }
 0x4a3   :  { %v5101_v32 = vrot.slane %v5087_v7, %v13368_v63  ;;  %v5102_v28 = vcombine.high %v5094_v47, %v5094_v47  ;;  %v5110_v4 = vrot.slane %v5094_v47, %v13368_v63  ;;  %v5135_v55 = vcombine.high %v5084_v61, %v5084_v61 }
 0x4a4   :  { %v5142_v36 = vrot.slane %v5084_v61, %v13368_v63 }
 0x4a5   :  { %v5103_v20 = vcombine.high %v5101_v32, %v5101_v32  ;;  %v5124_v43 = vrot.slane %v5102_v28, %v13368_v63  ;;  %v5149_v38 = vrot.slane %v5135_v55, %v13368_v63  ;;  %v5132_v46 = vcombine.high %v5110_v4, %v5110_v4 }
 0x4a6   :  { %v5150_v27 = vcombine.high %v5142_v36, %v5142_v36  ;;  %v5157_v12 = vrot.slane %v5142_v36, %v13368_v63  ;;  %v5117_v50 = vrot.slane %v5101_v32, %v13368_v63 }
 0x4a7   :  { %v5131_v40 = vrot.slane %v5103_v20, %v13368_v63  ;;  %v5133_v25 = vcombine.high %v5124_v43, %v5124_v43  ;;  %v5186_v35 = vmax.f32 %v5110_v4, %v5124_v43  ;;  %v5164_v51 = vrot.slane %v5149_v38, %v13368_v63 }
 0x4a8   :  { %v5171_v54 = vrot.slane %v5150_v27, %v13368_v63  ;;  %v5172_v17 = vcombine.high %v5157_v12, %v5157_v12 }
 0x4a9   :  { %v5187_v9 = vmax.f32 %v5132_v46, %v5133_v25  ;;  %v5188_v45 = vmax.f32 %v5117_v50, %v5131_v40  ;;  %v5134_v31 = vcombine.high %v5131_v40, %v5131_v40 }
 0x4aa   :  { %v5173_v23 = vcombine.high %v5171_v54, %v5171_v54  ;;  %v5190_v16 = vmax.f32 %v5171_v54, %v5172_v17  ;;  %v9946_v17 = vld [vmem:[%s13369_s5] sm:$0xff]  }
 0x4ab   :  { %v5200_v57 = vcombine.low %v5186_v35, %v5187_v9  ;;  %v5189_v53 = vmax.f32 %v5134_v31, %v5157_v12  ;;  %v5214_v41 = vrot.slane %v5188_v45, %v13368_v63  ;;  %9829 = vmatpush3.bf16.msra.mxu1 %v9946_v17 }
 0x4ac   :  { %v5191_v2 = vmax.f32 %v5173_v23, %v5164_v51  ;;  %9830 = vmatprep.subr.bf16.mxu1 %v13364_v15  ;;  %v9644_v23 = vld [vmem:[%s13370_s9] ss:$0 sm:$0xff] }
 0x4ad   :  { %v5207_v59 = vrot.slane %v5200_v57, %v13368_v63  ;;  %v5223_v1 = vcombine.low %v5189_v53, %v5190_v16 }
 0x4ae   :  { %v5237_v33 = vrot.slane %v5191_v2, %v13368_v63 }
 0x4af   :  { %v5215_v3 = vcombine.low %v5207_v59, %v5214_v41  ;;  %v5230_v49 = vrot.slane %v5223_v1, %v13368_v63 }
 0x4b1   :  { %v5222_v19 = vrot.slane %v5215_v3, %v13368_v63  ;;  %v5238_v0 = vcombine.low %v5230_v49, %v5237_v33  ;;  %v9646_v3 = vld.sshfl [vmem:[%s13187_s12] sm:$0x13 pattern:$0x75316420] }
 0x4b3   :  { %v5249_v48 = vsel %vm5248_vm6, %v5222_v19, 0.0  ;;  %v5245_v11 = vrot.slane %v5238_v0, %v13368_v63 }
 0x4b4   :  { %5250 = vadd.xlane.f32.xlu1 %v5249_v48 }
 0x4b5   :  { %v5252_v52 = vsel %vm5248_vm6, %v5245_v11, 0.0  ;;  %v5489_v11 = vcombine.high %v9646_v3, %v9646_v3 }
 0x4b6   :  { %5253 = vadd.xlane.f32.xlu0 %v5252_v52 }
 0x541   :  { %v5251_v6 = vpop.xlane.xlu1 %5250 }
 0x542   :  { %v5256_v22 = vmul.f32 0.03125, %v5251_v6 }
 0x543   :  { %v5254_v37 = vpop.xlane.xlu0 %5253 }
 0x544   :  { %v5263_v60 = vrot.slane %v5256_v22, %v11727_v58  ;;  %v5267_v14 = vrot.slane %v5256_v22, %v11730_v44  ;;  %v5271_v21 = vrot.slane %v5256_v22, %v11733_v34  ;;  %v5257_v62 = vmul.f32 0.03125, %v5254_v37 }
 0x545   :  { %v5496_v37 = vrot.slane %v9646_v3, %v13368_v63 }
 0x546   :  { %v12293_v10 = vsub.f32 %v5186_v35, %v5263_v60  ;;  %v12295_v29 = vsub.f32 %v5187_v9, %v5267_v14  ;;  %v12297_v5 = vsub.f32 %v5188_v45, %v5271_v21  ;;  %v5275_v24 = vrot.slane %v5257_v62, %v11727_v58  ;;  %v9947_v35 = vld [vmem:[%s13369_s5 + $0x8] sm:$0xff]  }
 0x547   :  { %v5279_v26 = vrot.slane %v5257_v62, %v11730_v44  ;;  %v5283_v8 = vrot.slane %v5257_v62, %v11733_v34  ;;  %9831 = vmatpush3.bf16.msra.mxu1 %v9947_v35 }
 0x548   :  { %v5296_v39 = vmul.f32 %v12293_v10, %v12293_v10  ;;  %v5297_v56 = vmul.f32 %v12295_v29, %v12295_v29  ;;  %v12306_v30 = vsub.f32 %v5189_v53, %v5275_v24  ;;  %v5298_v7 = vmul.f32 %v12297_v5, %v12297_v5  ;;  %9836 = vmatprep.subr.bf16.mxu1 %v13364_v15 }
 0x549   :  { %v12310_v47 = vsub.f32 %v5190_v16, %v5279_v26  ;;  %v12312_v61 = vsub.f32 %v5191_v2, %v5283_v8  ;;  %v9645_v16 = vld [vmem:[%s13371_s6] ss:$0 sm:$0xff]  ;;  %v5417_v2 = vrot.slane %v9644_v23, %v13368_v63 }
 0x54a   :  { %v5299_v32 = vmul.f32 %v12306_v30, %v12306_v30  ;;  %v5308_v28 = vcombine.low %v5296_v39, %v5297_v56  ;;  %v5322_v20 = vrot.slane %v5298_v7, %v13368_v63  ;;  %v5454_v59 = vrot.slane %v9645_v16, %v13368_v63 }
 0x54b   :  { %v5300_v4 = vmul.f32 %v12310_v47, %v12310_v47  ;;  %v5301_v55 = vmul.f32 %v12312_v61, %v12312_v61  ;;  %v5425_v41 = vrot.slane %v5417_v2, %v13368_v63  ;;  %v5418_v1 = vcombine.high %v5417_v2, %v5417_v2 }
 0x54c   :  { %v5315_v36 = vrot.slane %v5308_v28, %v13368_v63  ;;  %v5455_v49 = vcombine.high %v5454_v59, %v5454_v59  ;;  %v5462_v33 = vrot.slane %v5454_v59, %v13368_v63  ;;  %v5503_v7 = vrot.slane %v5489_v11, %v13368_v63 }
 0x54d   :  { %v5331_v43 = vcombine.low %v5299_v32, %v5300_v4  ;;  %v5345_v12 = vrot.slane %v5301_v55, %v13368_v63  ;;  %v5432_v0 = vrot.slane %v5418_v1, %v13368_v63  ;;  %v5433_v48 = vcombine.high %v5425_v41, %v5425_v41 }
 0x54e   :  { %v5323_v38 = vcombine.low %v5315_v36, %v5322_v20  ;;  %v5469_v60 = vrot.slane %v5455_v49, %v13368_v63  ;;  %v5470_v26 = vcombine.high %v5462_v33, %v5462_v33  ;;  %v5504_v55 = vcombine.high %v5496_v37, %v5496_v37 }
 0x54f   :  { %v5338_v27 = vrot.slane %v5331_v43, %v13368_v63 }
 0x550   :  { %v5330_v46 = vrot.slane %v5323_v38, %v13368_v63 }
 0x551   :  { %v5346_v50 = vcombine.low %v5338_v27, %v5345_v12 }
 0x552   :  { %v5356_v40 = vsel %vm5248_vm6, %v5330_v46, 0.0 }
 0x553   :  { %5357 = vadd.xlane.f32.xlu1 %v5356_v40  ;;  %v5353_v25 = vrot.slane %v5346_v50, %v13368_v63 }
 0x555   :  { %v5359_v54 = vsel %vm5248_vm6, %v5353_v25, 0.0 }
 0x556   :  { %5360 = vadd.xlane.f32.xlu0 %v5359_v54 }
 0x5e0   :  { %v5358_v9 = vpop.xlane.xlu1 %5357 }
 0x5e1   :  { %v5362_v45 = vmul.f32 0.03125, %v5358_v9 }
 0x5e3   :  { %v5364_v31 = vadd.f32 1e-05, %v5362_v45  ;;  %v5361_v51 = vpop.xlane.xlu0 %5360 }
 0x5e4   :  { %v5363_v57 = vmul.f32 0.03125, %v5361_v51 }
 0x5e5   :  { %9980 = vrsqrt.f32 %v5364_v31 }
 0x5e6   :  { %v5365_v53 = vadd.f32 1e-05, %v5363_v57 }
 0x5e8   :  { %9982 = vrsqrt.f32 %v5365_v53 }
 0x5ef   :  { %v9981_v19 = vpop.eup %9980 }
 0x5f0   :  { %v5373_v52 = vrot.slane %v9981_v19, %v11727_v58  ;;  %v5377_v6 = vrot.slane %v9981_v19, %v11730_v44  ;;  %v5381_v22 = vrot.slane %v9981_v19, %v11733_v34 }
 0x5f2   :  { %v9983_v14 = vpop.eup %9982  ;;  %v5400_v21 = vmul.f32 %v5373_v52, %v12293_v10  ;;  %v5401_v62 = vmul.f32 %v5377_v6, %v12295_v29  ;;  %v5402_v24 = vmul.f32 %v5381_v22, %v12297_v5 }
 0x5f3   :  { %v5385_v8 = vrot.slane %v9983_v14, %v11727_v58  ;;  %v5389_v39 = vrot.slane %v9983_v14, %v11730_v44  ;;  %v5393_v56 = vrot.slane %v9983_v14, %v11733_v34 }
 0x5f4   :  { %v5437_v32 = vmul.f32 %v5425_v41, %v5400_v21  ;;  %v5438_v28 = vmul.f32 %v5432_v0, %v5401_v62  ;;  %v5439_v4 = vmul.f32 %v5433_v48, %v5402_v24 }
 0x5f5   :  { %v5403_v36 = vmul.f32 %v5385_v8, %v12306_v30  ;;  %v5404_v10 = vmul.f32 %v5389_v39, %v12310_v47  ;;  %v5405_v29 = vmul.f32 %v5393_v56, %v12312_v61 }
 0x5f6   :  { %v5474_v5 = vadd.f32 %v5462_v33, %v5437_v32  ;;  %v5475_v20 = vadd.f32 %v5469_v60, %v5438_v28  ;;  %v5476_v43 = vadd.f32 %v5470_v26, %v5439_v4 }
 0x5f7   :  { %v5440_v38 = vmul.f32 %v5425_v41, %v5403_v36  ;;  %v5441_v27 = vmul.f32 %v5432_v0, %v5404_v10  ;;  %v5442_v12 = vmul.f32 %v5433_v48, %v5405_v29  ;;  %v9948_v29 = vld [vmem:[%s13189_s13] sm:$0xff]  }
 0x5f8   :  { %v12365_v46 = vadd.f32 %v5496_v37, %v5474_v5  ;;  %v12367_v50 = vadd.f32 %v5503_v7, %v5475_v20  ;;  %v12369_v40 = vadd.f32 %v5504_v55, %v5476_v43  ;;  %v9949_v5 = vld [vmem:[%s13189_s13 + $0x8] sm:$0xff]  }
 0x5f9   :  { %v5477_v25 = vadd.f32 %v5462_v33, %v5440_v38  ;;  %v5478_v54 = vadd.f32 %v5469_v60, %v5441_v27  ;;  %v5479_v17 = vadd.f32 %v5470_v26, %v5442_v12 }
 0x5fa   :  { %v5518_v30 = vpack.c.bf16 %v12365_v46, %v12365_v46  ;;  %v5519_v47 = vpack.c.bf16 %v12367_v50, %v12367_v50  ;;  %v5520_v61 = vpack.c.bf16 %v12369_v40, %v12369_v40 }
 0x5fb   :  { %v12377_v35 = vadd.f32 %v5496_v37, %v5477_v25  ;;  %v12379_v9 = vadd.f32 %v5503_v7, %v5478_v54  ;;  %v12381_v45 = vadd.f32 %v5504_v55, %v5479_v17  ;;  %v9647_v37 = vld [vmem:[%s13188_s15] ss:$0 sm:$0xff] }
 0x5fc   :  { %v5542_v31 = vunpack.c.l.b16 %v5519_v47  ;;  %v5543_v51 = vunpack.c.l.b16 %v5520_v61  ;;  %v5541_v16 = vunpack.c.l.b16 %v5518_v30 }
 0x5fd   :  { %v5521_v23 = vpack.c.bf16 %v12377_v35, %v12377_v35  ;;  %v5522_v57 = vpack.c.bf16 %v12379_v9, %v12379_v9  ;;  %v5523_v53 = vpack.c.bf16 %v12381_v45, %v12381_v45 }
 0x5fe   :  { %v5547_v2 = vrot.slane %v5542_v31, 7  ;;  %v5549_v59 = vrot.slane %v5543_v51, 6 }
 0x5ff   :  { %v5544_v41 = vunpack.c.l.b16 %v5521_v23  ;;  %v5545_v1 = vunpack.c.l.b16 %v5522_v57  ;;  %v5546_v3 = vunpack.c.l.b16 %v5523_v53 }
 0x600   :  { %v5548_v49 = vsel %vm4802_vm13, %v5547_v2, %v5541_v16 }
 0x601   :  { %v5550_v33 = vsel %vm4805_vm14, %v5549_v59, %v5548_v49  ;;  %v5551_v19 = vrot.slane %v5544_v41, 5  ;;  %v5553_v0 = vrot.slane %v5545_v1, 4  ;;  %v5555_v11 = vrot.slane %v5546_v3, 3 }
 0x603   :  { %v5552_v48 = vsel %vm4808_vm15, %v5551_v19, %v5550_v33 }
 0x604   :  { %v5554_v52 = vsel %vm4811_vm0, %v5553_v0, %v5552_v48 }
 0x605   :  { %v5556_v6 = vsel %vm4814_vm1, %v5555_v11, %v5554_v52 }
 0x606   :  { %v5557_v22 = vpack.c.b16 %v5556_v6, %v5556_v6 }
 0x608   :  { %9833 = vmatmul.mubr.msk.bf16.vlgmr.msra.gmra.mrb[12].mxu1 %vm5570_vm7, %v5557_v22 }
 0x609   :  { %9840 = vmatprep.mubr.msk.bf16.mxu1 %vm10059_vm12, %v13364_v15  ;;  %9837 = vmatpush3.bf16.msra.mxu1 %v9948_v29 }
 0x60a   :  { %9838 = vmatprep.subr.bf16.mxu1 %v13364_v15 }
 0x60d   :  { %9839 = vmatpush3.bf16.msra.mxu1 %v9949_v5 }
 0x60e   :  { %9844 = vmatprep.subr.bf16.mxu1 %v13364_v15 }
 0x6db   :  { %v5608_v60 = vpop.f32.mrb[12].mxu1 }
 0x6dc   :  { %v5609_v14 = vadd.f32 %v9647_v37, %v5608_v60  ;;  %v9834_v21 = vpop.f32.mrb[13].mxu1 }
 0x6dd   :  { %v5611_v62 = vpop.f32.mrb[14].mxu1 }
 0x6de   :  { %v5615_v24 = vcombine.high %v5609_v14, %v5609_v14  ;;  %v5622_v26 = vrot.slane %v5609_v14, %v13368_v63  ;;  %v9835_v8 = vpop.f32.mrb[15].mxu1 }
 0x6df   :  { %v9950_v8 = vld [vmem:[%s13190_s16] sm:$0xff]  }
 0x6e0   :  { %v5630_v39 = vcombine.high %v5622_v26, %v5622_v26  ;;  %v5638_v56 = vrot.slane %v5622_v26, %v13368_v63  ;;  %v5629_v7 = vrot.slane %v5615_v24, %v13368_v63 }
 0x6e2   :  { %v5652_v32 = vrot.slane %v5630_v39, %v13368_v63  ;;  %5668 = vrot.lane.b32.xlu1 %v5638_v56, %s10060_s29  ;;  %v5660_v28 = vcombine.high %v5638_v56, %v5638_v56  ;;  %v5645_v4 = vrot.slane %v5629_v7, %v13368_v63  ;;  %v5631_v55 = vcombine.high %v5629_v7, %v5629_v7  ;;  %v9951_v39 = vld [vmem:[%s13190_s16 + $0x8] sm:$0xff]  }
 0x6e4   :  { %5670 = vrot.lane.b32.xlu0 %v5652_v32, %s10060_s29  ;;  %v5661_v36 = vcombine.high %v5652_v32, %v5652_v32  ;;  %v5659_v10 = vrot.slane %v5631_v55, %v13368_v63 }
 0x6e6   :  { %5672 = vrot.lane.b32.xlu1 %v5660_v28, %s10060_s29 }
 0x6e8   :  { %5676 = vrot.lane.b32.xlu0 %v5645_v4, %s10060_s29 }
 0x6ea   :  { %5674 = vrot.lane.b32.xlu1 %v5661_v36, %s10060_s29 }
 0x6ec   :  { %6169 = vrot.lane.b32.xlu0 %v5638_v56, %s10061_s1 }
 0x6ee   :  { %5678 = vrot.lane.b32.xlu1 %v5659_v10, %s10060_s29 }
 0x6f0   :  { %6175 = vrot.lane.b32.xlu0 %v5661_v36, %s10061_s1 }
 0x6f2   :  { %6171 = vrot.lane.b32.xlu1 %v5652_v32, %s10061_s1 }
 0x6f4   :  { %6173 = vrot.lane.b32.xlu0 %v5660_v28, %s10061_s1 }
 0x6f6   :  { %6177 = vrot.lane.b32.xlu1 %v5645_v4, %s10061_s1 }
 0x6fa   :  { %6179 = vrot.lane.b32.xlu1 %v5659_v10, %s10061_s1 }
 0x754   :  { %v5669_v20 = vpop.permute.xlu1 %5668 }
 0x755   :  { %v5686_v54 = vmul.f32 %v5669_v20, %v5638_v56  ;;  %v5692_v31 = vmul.f32 %v5669_v20, %v5661_v36 }
 0x756   :  { %v5671_v43 = vpop.permute.xlu0 %5670 }
 0x757   :  { %v5687_v27 = vmul.f32 %v5671_v43, %v5652_v32  ;;  %v5693_v12 = vmul.f32 %v5671_v43, %v5645_v4 }
 0x758   :  { %v5673_v38 = vpop.permute.xlu1 %5672 }
 0x759   :  { %v5688_v17 = vmul.f32 %v5673_v38, %v5660_v28  ;;  %v5710_v51 = vcombine.low %v5686_v54, %v5687_v27  ;;  %v5694_v23 = vmul.f32 %v5673_v38, %v5659_v10  ;;  %v5713_v53 = vcombine.low %v5692_v31, %v5693_v12 }
 0x75a   :  { %v5677_v30 = vpop.permute.xlu0 %5676 }
 0x75b   :  { %v5690_v16 = vmul.f32 %v5677_v30, %v5652_v32  ;;  %v5696_v2 = vmul.f32 %v5677_v30, %v5645_v4  ;;  %v5720_v33 = vrot.slane %v5710_v51, %v13368_v63  ;;  %v5741_v48 = vrot.slane %v5713_v53, %v13368_v63 }
 0x75c   :  { %v5675_v25 = vpop.permute.xlu1 %5674  ;;  %v13372_v4 = vlaneseq }
 0x75d   :  { %v5689_v47 = vmul.f32 %v5675_v25, %v5638_v56  ;;  %v5695_v61 = vmul.f32 %v5675_v25, %v5661_v36 }
 0x75e   :  { %vm12448_vm8 = vcmp.lt.s32.totalorder %v13372_v4, 32 }
 0x75f   :  { %v5711_v57 = vcombine.low %v5688_v17, %v5689_v47  ;;  %v5759_v1 = vcombine.low %v5694_v23, %v5695_v61 }
 0x760   :  { %v5679_v59 = vpop.permute.xlu1 %5678 }
 0x761   :  { %v5727_v41 = vrot.slane %v5711_v57, %v13368_v63  ;;  %v5691_v3 = vmul.f32 %v5679_v59, %v5660_v28  ;;  %v5697_v49 = vmul.f32 %v5679_v59, %v5659_v10  ;;  %v5767_v52 = vrot.slane %v5759_v1, %v13368_v63 }
 0x763   :  { %v5712_v19 = vcombine.low %v5690_v16, %v5691_v3  ;;  %v5760_v0 = vcombine.low %v5696_v2, %v5697_v49  ;;  %v5742_v11 = vcombine.low %v5720_v33, %v5727_v41 }
 0x765   :  { %v5734_v6 = vrot.slane %v5712_v19, %v13368_v63  ;;  %v5774_v22 = vrot.slane %v5760_v0, %v13368_v63  ;;  %v5750_v14 = vrot.slane %v5742_v11, %v13368_v63 }
 0x767   :  { %v5743_v37 = vcombine.low %v5734_v6, %v5741_v48  ;;  %v5775_v60 = vcombine.low %v5767_v52, %v5774_v22 }
 0x769   :  { %v5757_v21 = vrot.slane %v5743_v37, %v13368_v63  ;;  %v5782_v24 = vrot.slane %v5775_v60, %v13368_v63 }
 0x76b   :  { %v5758_v62 = vcombine.low %v5750_v14, %v5757_v21 }
 0x76d   :  { %v5785_v26 = vpack.c.bf16 %v5782_v24, %v5758_v62 }
 0x76f   :  { %9841 = vmatmul.mubr.msk.bf16.vlgmr.msra.gmra.mrb[16].mxu1 %vm5570_vm7, %v5785_v26 }
 0x770   :  { %9848 = vmatprep.mubr.msk.bf16.mxu1 %vm10059_vm12, %v13364_v15  ;;  %9845 = vmatpush3.bf16.msra.mxu1 %v9950_v8 }
 0x771   :  { %9846 = vmatprep.subr.bf16.mxu1 %v13364_v15 }
 0x774   :  { %9847 = vmatpush3.bf16.msra.mxu1 %v9951_v39 }
 0x775   :  { %9860 = vmatprep.subr.bf16.mxu1 %v13364_v15 }
 0x842   :  { %v5835_v56 = vpop.f32.mrb[16].mxu1 }
 0x843   :  { %v5844_v7 = vcombine.high %v5835_v56, %v5835_v56  ;;  %v5851_v32 = vrot.slane %v5835_v56, %v13368_v63  ;;  %v9842_v28 = vpop.f32.mrb[17].mxu1 }
 0x844   :  { %v5838_v36 = vpop.f32.mrb[18].mxu1 }
 0x845   :  { %v5858_v10 = vrot.slane %v5844_v7, %v13368_v63  ;;  %v5859_v29 = vcombine.high %v5851_v32, %v5851_v32  ;;  %v5867_v5 = vrot.slane %v5851_v32, %v13368_v63  ;;  %v5899_v20 = vrot.slane %v5838_v36, %v13368_v63  ;;  %v9843_v43 = vpop.f32.mrb[19].mxu1 }
 0x847   :  { %v5860_v38 = vcombine.high %v5858_v10, %v5858_v10  ;;  %v5874_v27 = vrot.slane %v5858_v10, %v13368_v63  ;;  %v5881_v12 = vrot.slane %v5859_v29, %v13368_v63  ;;  %v5889_v25 = vcombine.high %v5867_v5, %v5867_v5 }
 0x848   :  { %v5933_v54 = vsel %vm12448_vm8, %v5867_v5, -inf  ;;  %v5900_v17 = vcombine.high %v5899_v20, %v5899_v20  ;;  %v5907_v30 = vrot.slane %v5899_v20, %v13368_v63 }
 0x849   :  { %v5888_v47 = vrot.slane %v5860_v38, %v13368_v63  ;;  %v5890_v61 = vcombine.high %v5874_v27, %v5874_v27  ;;  %v5891_v31 = vcombine.high %v5881_v12, %v5881_v12  ;;  %v5936_v51 = vsel %vm12448_vm8, %v5881_v12, -inf }
 0x84a   :  { %v5937_v23 = vsel %vm12448_vm8, %v5874_v27, -inf  ;;  %v5939_v57 = vsel %vm12448_vm8, %v5889_v25, -inf  ;;  %v5914_v53 = vrot.slane %v5900_v17, %v13368_v63  ;;  %v5915_v16 = vcombine.high %v5907_v30, %v5907_v30 }
 0x84b   :  { %v5892_v2 = vcombine.high %v5888_v47, %v5888_v47  ;;  %v5934_v59 = vsel %vm12448_vm8, %v5891_v31, -inf  ;;  %v5938_v41 = vmax.f32 %v5936_v51, %v5937_v23  ;;  %v5940_v1 = vsel %vm12448_vm8, %v5888_v47, -inf }
 0x84c   :  { %v5935_v3 = vmax.f32 %v5933_v54, %v5934_v59  ;;  %v5941_v49 = vmax.f32 %v5939_v57, %v5940_v1  ;;  %v5916_v33 = vcombine.high %v5914_v53, %v5914_v53  ;;  %v5942_v19 = vsel %vm12448_vm8, %v5890_v61, -inf }
 0x84d   :  { %v5952_v0 = vsub.f32 %v5881_v12, %v5938_v41  ;;  %v5955_v48 = vsub.f32 %v5874_v27, %v5938_v41  ;;  %v5943_v11 = vsel %vm12448_vm8, %v5914_v53, -inf  ;;  %v5945_v52 = vsel %vm12448_vm8, %v5892_v2, -inf }
 0x84e   :  { %v5951_v6 = vsub.f32 %v5867_v5, %v5935_v3  ;;  %v5953_v22 = vsub.f32 %v5889_v25, %v5941_v49  ;;  %v5954_v37 = vsub.f32 %v5891_v31, %v5935_v3  ;;  %v5956_v60 = vsub.f32 %v5888_v47, %v5941_v49 }
 0x84f   :  { %v5965_v14 = vmul.f32 1.442695, %v5952_v0  ;;  %v5971_v21 = vmul.f32 1.442695, %v5955_v48  ;;  %v5944_v62 = vmax.f32 %v5942_v19, %v5943_v11  ;;  %v5946_v24 = vsel %vm12448_vm8, %v5915_v16, -inf }
 0x850   :  { %v5963_v26 = vmul.f32 1.442695, %v5951_v6  ;;  %v5967_v8 = vmul.f32 1.442695, %v5953_v22  ;;  %v5969_v39 = vmul.f32 1.442695, %v5954_v37  ;;  %v5947_v56 = vmax.f32 %v5945_v52, %v5946_v24 }
 0x851   :  { %9984 = vpow2.f32 %v5965_v14  ;;  %v5973_v7 = vmul.f32 1.442695, %v5956_v60  ;;  %v5948_v32 = vsel %vm12448_vm8, %v5907_v30, -inf  ;;  %v5949_v28 = vsel %vm12448_vm8, %v5916_v33, -inf }
 0x852   :  { %9986 = vpow2.f32 %v5963_v26  ;;  %v5950_v4 = vmax.f32 %v5948_v32, %v5949_v28  ;;  %v5957_v36 = vsub.f32 %v5890_v61, %v5944_v62  ;;  %v5958_v10 = vsub.f32 %v5892_v2, %v5947_v56 }
 0x853   :  { %9988 = vpow2.f32 %v5967_v8  ;;  %v5960_v29 = vsub.f32 %v5914_v53, %v5944_v62  ;;  %v5961_v5 = vsub.f32 %v5915_v16, %v5947_v56 }
 0x854   :  { %9990 = vpow2.f32 %v5969_v39  ;;  %v5959_v20 = vsub.f32 %v5907_v30, %v5950_v4  ;;  %v5962_v43 = vsub.f32 %v5916_v33, %v5950_v4  ;;  %v5975_v38 = vmul.f32 1.442695, %v5957_v36 }
 0x855   :  { %9992 = vpow2.f32 %v5971_v21  ;;  %v5977_v27 = vmul.f32 1.442695, %v5958_v10  ;;  %v5981_v25 = vmul.f32 1.442695, %v5960_v29  ;;  %v5983_v54 = vmul.f32 1.442695, %v5961_v5  ;;  %v6170_v10 = vpop.permute.xlu0 %6169  ;;  %v6172_v29 = vpop.permute.xlu1 %6171 }
 0x856   :  { %9994 = vpow2.f32 %v5973_v7  ;;  %v5979_v12 = vmul.f32 1.442695, %v5959_v20  ;;  %v5985_v17 = vmul.f32 1.442695, %v5962_v43 }
 0x857   :  { %9996 = vpow2.f32 %v5975_v38 }
 0x858   :  { %9998 = vpow2.f32 %v5977_v27 }
 0x859   :  { %10000 = vpow2.f32 %v5979_v12  ;;  %v6176_v43 = vpop.permute.xlu0 %6175  ;;  %v6178_v38 = vpop.permute.xlu1 %6177 }
 0x85a   :  { %10002 = vpow2.f32 %v5981_v25 }
 0x85b   :  { %v9985_v47 = vpop.eup %9984  ;;  %10004 = vpow2.f32 %v5983_v54 }
 0x85c   :  { %v9987_v61 = vpop.eup %9986  ;;  %10006 = vpow2.f32 %v5985_v17 }
 0x85d   :  { %v9989_v31 = vpop.eup %9988  ;;  %v5999_v51 = vcombine.low %v9987_v61, %v9985_v47 }
 0x85e   :  { %v9991_v30 = vpop.eup %9990  ;;  %v6013_v53 = vrot.slane %v9989_v31, %v13368_v63 }
 0x85f   :  { %v9993_v23 = vpop.eup %9992  ;;  %v6006_v57 = vrot.slane %v5999_v51, %v13368_v63 }
 0x860   :  { %v9995_v16 = vpop.eup %9994  ;;  %v6022_v2 = vcombine.low %v9991_v30, %v9993_v23 }
 0x861   :  { %v9997_v59 = vpop.eup %9996  ;;  %v6014_v41 = vcombine.low %v6006_v57, %v6013_v53  ;;  %v6036_v49 = vrot.slane %v9995_v16, %v13368_v63 }
 0x862   :  { %v12486_v1 = vpop.eup %9998  ;;  %v6029_v3 = vrot.slane %v6022_v2, %v13368_v63 }
 0x863   :  { %v12490_v33 = vpop.eup %10000  ;;  %v6021_v19 = vrot.slane %v6014_v41, %v13368_v63  ;;  %v6045_v0 = vcombine.low %v9997_v59, %v12486_v1 }
 0x864   :  { %v10003_v48 = vpop.eup %10002  ;;  %v6037_v11 = vcombine.low %v6029_v3, %v6036_v49  ;;  %v6059_v22 = vrot.slane %v12490_v33, %v13368_v63  ;;  %v6174_v49 = vpop.permute.xlu0 %6173 }
 0x865   :  { %v10005_v52 = vpop.eup %10004  ;;  %v6052_v6 = vrot.slane %v6045_v0, %v13368_v63  ;;  %v6095_v14 = vsel %vm5248_vm6, %v6021_v19, 0.0  ;;  %v6180_v19 = vpop.permute.xlu1 %6179 }
 0x866   :  { %v10007_v37 = vpop.eup %10006  ;;  %v6044_v60 = vrot.slane %v6037_v11, %v13368_v63  ;;  %v6068_v21 = vcombine.low %v10003_v48, %v10005_v52 }
 0x867   :  { %v6060_v62 = vcombine.low %v6052_v6, %v6059_v22  ;;  %v6082_v8 = vrot.slane %v10007_v37, %v13368_v63 }
 0x868   :  { %v6096_v24 = vsel %vm5248_vm6, %v6044_v60, 0.0  ;;  %v6075_v26 = vrot.slane %v6068_v21, %v13368_v63 }
 0x869   :  { %v6097_v39 = vadd.f32 %v6096_v24, %v6095_v14  ;;  %v6067_v56 = vrot.slane %v6060_v62, %v13368_v63 }
 0x86a   :  { %v6083_v7 = vcombine.low %v6075_v26, %v6082_v8 }
 0x86b   :  { %10008 = vrcp.f32 %v6097_v39  ;;  %v6098_v28 = vsel %vm5248_vm6, %v6067_v56, 0.0 }
 0x86c   :  { %v6090_v32 = vrot.slane %v6083_v7, %v13368_v63 }
 0x86e   :  { %v6099_v4 = vsel %vm5248_vm6, %v6090_v32, 0.0 }
 0x86f   :  { %v6100_v36 = vadd.f32 %v6099_v4, %v6098_v28 }
 0x871   :  { %10010 = vrcp.f32 %v6100_v36 }
 0x875   :  { %v10009_v5 = vpop.eup %10008 }
 0x876   :  { %v6111_v20 = vrot.slane %v10009_v5, %v13368_v63 }
 0x878   :  { %v6112_v27 = vcombine.high %v6111_v20, %v6111_v20  ;;  %v6119_v12 = vrot.slane %v6111_v20, %v13368_v63 }
 0x87a   :  { %v6126_v25 = vrot.slane %v6112_v27, %v13368_v63  ;;  %v6127_v54 = vcombine.high %v6119_v12, %v6119_v12  ;;  %v6157_v17 = vmul.f32 %v9987_v61, %v6119_v12  ;;  %v6160_v51 = vmul.f32 %v9991_v30, %v6119_v12 }
 0x87b   :  { %v10011_v57 = vpop.eup %10010 }
 0x87c   :  { %v6158_v53 = vmul.f32 %v9985_v47, %v6126_v25  ;;  %v6159_v2 = vmul.f32 %v9989_v31, %v6127_v54  ;;  %v6161_v41 = vmul.f32 %v9993_v23, %v6126_v25  ;;  %v6162_v3 = vmul.f32 %v9995_v16, %v6127_v54 }
 0x87d   :  { %v6187_v0 = vmul.f32 %v6170_v10, %v6157_v17  ;;  %v6190_v11 = vmul.f32 %v6176_v43, %v6160_v51  ;;  %v6134_v6 = vrot.slane %v10011_v57, %v13368_v63 }
 0x87e   :  { %v6188_v22 = vmul.f32 %v6172_v29, %v6158_v53  ;;  %v6189_v60 = vmul.f32 %v6174_v49, %v6159_v2  ;;  %v6191_v14 = vmul.f32 %v6178_v38, %v6161_v41  ;;  %v6192_v21 = vmul.f32 %v6180_v19, %v6162_v3 }
 0x87f   :  { %v6135_v62 = vcombine.high %v6134_v6, %v6134_v6  ;;  %v6142_v24 = vrot.slane %v6134_v6, %v13368_v63 }
 0x880   :  { %v6211_v61 = vcombine.low %v6187_v0, %v6188_v22  ;;  %v6234_v30 = vcombine.low %v6190_v11, %v6191_v14  ;;  %v6225_v8 = vrot.slane %v6189_v60, %v13368_v63  ;;  %v6248_v56 = vrot.slane %v6192_v21, %v13368_v63 }
 0x881   :  { %v6149_v47 = vrot.slane %v6135_v62, %v13368_v63  ;;  %v6150_v31 = vcombine.high %v6142_v24, %v6142_v24  ;;  %v6163_v23 = vmul.f32 %v9997_v59, %v6142_v24  ;;  %v6166_v16 = vmul.f32 %v10003_v48, %v6142_v24 }
 0x882   :  { %v6218_v26 = vrot.slane %v6211_v61, %v13368_v63  ;;  %v6241_v39 = vrot.slane %v6234_v30, %v13368_v63 }
 0x883   :  { %v6164_v7 = vmul.f32 %v12486_v1, %v6149_v47  ;;  %v6165_v32 = vmul.f32 %v12490_v33, %v6150_v31  ;;  %v6167_v28 = vmul.f32 %v10005_v52, %v6149_v47  ;;  %v6168_v4 = vmul.f32 %v10007_v37, %v6150_v31 }
 0x884   :  { %v6226_v36 = vcombine.low %v6218_v26, %v6225_v8  ;;  %v6249_v5 = vcombine.low %v6241_v39, %v6248_v56  ;;  %v6193_v20 = vmul.f32 %v6170_v10, %v6163_v23  ;;  %v6196_v27 = vmul.f32 %v6176_v43, %v6166_v16 }
 0x885   :  { %v6194_v59 = vmul.f32 %v6172_v29, %v6164_v7  ;;  %v6195_v48 = vmul.f32 %v6174_v49, %v6165_v32  ;;  %v6197_v12 = vmul.f32 %v6178_v38, %v6167_v28  ;;  %v6198_v25 = vmul.f32 %v6180_v19, %v6168_v4  ;;  %v9654_v28 = vld [vmem:[%s13191_s17] ss:$0 sm:$0xff] }
 0x886   :  { %v6233_v54 = vrot.slane %v6226_v36, %v13368_v63  ;;  %v6256_v17 = vrot.slane %v6249_v5, %v13368_v63 }
 0x887   :  { %v6257_v51 = vcombine.low %v6193_v20, %v6194_v59  ;;  %v6280_v57 = vcombine.low %v6196_v27, %v6197_v12  ;;  %v6271_v1 = vrot.slane %v6195_v48, %v13368_v63  ;;  %v6294_v29 = vrot.slane %v6198_v25, %v13368_v63 }
 0x888   :  { %v6307_v33 = vsel %vm5248_vm6, %v6233_v54, 0.0  ;;  %v6308_v52 = vsel %vm5248_vm6, %v6256_v17, 0.0 }
 0x889   :  { %v6264_v37 = vrot.slane %v6257_v51, %v13368_v63  ;;  %v6287_v10 = vrot.slane %v6280_v57, %v13368_v63  ;;  %v6309_v43 = vadd.f32 %v6308_v52, %v6307_v33 }
 0x88b   :  { %v6272_v38 = vcombine.low %v6264_v37, %v6271_v1  ;;  %v6295_v53 = vcombine.low %v6287_v10, %v6294_v29  ;;  %v6321_v2 = vrot.slane %v6309_v43, %v13368_v63 }
 0x88d   :  { %v6279_v41 = vrot.slane %v6272_v38, %v13368_v63  ;;  %v6302_v3 = vrot.slane %v6295_v53, %v13368_v63  ;;  %v6322_v49 = vcombine.high %v6321_v2, %v6321_v2  ;;  %v6329_v19 = vrot.slane %v6321_v2, %v13368_v63 }
 0x88f   :  { %v6310_v0 = vsel %vm5248_vm6, %v6279_v41, 0.0  ;;  %v6311_v11 = vsel %vm5248_vm6, %v6302_v3, 0.0  ;;  %v6336_v6 = vrot.slane %v6322_v49, %v13368_v63  ;;  %v6337_v60 = vcombine.high %v6329_v19, %v6329_v19 }
 0x890   :  { %v6312_v22 = vadd.f32 %v6311_v11, %v6310_v0 }
 0x891   :  { %v6361_v21 = vcombine.low %v6329_v19, %v6336_v6 }
 0x892   :  { %v6344_v14 = vrot.slane %v6312_v22, %v13368_v63 }
 0x893   :  { %v6370_v31 = vrot.slane %v6361_v21, %v13368_v63 }
 0x894   :  { %v6345_v62 = vcombine.high %v6344_v14, %v6344_v14  ;;  %v6352_v24 = vrot.slane %v6344_v14, %v13368_v63 }
 0x896   :  { %v6359_v61 = vrot.slane %v6345_v62, %v13368_v63  ;;  %v6360_v30 = vcombine.high %v6352_v24, %v6352_v24  ;;  %v6362_v47 = vcombine.low %v6337_v60, %v6352_v24 }
 0x898   :  { %v6363_v23 = vcombine.low %v6359_v61, %v6360_v30  ;;  %v6377_v16 = vrot.slane %v6362_v47, %v13368_v63 }
 0x89a   :  { %v6384_v26 = vrot.slane %v6363_v23, %v13368_v63  ;;  %v6385_v8 = vcombine.low %v6370_v31, %v6377_v16 }
 0x89c   :  { %v6392_v39 = vrot.slane %v6385_v8, %v13368_v63  ;;  %v6399_v56 = vrot.slane %v6384_v26, %v13368_v63 }
 0x89e   :  { %v6400_v7 = vcombine.low %v6392_v39, %v6399_v56 }
 0x8a0   :  { %v6402_v32 = vpack.c.bf16 %v6400_v7, %v6400_v7 }
 0x8a2   :  { %9849 = vmatmul.mubr.msk.bf16.vlgmr.msra.gmra.mrb[20].mxu1 %vm5570_vm7, %v6402_v32 }
 0x8a3   :  { %9868 = vmatprep.mubr.msk.bf16.mxu1 %vm10059_vm12, %v13364_v15 }
 0x975   :  { %v6463_v4 = vpop.f32.mrb[20].mxu1 }
 0x976   :  { %v6464_v36 = vadd.f32 %v9654_v28, %v6463_v4  ;;  %v9850_v5 = vpop.f32.mrb[21].mxu1 }
 0x977   :  { %v6466_v20 = vpop.f32.mrb[22].mxu1 }
 0x978   :  { %v6470_v27 = vcombine.high %v6464_v36, %v6464_v36  ;;  %v6477_v59 = vrot.slane %v6464_v36, %v13368_v63  ;;  %v9851_v48 = vpop.f32.mrb[23].mxu1 }
 0x97a   :  { %v6484_v12 = vrot.slane %v6470_v27, %v13368_v63  ;;  %v6485_v25 = vcombine.high %v6477_v59, %v6477_v59  ;;  %v6493_v54 = vrot.slane %v6477_v59, %v13368_v63 }
 0x97c   :  { %v6486_v17 = vcombine.high %v6484_v12, %v6484_v12  ;;  %v6500_v51 = vrot.slane %v6484_v12, %v13368_v63  ;;  %v6507_v57 = vrot.slane %v6485_v25, %v13368_v63  ;;  %v6515_v1 = vcombine.high %v6493_v54, %v6493_v54 }
 0x97d   :  { %v6523_v37 = vadd.f32 %v6493_v54, %v12365_v46  ;;  %v9952_v54 = vld [vmem:[%s13192_s18] sm:$0xff]  }
 0x97e   :  { %v6514_v33 = vrot.slane %v6486_v17, %v13368_v63  ;;  %v6516_v52 = vcombine.high %v6507_v57, %v6507_v57  ;;  %v6524_v10 = vadd.f32 %v6507_v57, %v12367_v50  ;;  %v6525_v29 = vadd.f32 %v6515_v1, %v12369_v40  ;;  %9853 = vmatpush3.bf16.msra.mxu0 %v9952_v54  ;;  %v9953_v17 = vld [vmem:[%s13192_s18 + $0x8] sm:$0xff]  }
 0x97f   :  { %v6527_v38 = vadd.f32 %v6500_v51, %v12379_v9  ;;  %9854 = vmatprep.subr.bf16.mxu0 %v13364_v15  ;;  %v9954_v51 = vld [vmem:[%s13193_s20] sm:$0xff]   ;;  %v9955_v57 = vld [vmem:[%s13193_s20 + $0x8] sm:$0xff]  }
 0x980   :  { %v6526_v43 = vadd.f32 %v6516_v52, %v12377_v35  ;;  %v6537_v53 = vcombine.low %v6523_v37, %v6524_v10  ;;  %v6528_v2 = vadd.f32 %v6514_v33, %v12381_v45  ;;  %9861 = vmatpush3.bf16.msra.mxu1 %v9954_v51  ;;  %v9658_v33 = vld [vmem:[%s13194_s22] ss:$0 sm:$0xff] }
 0x981   :  { %9862 = vmatprep.subr.bf16.mxu1 %v13364_v15 }
 0x982   :  { %v6538_v41 = vcombine.low %v6525_v29, %v6526_v43  ;;  %v6539_v3 = vcombine.low %v6527_v38, %v6528_v2  ;;  %v6546_v49 = vrot.slane %v6537_v53, %v13368_v63  ;;  %9855 = vmatpush3.bf16.msra.mxu0 %v9953_v17 }
 0x983   :  { %9872 = vmatprep.subr.bf16.mxu0 %v13364_v15 }
 0x984   :  { %v6553_v19 = vrot.slane %v6538_v41, %v13368_v63  ;;  %v6560_v0 = vrot.slane %v6539_v3, %v13368_v63  ;;  %9863 = vmatpush3.bf16.msra.mxu1 %v9955_v57 }
 0x985   :  { %9864 = vmatprep.subr.bf16.mxu1 %v13364_v15 }
 0x986   :  { %v6561_v46 = vcombine.low %v6546_v49, %v6553_v19  ;;  %v6575_v40 = vrot.slane %v6560_v0, %v13368_v63 }
 0x988   :  { %v6568_v50 = vrot.slane %v6561_v46, %v13368_v63 }
 0x98a   :  { %v6576_v35 = vcombine.low %v6568_v50, %v6575_v40 }
 0x98c   :  { %v6579_v9 = vsel %vm6578_vm9, %v6576_v35, 0.0 }
 0x98d   :  { %6580 = vadd.xlane.f32.xlu0 %v6579_v9 }
 0xa1a   :  { %v6581_v11 = vpop.xlane.xlu0 %6580 }
 0xa1b   :  { %v6582_v45 = vmul.f32 0.03125, %v6581_v11 }
 0xa1d   :  { %v6587_v6 = vrot.slane %v6582_v45, %v11727_v58  ;;  %v6591_v22 = vrot.slane %v6582_v45, %v11730_v44  ;;  %v6595_v60 = vrot.slane %v6582_v45, %v11733_v34  ;;  %v6599_v14 = vrot.slane %v6582_v45, %v11736_v42 }
 0xa1e   :  { %v6603_v21 = vrot.slane %v6582_v45, %v11739_v13  ;;  %v6607_v62 = vrot.slane %v6582_v45, %v11742_v18 }
 0xa1f   :  { %v12571_v24 = vsub.f32 %v6523_v37, %v6587_v6  ;;  %v12573_v61 = vsub.f32 %v6524_v10, %v6591_v22  ;;  %v12575_v30 = vsub.f32 %v6525_v29, %v6595_v60  ;;  %v12577_v47 = vsub.f32 %v6526_v43, %v6599_v14  ;;  %v9659_v37 = vld [vmem:[%s13195_s23] ss:$0 sm:$0xff] }
 0xa20   :  { %v12579_v31 = vsub.f32 %v6527_v38, %v6603_v21  ;;  %v12581_v23 = vsub.f32 %v6528_v2, %v6607_v62  ;;  %v6721_v29 = vcombine.high %v9658_v33, %v9658_v33  ;;  %v6728_v43 = vrot.slane %v9658_v33, %v13368_v63 }
 0xa21   :  { %v6620_v16 = vmul.f32 %v12571_v24, %v12571_v24  ;;  %v6621_v26 = vmul.f32 %v12573_v61, %v12573_v61  ;;  %v6622_v8 = vmul.f32 %v12575_v30, %v12575_v30  ;;  %v6623_v39 = vmul.f32 %v12577_v47, %v12577_v47 }
 0xa22   :  { %v6624_v56 = vmul.f32 %v12579_v31, %v12579_v31  ;;  %v6625_v7 = vmul.f32 %v12581_v23, %v12581_v23  ;;  %v6792_v38 = vrot.slane %v9659_v37, %v13368_v63  ;;  %v6735_v53 = vrot.slane %v6721_v29, %v13368_v63 }
 0xa23   :  { %v6632_v32 = vcombine.low %v6620_v16, %v6621_v26  ;;  %v6633_v28 = vcombine.low %v6622_v8, %v6623_v39  ;;  %v6736_v2 = vcombine.high %v6728_v43, %v6728_v43  ;;  %v6785_v41 = vcombine.high %v9659_v37, %v9659_v37 }
 0xa24   :  { %v6634_v4 = vcombine.low %v6624_v56, %v6625_v7  ;;  %v6800_v3 = vcombine.high %v6792_v38, %v6792_v38  ;;  %v6737_v49 = vcombine.high %v6735_v53, %v6735_v53  ;;  %v6744_v19 = vrot.slane %v6728_v43, %v13368_v63 }
 0xa25   :  { %v6641_v36 = vrot.slane %v6632_v32, %v13368_v63  ;;  %v6648_v5 = vrot.slane %v6633_v28, %v13368_v63  ;;  %v6758_v0 = vrot.slane %v6736_v2, %v13368_v63  ;;  %v6799_v46 = vrot.slane %v6785_v41, %v13368_v63 }
 0xa26   :  { %v6655_v20 = vrot.slane %v6634_v4, %v13368_v63  ;;  %v6808_v50 = vrot.slane %v6792_v38, %v13368_v63  ;;  %v6822_v40 = vrot.slane %v6800_v3, %v13368_v63  ;;  %v6751_v35 = vrot.slane %v6735_v53, %v13368_v63 }
 0xa27   :  { %v6656_v27 = vcombine.low %v6641_v36, %v6648_v5  ;;  %v6765_v11 = vrot.slane %v6737_v49, %v13368_v63  ;;  %v6766_v45 = vcombine.high %v6744_v19, %v6744_v19  ;;  %v6767_v6 = vcombine.high %v6758_v0, %v6758_v0 }
 0xa28   :  { %v6670_v48 = vrot.slane %v6655_v20, %v13368_v63  ;;  %v6801_v22 = vcombine.high %v6799_v46, %v6799_v46  ;;  %v6830_v8 = vcombine.high %v6808_v50, %v6808_v50  ;;  %v6831_v39 = vcombine.high %v6822_v40, %v6822_v40 }
 0xa29   :  { %v6663_v59 = vrot.slane %v6656_v27, %v13368_v63  ;;  %v6815_v5 = vrot.slane %v6799_v46, %v13368_v63 }
 0xa2a   :  { %v6829_v20 = vrot.slane %v6801_v22, %v13368_v63 }
 0xa2b   :  { %v6671_v12 = vcombine.low %v6663_v59, %v6670_v48 }
 0xa2d   :  { %v6673_v25 = vsel %vm6578_vm9, %v6671_v12, 0.0 }
 0xa2e   :  { %6674 = vadd.xlane.f32.xlu1 %v6673_v25 }
 0xabb   :  { %v6675_v1 = vpop.xlane.xlu1 %6674 }
 0xabc   :  { %v6676_v52 = vmul.f32 0.03125, %v6675_v1 }
 0xabe   :  { %v6677_v10 = vadd.f32 1e-05, %v6676_v52 }
 0xac0   :  { %10012 = vrsqrt.f32 %v6677_v10 }
 0xaca   :  { %v10013_v9 = vpop.eup %10012 }
 0xacb   :  { %v6683_v60 = vrot.slane %v10013_v9, %v11727_v58  ;;  %v6687_v14 = vrot.slane %v10013_v9, %v11730_v44  ;;  %v6691_v21 = vrot.slane %v10013_v9, %v11733_v34  ;;  %v6695_v62 = vrot.slane %v10013_v9, %v11736_v42 }
 0xacc   :  { %v6699_v16 = vrot.slane %v10013_v9, %v11739_v13  ;;  %v6703_v26 = vrot.slane %v10013_v9, %v11742_v18 }
 0xacd   :  { %v6710_v56 = vmul.f32 %v6683_v60, %v12571_v24  ;;  %v6711_v7 = vmul.f32 %v6687_v14, %v12573_v61  ;;  %v6712_v32 = vmul.f32 %v6691_v21, %v12575_v30  ;;  %v6713_v28 = vmul.f32 %v6695_v62, %v12577_v47 }
 0xace   :  { %v6714_v4 = vmul.f32 %v6699_v16, %v12579_v31  ;;  %v6715_v36 = vmul.f32 %v6703_v26, %v12581_v23 }
 0xacf   :  { %v6774_v27 = vmul.f32 %v6744_v19, %v6710_v56  ;;  %v6775_v59 = vmul.f32 %v6758_v0, %v6711_v7  ;;  %v6776_v48 = vmul.f32 %v6766_v45, %v6712_v32  ;;  %v6777_v12 = vmul.f32 %v6767_v6, %v6713_v28  ;;  %v9957_v45 = vld [vmem:[%s13193_s20 + $0x18] sm:$0xff]   ;;  %v9660_v6 = vld [vmem:[%s13196_s19] ss:$0 sm:$0xff] }
 0xad0   :  { %v6778_v25 = vmul.f32 %v6751_v35, %v6714_v4  ;;  %v6779_v24 = vmul.f32 %v6765_v11, %v6715_v36  ;;  %v9956_v11 = vld [vmem:[%s13193_s20 + $0x10] sm:$0xff]  }
 0xad1   :  { %v12647_v54 = vadd.f32 %v6808_v50, %v6774_v27  ;;  %v12649_v61 = vadd.f32 %v6822_v40, %v6775_v59  ;;  %v12651_v30 = vadd.f32 %v6830_v8, %v6776_v48  ;;  %v12653_v47 = vadd.f32 %v6831_v39, %v6777_v12  ;;  %9865 = vmatpush3.bf16.msra.mxu1 %v9956_v11  ;;  %v9664_v8 = vld [vmem:[%s13197_s21] ss:$0 sm:$0xff] }
 0xad2   :  { %v12655_v31 = vadd.f32 %v6815_v5, %v6778_v25  ;;  %v12657_v23 = vadd.f32 %v6829_v20, %v6779_v24  ;;  %9866 = vmatprep.subr.bf16.mxu1 %v13364_v15 }
 0xad3   :  { %v6844_v17 = vpack.c.bf16 %v12647_v54, %v12647_v54  ;;  %v6845_v51 = vpack.c.bf16 %v12649_v61, %v12649_v61  ;;  %v6846_v57 = vpack.c.bf16 %v12651_v30, %v12651_v30  ;;  %v6847_v1 = vpack.c.bf16 %v12653_v47, %v12653_v47 }
 0xad4   :  { %v6848_v33 = vpack.c.bf16 %v12655_v31, %v12655_v31  ;;  %v6849_v52 = vpack.c.bf16 %v12657_v23, %v12657_v23 }
 0xad5   :  { %v6868_v37 = vunpack.c.l.b16 %v6845_v51  ;;  %v6869_v10 = vunpack.c.l.b16 %v6846_v57  ;;  %v6870_v29 = vunpack.c.l.b16 %v6847_v1  ;;  %v6867_v38 = vunpack.c.l.b16 %v6844_v17  ;;  %9867 = vmatpush3.bf16.msra.mxu1 %v9957_v45 }
 0xad6   :  { %v6871_v43 = vunpack.c.l.b16 %v6848_v33  ;;  %v6872_v53 = vunpack.c.l.b16 %v6849_v52  ;;  %9888 = vmatprep.subr.bf16.mxu1 %v13364_v15 }
 0xad7   :  { %v6873_v2 = vrot.slane %v6868_v37, 7  ;;  %v6875_v41 = vrot.slane %v6869_v10, 6  ;;  %v6877_v49 = vrot.slane %v6870_v29, 5 }
 0xad8   :  { %v6879_v0 = vrot.slane %v6871_v43, 4  ;;  %v6881_v50 = vrot.slane %v6872_v53, 3 }
 0xad9   :  { %v6874_v3 = vsel %vm4802_vm13, %v6873_v2, %v6867_v38 }
 0xada   :  { %v6876_v19 = vsel %vm4805_vm14, %v6875_v41, %v6874_v3 }
 0xadb   :  { %v6878_v46 = vsel %vm4808_vm15, %v6877_v49, %v6876_v19 }
 0xadc   :  { %v6880_v40 = vsel %vm4811_vm0, %v6879_v0, %v6878_v46 }
 0xadd   :  { %v6882_v35 = vsel %vm4814_vm1, %v6881_v50, %v6880_v40 }
 0xade   :  { %v6883_v9 = vpack.c.b16 %v6882_v35, %v6882_v35 }
 0xae0   :  { %9857 = vmatmul.mubr.msk.bf16.vlgmr.msra.gmra.mrb[8].mxu0 %vm5570_vm7, %v6883_v9 }
 0xae1   :  { %9876 = vmatprep.mubr.msk.bf16.mxu0 %vm10059_vm12, %v13364_v15 }
 0xbb3   :  { %v6933_v22 = vpop.f32.mrb[8].mxu0 }
 0xbb4   :  { %v6934_v60 = vadd.f32 %v9660_v6, %v6933_v22  ;;  %v9858_v14 = vpop.f32.mrb[9].mxu0 }
 0xbb5   :  { %v6936_v21 = vpop.f32.mrb[10].mxu0 }
 0xbb6   :  { %v6939_v62 = vmax.f32 %v6934_v60, 0.0  ;;  %v9859_v16 = vpop.f32.mrb[11].mxu0 }
 0xbb8   :  { %v6940_v26 = vpack.c.bf16 %v6939_v62, %v6939_v62 }
 0xbba   :  { %9869 = vmatmul.mubr.msk.bf16.vlgmr.msra.gmra.mrb[24].mxu1 %vm6980_vm10, %v6940_v26 }
 0xbbb   :  { %9892 = vmatprep.mubr.msk.bf16.mxu1 %vm10059_vm12, %v13364_v15 }
 0xc8d   :  { %v7018_v39 = vpop.f32.mrb[24].mxu1 }
 0xc8e   :  { %v7019_v56 = vadd.f32 %v9664_v8, %v7018_v39  ;;  %v9870_v7 = vpop.f32.mrb[25].mxu1 }
 0xc8f   :  { %v7021_v32 = vpop.f32.mrb[26].mxu1 }
 0xc90   :  { %v7025_v28 = vcombine.high %v7019_v56, %v7019_v56  ;;  %v7032_v4 = vrot.slane %v7019_v56, %v13368_v63  ;;  %v9871_v36 = vpop.f32.mrb[27].mxu1 }
 0xc92   :  { %v7039_v5 = vrot.slane %v7025_v28, %v13368_v63  ;;  %v7040_v20 = vcombine.high %v7032_v4, %v7032_v4  ;;  %v7048_v27 = vrot.slane %v7032_v4, %v13368_v63 }
 0xc94   :  { %v7041_v59 = vcombine.high %v7039_v5, %v7039_v5  ;;  %v7055_v48 = vrot.slane %v7039_v5, %v13368_v63  ;;  %v7062_v12 = vrot.slane %v7040_v20, %v13368_v63  ;;  %v7070_v25 = vcombine.high %v7048_v27, %v7048_v27 }
 0xc95   :  { %v7078_v51 = vadd.f32 %v7048_v27, %v12647_v54  ;;  %v9958_v27 = vld [vmem:[%s13369_s5 + $0x10] sm:$0xff]  }
 0xc96   :  { %v7069_v24 = vrot.slane %v7041_v59, %v13368_v63  ;;  %v7071_v17 = vcombine.high %v7062_v12, %v7062_v12  ;;  %v7079_v57 = vadd.f32 %v7062_v12, %v12649_v61  ;;  %v7080_v1 = vadd.f32 %v7070_v25, %v12651_v30  ;;  %9873 = vmatpush3.bf16.msra.mxu0 %v9958_v27  ;;  %v9959_v59 = vld [vmem:[%s13369_s5 + $0x18] sm:$0xff]   ;;  %v9670_v12 = vld [vmem:[%s13198_s24] ss:$0 sm:$0xff] }
 0xc97   :  { %v7082_v52 = vadd.f32 %v7055_v48, %v12655_v31  ;;  %9874 = vmatprep.subr.bf16.mxu0 %v13364_v15 }
 0xc98   :  { %v7081_v33 = vadd.f32 %v7071_v17, %v12653_v47  ;;  %v7092_v37 = vcombine.low %v7078_v51, %v7079_v57  ;;  %v7083_v10 = vadd.f32 %v7069_v24, %v12657_v23  ;;  %v9671_v24 = vld [vmem:[%s13199_s25] ss:$0 sm:$0xff] }
 0xc9a   :  { %v7093_v29 = vcombine.low %v7080_v1, %v7081_v33  ;;  %v7094_v43 = vcombine.low %v7082_v52, %v7083_v10  ;;  %v7101_v38 = vrot.slane %v7092_v37, %v13368_v63  ;;  %9875 = vmatpush3.bf16.msra.mxu0 %v9959_v59  ;;  %v7339_v37 = vcombine.high %v9671_v24, %v9671_v24 }
 0xc9b   :  { %9880 = vmatprep.subr.bf16.mxu0 %v13364_v15 }
 0xc9c   :  { %v7108_v53 = vrot.slane %v7093_v29, %v13368_v63  ;;  %v7115_v2 = vrot.slane %v7094_v43, %v13368_v63 }
 0xc9e   :  { %v7116_v54 = vcombine.low %v7101_v38, %v7108_v53  ;;  %v7130_v30 = vrot.slane %v7115_v2, %v13368_v63  ;;  %v7353_v53 = vrot.slane %v7339_v37, %v13368_v63 }
 0xca0   :  { %v7123_v61 = vrot.slane %v7116_v54, %v13368_v63 }
 0xca2   :  { %v7131_v41 = vcombine.low %v7123_v61, %v7130_v30 }
 0xca4   :  { %v7133_v47 = vsel %vm6578_vm9, %v7131_v41, 0.0 }
 0xca5   :  { %7134 = vadd.xlane.f32.xlu0 %v7133_v47 }
 0xd32   :  { %v7135_v31 = vpop.xlane.xlu0 %7134 }
 0xd33   :  { %v7136_v3 = vmul.f32 0.03125, %v7135_v31 }
 0xd35   :  { %v7141_v23 = vrot.slane %v7136_v3, %v11727_v58  ;;  %v7145_v49 = vrot.slane %v7136_v3, %v11730_v44  ;;  %v7149_v19 = vrot.slane %v7136_v3, %v11733_v34  ;;  %v7153_v0 = vrot.slane %v7136_v3, %v11736_v42 }
 0xd36   :  { %v7157_v46 = vrot.slane %v7136_v3, %v11739_v13  ;;  %v7161_v50 = vrot.slane %v7136_v3, %v11742_v18  ;;  %v7355_v3 = vcombine.high %v7353_v53, %v7353_v53 }
 0xd37   :  { %v12720_v40 = vsub.f32 %v7078_v51, %v7141_v23  ;;  %v12722_v35 = vsub.f32 %v7079_v57, %v7145_v49  ;;  %v12724_v9 = vsub.f32 %v7080_v1, %v7149_v19  ;;  %v12726_v11 = vsub.f32 %v7081_v33, %v7153_v0 }
 0xd38   :  { %v12728_v45 = vsub.f32 %v7082_v52, %v7157_v46  ;;  %v12730_v6 = vsub.f32 %v7083_v10, %v7161_v50  ;;  %v7275_v51 = vcombine.high %v9670_v12, %v9670_v12  ;;  %v7282_v57 = vrot.slane %v9670_v12, %v13368_v63 }
 0xd39   :  { %v7174_v22 = vmul.f32 %v12720_v40, %v12720_v40  ;;  %v7175_v60 = vmul.f32 %v12722_v35, %v12722_v35  ;;  %v7176_v14 = vmul.f32 %v12724_v9, %v12724_v9  ;;  %v7177_v21 = vmul.f32 %v12726_v11, %v12726_v11 }
 0xd3a   :  { %v7178_v62 = vmul.f32 %v12728_v45, %v12728_v45  ;;  %v7179_v16 = vmul.f32 %v12730_v6, %v12730_v6  ;;  %v7346_v1 = vrot.slane %v9671_v24, %v13368_v63  ;;  %v7289_v33 = vrot.slane %v7275_v51, %v13368_v63 }
 0xd3b   :  { %v7186_v26 = vcombine.low %v7174_v22, %v7175_v60  ;;  %v7187_v8 = vcombine.low %v7176_v14, %v7177_v21  ;;  %v7290_v52 = vcombine.high %v7282_v57, %v7282_v57  ;;  %v7298_v43 = vrot.slane %v7282_v57, %v13368_v63 }
 0xd3c   :  { %v7188_v39 = vcombine.low %v7178_v62, %v7179_v16  ;;  %v7354_v10 = vcombine.high %v7346_v1, %v7346_v1  ;;  %v7291_v29 = vcombine.high %v7289_v33, %v7289_v33  ;;  %v7362_v2 = vrot.slane %v7346_v1, %v13368_v63 }
 0xd3d   :  { %v7195_v56 = vrot.slane %v7186_v26, %v13368_v63  ;;  %v7202_v7 = vrot.slane %v7187_v8, %v13368_v63  ;;  %v7312_v38 = vrot.slane %v7290_v52, %v13368_v63  ;;  %v7305_v61 = vrot.slane %v7289_v33, %v13368_v63 }
 0xd3e   :  { %v7209_v32 = vrot.slane %v7188_v39, %v13368_v63  ;;  %v7376_v54 = vrot.slane %v7354_v10, %v13368_v63  ;;  %v7319_v41 = vrot.slane %v7291_v29, %v13368_v63  ;;  %v7320_v47 = vcombine.high %v7298_v43, %v7298_v43 }
 0xd3f   :  { %v7210_v28 = vcombine.low %v7195_v56, %v7202_v7  ;;  %v7321_v31 = vcombine.high %v7312_v38, %v7312_v38  ;;  %v7384_v22 = vcombine.high %v7362_v2, %v7362_v2  ;;  %v7369_v39 = vrot.slane %v7353_v53, %v13368_v63 }
 0xd40   :  { %v7224_v36 = vrot.slane %v7209_v32, %v13368_v63  ;;  %v7385_v60 = vcombine.high %v7376_v54, %v7376_v54  ;;  %v7383_v56 = vrot.slane %v7355_v3, %v13368_v63 }
 0xd41   :  { %v7217_v4 = vrot.slane %v7210_v28, %v13368_v63 }
 0xd43   :  { %v7225_v5 = vcombine.low %v7217_v4, %v7224_v36 }
 0xd45   :  { %v7227_v20 = vsel %vm6578_vm9, %v7225_v5, 0.0 }
 0xd46   :  { %7228 = vadd.xlane.f32.xlu0 %v7227_v20 }
 0xdd3   :  { %v7229_v48 = vpop.xlane.xlu0 %7228 }
 0xdd4   :  { %v7230_v25 = vmul.f32 0.03125, %v7229_v48 }
 0xdd6   :  { %v7231_v17 = vadd.f32 1e-05, %v7230_v25 }
 0xdd8   :  { %10014 = vrsqrt.f32 %v7231_v17 }
 0xde2   :  { %v10015_v30 = vpop.eup %10014 }
 0xde3   :  { %v7237_v23 = vrot.slane %v10015_v30, %v11727_v58  ;;  %v7241_v49 = vrot.slane %v10015_v30, %v11730_v44  ;;  %v7245_v19 = vrot.slane %v10015_v30, %v11733_v34  ;;  %v7249_v0 = vrot.slane %v10015_v30, %v11736_v42 }
 0xde4   :  { %v7253_v46 = vrot.slane %v10015_v30, %v11739_v13  ;;  %v7257_v50 = vrot.slane %v10015_v30, %v11742_v18 }
 0xde5   :  { %v7264_v14 = vmul.f32 %v7237_v23, %v12720_v40  ;;  %v7265_v21 = vmul.f32 %v7241_v49, %v12722_v35  ;;  %v7266_v62 = vmul.f32 %v7245_v19, %v12724_v9  ;;  %v7267_v16 = vmul.f32 %v7249_v0, %v12726_v11 }
 0xde6   :  { %v7268_v26 = vmul.f32 %v7253_v46, %v12728_v45  ;;  %v7269_v8 = vmul.f32 %v7257_v50, %v12730_v6 }
 0xde7   :  { %v7328_v7 = vmul.f32 %v7298_v43, %v7264_v14  ;;  %v7329_v32 = vmul.f32 %v7312_v38, %v7265_v21  ;;  %v7330_v28 = vmul.f32 %v7320_v47, %v7266_v62  ;;  %v7331_v4 = vmul.f32 %v7321_v31, %v7267_v16  ;;  %v10055_v47 = vld [vmem:[%s13189_s13 + $0x8] sm:$0xff]   ;;  %v9677_v31 = vld [vmem:[%s13188_s15 + $0x1] ss:$0 sm:$0xff] }
 0xde8   :  { %v7332_v36 = vmul.f32 %v7305_v61, %v7268_v26  ;;  %v7333_v40 = vmul.f32 %v7319_v41, %v7269_v8  ;;  %v10054_v41 = vld [vmem:[%s13189_s13] sm:$0xff]  }
 0xde9   :  { %v12788_v5 = vadd.f32 %v7362_v2, %v7328_v7  ;;  %v12790_v35 = vadd.f32 %v7376_v54, %v7329_v32  ;;  %v12792_v9 = vadd.f32 %v7384_v22, %v7330_v28  ;;  %v12794_v11 = vadd.f32 %v7385_v60, %v7331_v4 }
 0xdea   :  { %v12796_v45 = vadd.f32 %v7369_v39, %v7332_v36  ;;  %v12798_v6 = vadd.f32 %v7383_v56, %v7333_v40 }
 0xdeb   :  { %v7398_v20 = vpack.c.bf16 %v12788_v5, %v12788_v5  ;;  %v7399_v27 = vpack.c.bf16 %v12790_v35, %v12790_v35  ;;  %v7400_v59 = vpack.c.bf16 %v12792_v9, %v12792_v9  ;;  %v7401_v48 = vpack.c.bf16 %v12794_v11, %v12794_v11 }
 0xdec   :  { %v7402_v12 = vpack.c.bf16 %v12796_v45, %v12796_v45  ;;  %v7403_v25 = vpack.c.bf16 %v12798_v6, %v12798_v6 }
 0xded   :  { %v7424_v24 = vunpack.c.l.b16 %v7399_v27  ;;  %v7425_v17 = vunpack.c.l.b16 %v7400_v59  ;;  %v7426_v51 = vunpack.c.l.b16 %v7401_v48  ;;  %v7423_v1 = vunpack.c.l.b16 %v7398_v20 }
 0xdee   :  { %v7427_v57 = vunpack.c.l.b16 %v7402_v12  ;;  %v7428_v33 = vunpack.c.l.b16 %v7403_v25 }
 0xdef   :  { %v7429_v52 = vrot.slane %v7424_v24, 7  ;;  %v7431_v37 = vrot.slane %v7425_v17, 6  ;;  %v7433_v29 = vrot.slane %v7426_v51, 5 }
 0xdf0   :  { %v7435_v38 = vrot.slane %v7427_v57, 4  ;;  %v7437_v2 = vrot.slane %v7428_v33, 3 }
 0xdf1   :  { %v7430_v10 = vsel %vm4802_vm13, %v7429_v52, %v7423_v1 }
 0xdf2   :  { %v7432_v43 = vsel %vm4805_vm14, %v7431_v37, %v7430_v10 }
 0xdf3   :  { %v7434_v53 = vsel %vm4808_vm15, %v7433_v29, %v7432_v43 }
 0xdf4   :  { %v7436_v54 = vsel %vm4811_vm0, %v7435_v38, %v7434_v53 }
 0xdf5   :  { %v7438_v61 = vsel %vm4814_vm1, %v7437_v2, %v7436_v54 }
 0xdf6   :  { %v7439_v30 = vpack.c.b16 %v7438_v61, %v7438_v61 }
 0xdf8   :  { %9877 = vmatmul.mubr.msk.bf16.vlgmr.msra.gmra.mrb[12].mxu0 %vm5570_vm7, %v7439_v30 }
 0xdf9   :  { %9881 = vmatpush3.bf16.msra.mxu0 %v10054_v41  ;;  %9884 = vmatprep.mubr.msk.bf16.mxu0 %vm10059_vm12, %v13364_v15 }
 0xdfa   :  { %9882 = vmatprep.subr.bf16.mxu0 %v13364_v15 }
 0xdfd   :  { %9883 = vmatpush3.bf16.msra.mxu0 %v10055_v47 }
 0xdfe   :  { %9896 = vmatprep.subr.bf16.mxu0 %v13364_v15 }
 0xecb   :  { %v7489_v3 = vpop.f32.mrb[12].mxu0 }
 0xecc   :  { %v7490_v23 = vadd.f32 %v9677_v31, %v7489_v3  ;;  %v9878_v49 = vpop.f32.mrb[13].mxu0 }
 0xecd   :  { %v7492_v19 = vpop.f32.mrb[14].mxu0 }
 0xece   :  { %v7496_v0 = vcombine.high %v7490_v23, %v7490_v23  ;;  %v7503_v46 = vrot.slane %v7490_v23, %v13368_v63  ;;  %v9879_v50 = vpop.f32.mrb[15].mxu0 }
 0xecf   :  { %v9961_v50 = vld [vmem:[%s13190_s16 + $0x18] sm:$0xff]  }
 0xed0   :  { %v7511_v22 = vcombine.high %v7503_v46, %v7503_v46  ;;  %v7519_v60 = vrot.slane %v7503_v46, %v13368_v63  ;;  %v7510_v14 = vrot.slane %v7496_v0, %v13368_v63  ;;  %v9960_v46 = vld [vmem:[%s13190_s16 + $0x10] sm:$0xff]  }
 0xed1   :  { %9889 = vmatpush3.bf16.msra.mxu1 %v9960_v46 }
 0xed2   :  { %v7533_v21 = vrot.slane %v7511_v22, %v13368_v63  ;;  %7549 = vrot.lane.b32.xlu1 %v7519_v60, %s10060_s29  ;;  %v7541_v62 = vcombine.high %v7519_v60, %v7519_v60  ;;  %v7526_v16 = vrot.slane %v7510_v14, %v13368_v63  ;;  %v7512_v26 = vcombine.high %v7510_v14, %v7510_v14 }
 0xed3   :  { %9890 = vmatprep.subr.bf16.mxu1 %v13364_v15 }
 0xed4   :  { %7551 = vrot.lane.b32.xlu0 %v7533_v21, %s10060_s29  ;;  %v7542_v8 = vcombine.high %v7533_v21, %v7533_v21  ;;  %v7540_v39 = vrot.slane %v7512_v26, %v13368_v63 }
 0xed5   :  { %9891 = vmatpush3.bf16.msra.mxu1 %v9961_v50 }
 0xed6   :  { %7553 = vrot.lane.b32.xlu1 %v7541_v62, %s10060_s29  ;;  %9904 = vmatprep.subr.bf16.mxu1 %v13364_v15 }
 0xed8   :  { %7557 = vrot.lane.b32.xlu0 %v7526_v16, %s10060_s29 }
 0xeda   :  { %7555 = vrot.lane.b32.xlu1 %v7542_v8, %s10060_s29 }
 0xedc   :  { %8034 = vrot.lane.b32.xlu0 %v7519_v60, %s10061_s1 }
 0xede   :  { %7559 = vrot.lane.b32.xlu1 %v7540_v39, %s10060_s29 }
 0xee0   :  { %8040 = vrot.lane.b32.xlu0 %v7542_v8, %s10061_s1 }
 0xee2   :  { %8036 = vrot.lane.b32.xlu1 %v7533_v21, %s10061_s1 }
 0xee4   :  { %8038 = vrot.lane.b32.xlu0 %v7541_v62, %s10061_s1 }
 0xee6   :  { %8042 = vrot.lane.b32.xlu1 %v7526_v16, %s10061_s1 }
 0xeea   :  { %8044 = vrot.lane.b32.xlu1 %v7540_v39, %s10061_s1 }
 0xf44   :  { %v7550_v56 = vpop.permute.xlu1 %7549 }
 0xf45   :  { %v7567_v40 = vmul.f32 %v7550_v56, %v7519_v60  ;;  %v7573_v12 = vmul.f32 %v7550_v56, %v7542_v8 }
 0xf46   :  { %v7552_v7 = vpop.permute.xlu0 %7551 }
 0xf47   :  { %v7568_v28 = vmul.f32 %v7552_v7, %v7533_v21  ;;  %v7574_v4 = vmul.f32 %v7552_v7, %v7526_v16 }
 0xf48   :  { %v7554_v32 = vpop.permute.xlu1 %7553 }
 0xf49   :  { %v7569_v20 = vmul.f32 %v7554_v32, %v7541_v62  ;;  %v7591_v25 = vcombine.low %v7567_v40, %v7568_v28  ;;  %v7575_v24 = vmul.f32 %v7554_v32, %v7540_v39  ;;  %v7594_v51 = vcombine.low %v7573_v12, %v7574_v4 }
 0xf4a   :  { %v7558_v27 = vpop.permute.xlu0 %7557 }
 0xf4b   :  { %v7571_v57 = vmul.f32 %v7558_v27, %v7533_v21  ;;  %v7577_v1 = vmul.f32 %v7558_v27, %v7526_v16  ;;  %v7601_v43 = vrot.slane %v7591_v25, %v13368_v63  ;;  %v7622_v2 = vrot.slane %v7594_v51, %v13368_v63 }
 0xf4c   :  { %v7556_v36 = vpop.permute.xlu1 %7555 }
 0xf4d   :  { %v7570_v59 = vmul.f32 %v7556_v36, %v7519_v60  ;;  %v7576_v48 = vmul.f32 %v7556_v36, %v7542_v8 }
 0xf4f   :  { %v7592_v17 = vcombine.low %v7569_v20, %v7570_v59  ;;  %v7640_v37 = vcombine.low %v7575_v24, %v7576_v48 }
 0xf50   :  { %v7560_v33 = vpop.permute.xlu1 %7559 }
 0xf51   :  { %v7608_v52 = vrot.slane %v7592_v17, %v13368_v63  ;;  %v7572_v10 = vmul.f32 %v7560_v33, %v7541_v62  ;;  %v7578_v29 = vmul.f32 %v7560_v33, %v7540_v39  ;;  %v7648_v61 = vrot.slane %v7640_v37, %v13368_v63 }
 0xf53   :  { %v7593_v38 = vcombine.low %v7571_v57, %v7572_v10  ;;  %v7641_v53 = vcombine.low %v7577_v1, %v7578_v29  ;;  %v7623_v54 = vcombine.low %v7601_v43, %v7608_v52 }
 0xf55   :  { %v7615_v30 = vrot.slane %v7593_v38, %v13368_v63  ;;  %v7655_v41 = vrot.slane %v7641_v53, %v13368_v63  ;;  %v7631_v3 = vrot.slane %v7623_v54, %v13368_v63 }
 0xf57   :  { %v7624_v47 = vcombine.low %v7615_v30, %v7622_v2  ;;  %v7656_v31 = vcombine.low %v7648_v61, %v7655_v41 }
 0xf59   :  { %v7638_v23 = vrot.slane %v7624_v47, %v13368_v63  ;;  %v7663_v19 = vrot.slane %v7656_v31, %v13368_v63 }
 0xf5b   :  { %v7639_v49 = vcombine.low %v7631_v3, %v7638_v23 }
 0xf5d   :  { %v7666_v0 = vpack.c.bf16 %v7663_v19, %v7639_v49 }
 0xf5f   :  { %9885 = vmatmul.mubr.msk.bf16.vlgmr.msra.gmra.mrb[16].mxu0 %vm5570_vm7, %v7666_v0 }
 0xf60   :  { %9900 = vmatprep.mubr.msk.bf16.mxu0 %vm10059_vm12, %v13364_v15 }
0x1032   :  { %v7704_v22 = vpop.f32.mrb[16].mxu0 }
0x1033   :  { %v7713_v60 = vcombine.high %v7704_v22, %v7704_v22  ;;  %v7720_v14 = vrot.slane %v7704_v22, %v13368_v63  ;;  %v9886_v21 = vpop.f32.mrb[17].mxu0 }
0x1034   :  { %v7707_v62 = vpop.f32.mrb[18].mxu0 }
0x1035   :  { %v7727_v16 = vrot.slane %v7713_v60, %v13368_v63  ;;  %v7728_v26 = vcombine.high %v7720_v14, %v7720_v14  ;;  %v7736_v8 = vrot.slane %v7720_v14, %v13368_v63  ;;  %v7768_v39 = vrot.slane %v7707_v62, %v13368_v63  ;;  %v9887_v56 = vpop.f32.mrb[19].mxu0 }
0x1037   :  { %v7729_v7 = vcombine.high %v7727_v16, %v7727_v16  ;;  %v7743_v32 = vrot.slane %v7727_v16, %v13368_v63  ;;  %v7750_v28 = vrot.slane %v7728_v26, %v13368_v63  ;;  %v7758_v4 = vcombine.high %v7736_v8, %v7736_v8 }
0x1038   :  { %v7798_v36 = vsel %vm12448_vm8, %v7736_v8, -inf  ;;  %v7769_v40 = vcombine.high %v7768_v39, %v7768_v39  ;;  %v7776_v20 = vrot.slane %v7768_v39, %v13368_v63 }
0x1039   :  { %v7757_v27 = vrot.slane %v7729_v7, %v13368_v63  ;;  %v7759_v59 = vcombine.high %v7743_v32, %v7743_v32  ;;  %v7760_v48 = vcombine.high %v7750_v28, %v7750_v28  ;;  %v7801_v12 = vsel %vm12448_vm8, %v7750_v28, -inf }
0x103a   :  { %v7802_v25 = vsel %vm12448_vm8, %v7743_v32, -inf  ;;  %v7804_v24 = vsel %vm12448_vm8, %v7758_v4, -inf  ;;  %v7783_v17 = vrot.slane %v7769_v40, %v13368_v63  ;;  %v7784_v51 = vcombine.high %v7776_v20, %v7776_v20 }
0x103b   :  { %v7761_v57 = vcombine.high %v7757_v27, %v7757_v27  ;;  %v7799_v1 = vsel %vm12448_vm8, %v7760_v48, -inf  ;;  %v7803_v33 = vmax.f32 %v7801_v12, %v7802_v25  ;;  %v7805_v52 = vsel %vm12448_vm8, %v7757_v27, -inf }
0x103c   :  { %v7800_v37 = vmax.f32 %v7798_v36, %v7799_v1  ;;  %v7806_v10 = vmax.f32 %v7804_v24, %v7805_v52  ;;  %v7785_v29 = vcombine.high %v7783_v17, %v7783_v17  ;;  %v7807_v43 = vsel %vm12448_vm8, %v7759_v59, -inf }
0x103d   :  { %v7817_v38 = vsub.f32 %v7750_v28, %v7803_v33  ;;  %v7820_v53 = vsub.f32 %v7743_v32, %v7803_v33  ;;  %v7808_v2 = vsel %vm12448_vm8, %v7783_v17, -inf  ;;  %v7810_v54 = vsel %vm12448_vm8, %v7761_v57, -inf }
0x103e   :  { %v7816_v61 = vsub.f32 %v7736_v8, %v7800_v37  ;;  %v7818_v30 = vsub.f32 %v7758_v4, %v7806_v10  ;;  %v7819_v41 = vsub.f32 %v7760_v48, %v7800_v37  ;;  %v7821_v47 = vsub.f32 %v7757_v27, %v7806_v10 }
0x103f   :  { %v7830_v31 = vmul.f32 1.442695, %v7817_v38  ;;  %v7836_v3 = vmul.f32 1.442695, %v7820_v53  ;;  %v7809_v23 = vmax.f32 %v7807_v43, %v7808_v2  ;;  %v7811_v49 = vsel %vm12448_vm8, %v7784_v51, -inf }
0x1040   :  { %v7828_v19 = vmul.f32 1.442695, %v7816_v61  ;;  %v7832_v0 = vmul.f32 1.442695, %v7818_v30  ;;  %v7834_v46 = vmul.f32 1.442695, %v7819_v41  ;;  %v7812_v50 = vmax.f32 %v7810_v54, %v7811_v49 }
0x1041   :  { %10016 = vpow2.f32 %v7830_v31  ;;  %v7838_v22 = vmul.f32 1.442695, %v7821_v47  ;;  %v7813_v60 = vsel %vm12448_vm8, %v7776_v20, -inf  ;;  %v7814_v14 = vsel %vm12448_vm8, %v7785_v29, -inf }
0x1042   :  { %10018 = vpow2.f32 %v7828_v19  ;;  %v7815_v21 = vmax.f32 %v7813_v60, %v7814_v14  ;;  %v7822_v62 = vsub.f32 %v7759_v59, %v7809_v23  ;;  %v7823_v16 = vsub.f32 %v7761_v57, %v7812_v50 }
0x1043   :  { %10020 = vpow2.f32 %v7832_v0  ;;  %v7825_v26 = vsub.f32 %v7783_v17, %v7809_v23  ;;  %v7826_v8 = vsub.f32 %v7784_v51, %v7812_v50 }
0x1044   :  { %10022 = vpow2.f32 %v7834_v46  ;;  %v7824_v39 = vsub.f32 %v7776_v20, %v7815_v21  ;;  %v7827_v56 = vsub.f32 %v7785_v29, %v7815_v21  ;;  %v7840_v7 = vmul.f32 1.442695, %v7822_v62  ;;  %v8035_v62 = vpop.permute.xlu0 %8034 }
0x1045   :  { %10024 = vpow2.f32 %v7836_v3  ;;  %v7842_v32 = vmul.f32 1.442695, %v7823_v16  ;;  %v7846_v4 = vmul.f32 1.442695, %v7825_v26  ;;  %v7848_v36 = vmul.f32 1.442695, %v7826_v8  ;;  %v8037_v16 = vpop.permute.xlu1 %8036 }
0x1046   :  { %10026 = vpow2.f32 %v7838_v22  ;;  %v7844_v28 = vmul.f32 1.442695, %v7824_v39  ;;  %v7850_v55 = vmul.f32 1.442695, %v7827_v56 }
0x1047   :  { %10028 = vpow2.f32 %v7840_v7 }
0x1048   :  { %10030 = vpow2.f32 %v7842_v32  ;;  %v8041_v39 = vpop.permute.xlu0 %8040 }
0x1049   :  { %10032 = vpow2.f32 %v7844_v28  ;;  %v8043_v56 = vpop.permute.xlu1 %8042 }
0x104a   :  { %10034 = vpow2.f32 %v7846_v4 }
0x104b   :  { %v10017_v40 = vpop.eup %10016  ;;  %10036 = vpow2.f32 %v7848_v36 }
0x104c   :  { %v10019_v27 = vpop.eup %10018  ;;  %10038 = vpow2.f32 %v7850_v55 }
0x104d   :  { %v10021_v59 = vpop.eup %10020  ;;  %v7864_v48 = vcombine.low %v10019_v27, %v10017_v40 }
0x104e   :  { %v10023_v20 = vpop.eup %10022  ;;  %v7878_v24 = vrot.slane %v10021_v59, %v13368_v63 }
0x104f   :  { %v10025_v12 = vpop.eup %10024  ;;  %v7871_v25 = vrot.slane %v7864_v48, %v13368_v63 }
0x1050   :  { %v10027_v17 = vpop.eup %10026  ;;  %v7887_v51 = vcombine.low %v10023_v20, %v10025_v12 }
0x1051   :  { %v10029_v57 = vpop.eup %10028  ;;  %v7879_v1 = vcombine.low %v7871_v25, %v7878_v24  ;;  %v7901_v37 = vrot.slane %v10027_v17, %v13368_v63 }
0x1052   :  { %v12904_v33 = vpop.eup %10030  ;;  %v7894_v52 = vrot.slane %v7887_v51, %v13368_v63 }
0x1053   :  { %v12908_v10 = vpop.eup %10032  ;;  %v7886_v29 = vrot.slane %v7879_v1, %v13368_v63  ;;  %v7910_v43 = vcombine.low %v10029_v57, %v12904_v33 }
0x1054   :  { %v10035_v38 = vpop.eup %10034  ;;  %v7902_v53 = vcombine.low %v7894_v52, %v7901_v37  ;;  %v7924_v61 = vrot.slane %v12908_v10, %v13368_v63  ;;  %v8039_v52 = vpop.permute.xlu0 %8038 }
0x1055   :  { %v10037_v2 = vpop.eup %10036  ;;  %v7917_v54 = vrot.slane %v7910_v43, %v13368_v63  ;;  %v7960_v47 = vsel %vm5248_vm6, %v7886_v29, 0.0  ;;  %v8045_v37 = vpop.permute.xlu1 %8044 }
0x1056   :  { %v10039_v30 = vpop.eup %10038  ;;  %v7909_v41 = vrot.slane %v7902_v53, %v13368_v63  ;;  %v7933_v31 = vcombine.low %v10035_v38, %v10037_v2 }
0x1057   :  { %v7925_v3 = vcombine.low %v7917_v54, %v7924_v61  ;;  %v7947_v19 = vrot.slane %v10039_v30, %v13368_v63 }
0x1058   :  { %v7961_v23 = vsel %vm5248_vm6, %v7909_v41, 0.0  ;;  %v7940_v49 = vrot.slane %v7933_v31, %v13368_v63 }
0x1059   :  { %v7962_v0 = vadd.f32 %v7961_v23, %v7960_v47  ;;  %v7932_v46 = vrot.slane %v7925_v3, %v13368_v63 }
0x105a   :  { %v7948_v50 = vcombine.low %v7940_v49, %v7947_v19 }
0x105b   :  { %10040 = vrcp.f32 %v7962_v0  ;;  %v7963_v60 = vsel %vm5248_vm6, %v7932_v46, 0.0 }
0x105c   :  { %v7955_v22 = vrot.slane %v7948_v50, %v13368_v63 }
0x105e   :  { %v7964_v14 = vsel %vm5248_vm6, %v7955_v22, 0.0 }
0x105f   :  { %v7965_v21 = vadd.f32 %v7964_v14, %v7963_v60 }
0x1061   :  { %10042 = vrcp.f32 %v7965_v21 }
0x1065   :  { %v10041_v26 = vpop.eup %10040 }
0x1066   :  { %v7976_v8 = vrot.slane %v10041_v26, %v13368_v63 }
0x1068   :  { %v7977_v7 = vcombine.high %v7976_v8, %v7976_v8  ;;  %v7984_v32 = vrot.slane %v7976_v8, %v13368_v63 }
0x106a   :  { %v7991_v28 = vrot.slane %v7977_v7, %v13368_v63  ;;  %v7992_v4 = vcombine.high %v7984_v32, %v7984_v32  ;;  %v8022_v36 = vmul.f32 %v10019_v27, %v7984_v32  ;;  %v8025_v55 = vmul.f32 %v10023_v20, %v7984_v32 }
0x106b   :  { %v10043_v48 = vpop.eup %10042 }
0x106c   :  { %v8023_v25 = vmul.f32 %v10017_v40, %v7991_v28  ;;  %v8024_v24 = vmul.f32 %v10021_v59, %v7992_v4  ;;  %v8026_v51 = vmul.f32 %v10025_v12, %v7991_v28  ;;  %v8027_v1 = vmul.f32 %v10027_v17, %v7992_v4 }
0x106d   :  { %v8052_v29 = vmul.f32 %v8035_v62, %v8022_v36  ;;  %v8055_v43 = vmul.f32 %v8041_v39, %v8025_v55  ;;  %v7999_v53 = vrot.slane %v10043_v48, %v13368_v63 }
0x106e   :  { %v8053_v54 = vmul.f32 %v8037_v16, %v8023_v25  ;;  %v8054_v61 = vmul.f32 %v8039_v52, %v8024_v24  ;;  %v8056_v41 = vmul.f32 %v8043_v56, %v8026_v51  ;;  %v8057_v47 = vmul.f32 %v8045_v37, %v8027_v1 }
0x106f   :  { %v8000_v31 = vcombine.high %v7999_v53, %v7999_v53  ;;  %v8007_v3 = vrot.slane %v7999_v53, %v13368_v63 }
0x1070   :  { %v8076_v27 = vcombine.low %v8052_v29, %v8053_v54  ;;  %v8099_v20 = vcombine.low %v8055_v43, %v8056_v41  ;;  %v8090_v49 = vrot.slane %v8054_v61, %v13368_v63  ;;  %v8113_v0 = vrot.slane %v8057_v47, %v13368_v63 }
0x1071   :  { %v8014_v40 = vrot.slane %v8000_v31, %v13368_v63  ;;  %v8015_v59 = vcombine.high %v8007_v3, %v8007_v3  ;;  %v8028_v12 = vmul.f32 %v10029_v57, %v8007_v3  ;;  %v8031_v17 = vmul.f32 %v10035_v38, %v8007_v3 }
0x1072   :  { %v8083_v23 = vrot.slane %v8076_v27, %v13368_v63  ;;  %v8106_v19 = vrot.slane %v8099_v20, %v13368_v63 }
0x1073   :  { %v8029_v46 = vmul.f32 %v12904_v33, %v8014_v40  ;;  %v8030_v50 = vmul.f32 %v12908_v10, %v8015_v59  ;;  %v8032_v22 = vmul.f32 %v10037_v2, %v8014_v40  ;;  %v8033_v60 = vmul.f32 %v10039_v30, %v8015_v59 }
0x1074   :  { %v8091_v14 = vcombine.low %v8083_v23, %v8090_v49  ;;  %v8114_v21 = vcombine.low %v8106_v19, %v8113_v0  ;;  %v8058_v26 = vmul.f32 %v8035_v62, %v8028_v12  ;;  %v8061_v8 = vmul.f32 %v8041_v39, %v8031_v17 }
0x1075   :  { %v8059_v57 = vmul.f32 %v8037_v16, %v8029_v46  ;;  %v8060_v38 = vmul.f32 %v8039_v52, %v8030_v50  ;;  %v8062_v7 = vmul.f32 %v8043_v56, %v8032_v22  ;;  %v8063_v32 = vmul.f32 %v8045_v37, %v8033_v60  ;;  %v9687_v50 = vld [vmem:[%s13191_s17 + $0x1] ss:$0 sm:$0xff] }
0x1076   :  { %v8098_v28 = vrot.slane %v8091_v14, %v13368_v63  ;;  %v8121_v4 = vrot.slane %v8114_v21, %v13368_v63 }
0x1077   :  { %v8122_v36 = vcombine.low %v8058_v26, %v8059_v57  ;;  %v8145_v55 = vcombine.low %v8061_v8, %v8062_v7  ;;  %v8136_v33 = vrot.slane %v8060_v38, %v13368_v63  ;;  %v8159_v16 = vrot.slane %v8063_v32, %v13368_v63 }
0x1078   :  { %v8172_v10 = vsel %vm5248_vm6, %v8098_v28, 0.0  ;;  %v8173_v2 = vsel %vm5248_vm6, %v8121_v4, 0.0 }
0x1079   :  { %v8129_v30 = vrot.slane %v8122_v36, %v13368_v63  ;;  %v8152_v62 = vrot.slane %v8145_v55, %v13368_v63  ;;  %v8174_v39 = vadd.f32 %v8173_v2, %v8172_v10 }
0x107b   :  { %v8137_v56 = vcombine.low %v8129_v30, %v8136_v33  ;;  %v8160_v48 = vcombine.low %v8152_v62, %v8159_v16  ;;  %v8186_v25 = vrot.slane %v8174_v39, %v13368_v63 }
0x107d   :  { %v8144_v24 = vrot.slane %v8137_v56, %v13368_v63  ;;  %v8167_v51 = vrot.slane %v8160_v48, %v13368_v63  ;;  %v8187_v1 = vcombine.high %v8186_v25, %v8186_v25  ;;  %v8194_v52 = vrot.slane %v8186_v25, %v13368_v63 }
0x107f   :  { %v8175_v37 = vsel %vm5248_vm6, %v8144_v24, 0.0  ;;  %v8176_v29 = vsel %vm5248_vm6, %v8167_v51, 0.0  ;;  %v8201_v43 = vrot.slane %v8187_v1, %v13368_v63  ;;  %v8202_v54 = vcombine.high %v8194_v52, %v8194_v52 }
0x1080   :  { %v8177_v53 = vadd.f32 %v8176_v29, %v8175_v37 }
0x1081   :  { %v8226_v41 = vcombine.low %v8194_v52, %v8201_v43 }
0x1082   :  { %v8209_v61 = vrot.slane %v8177_v53, %v13368_v63 }
0x1083   :  { %v8235_v40 = vrot.slane %v8226_v41, %v13368_v63 }
0x1084   :  { %v8210_v47 = vcombine.high %v8209_v61, %v8209_v61  ;;  %v8217_v31 = vrot.slane %v8209_v61, %v13368_v63 }
0x1086   :  { %v8224_v3 = vrot.slane %v8210_v47, %v13368_v63  ;;  %v8225_v27 = vcombine.high %v8217_v31, %v8217_v31  ;;  %v8227_v20 = vcombine.low %v8202_v54, %v8217_v31 }
0x1088   :  { %v8228_v59 = vcombine.low %v8224_v3, %v8225_v27  ;;  %v8242_v12 = vrot.slane %v8227_v20, %v13368_v63 }
0x108a   :  { %v8249_v17 = vrot.slane %v8228_v59, %v13368_v63  ;;  %v8250_v23 = vcombine.low %v8235_v40, %v8242_v12 }
0x108c   :  { %v8257_v49 = vrot.slane %v8250_v23, %v13368_v63  ;;  %v8264_v19 = vrot.slane %v8249_v17, %v13368_v63 }
0x108e   :  { %v8265_v0 = vcombine.low %v8257_v49, %v8264_v19 }
0x1090   :  { %v8267_v46 = vpack.c.bf16 %v8265_v0, %v8265_v0 }
0x1092   :  { %9893 = vmatmul.mubr.msk.bf16.vlgmr.msra.gmra.mrb[28].mxu1 %vm5570_vm7, %v8267_v46 }
0x1093   :  { %9912 = vmatprep.mubr.msk.bf16.mxu1 %vm10059_vm12, %v13364_v15  ;;  %vm9557_vm12 = vcmask 1024  }
0x1165   :  { %v8330_v22 = vpop.f32.mrb[28].mxu1 }
0x1166   :  { %v8331_v60 = vadd.f32 %v9687_v50, %v8330_v22  ;;  %v9894_v14 = vpop.f32.mrb[29].mxu1 }
0x1167   :  { %v8333_v21 = vpop.f32.mrb[30].mxu1 }
0x1168   :  { %v8337_v26 = vcombine.high %v8331_v60, %v8331_v60  ;;  %v8344_v8 = vrot.slane %v8331_v60, %v13368_v63  ;;  %v9895_v57 = vpop.f32.mrb[31].mxu1 }
0x116a   :  { %v8351_v38 = vrot.slane %v8337_v26, %v13368_v63  ;;  %v8352_v7 = vcombine.high %v8344_v8, %v8344_v8  ;;  %v8360_v32 = vrot.slane %v8344_v8, %v13368_v63 }
0x116c   :  { %v8353_v28 = vcombine.high %v8351_v38, %v8351_v38  ;;  %v8367_v4 = vrot.slane %v8351_v38, %v13368_v63  ;;  %v8374_v36 = vrot.slane %v8352_v7, %v13368_v63  ;;  %v8382_v55 = vcombine.high %v8360_v32, %v8360_v32  ;;  %v9962_v7 = vld [vmem:[%s13192_s18 + $0x10] sm:$0xff]  }
0x116d   :  { %v8390_v2 = vadd.f32 %v8360_v32, %v12788_v5  ;;  %9897 = vmatpush3.bf16.msra.mxu0 %v9962_v7  ;;  %v9963_v32 = vld [vmem:[%s13192_s18 + $0x18] sm:$0xff]  }
0x116e   :  { %v8381_v33 = vrot.slane %v8353_v28, %v13368_v63  ;;  %v8383_v10 = vcombine.high %v8374_v36, %v8374_v36  ;;  %v8391_v30 = vadd.f32 %v8374_v36, %v12790_v35  ;;  %v8392_v62 = vadd.f32 %v8382_v55, %v12792_v9  ;;  %9898 = vmatprep.subr.bf16.mxu0 %v13364_v15  ;;  %v9964_v28 = vld [vmem:[%s13193_s20 + $0x20] sm:$0xff]  }
0x116f   :  { %v8394_v39 = vadd.f32 %v8367_v4, %v12796_v45  ;;  %9905 = vmatpush3.bf16.msra.mxu1 %v9964_v28  ;;  %v9965_v4 = vld [vmem:[%s13193_s20 + $0x28] sm:$0xff]   ;;  %v9693_v55 = vld [vmem:[%s13194_s22 + $0x1] ss:$0 sm:$0xff] }
0x1170   :  { %v8393_v16 = vadd.f32 %v8383_v10, %v12794_v11  ;;  %v8406_v56 = vcombine.low %v8390_v2, %v8391_v30  ;;  %v8395_v48 = vadd.f32 %v8381_v33, %v12798_v6  ;;  %9906 = vmatprep.subr.bf16.mxu1 %v13364_v15  ;;  %v9694_v10 = vld [vmem:[%s13195_s23 + $0x1] ss:$0 sm:$0xff] }
0x1171   :  { %9899 = vmatpush3.bf16.msra.mxu0 %v9963_v32 }
0x1172   :  { %v8407_v25 = vcombine.low %v8392_v62, %v8393_v16  ;;  %v8408_v24 = vcombine.low %v8394_v39, %v8395_v48  ;;  %v8415_v51 = vrot.slane %v8406_v56, %v13368_v63 }
0x1173   :  { %9907 = vmatpush3.bf16.msra.mxu1 %v9965_v4 }
0x1174   :  { %v8422_v1 = vrot.slane %v8407_v25, %v13368_v63  ;;  %v8429_v52 = vrot.slane %v8408_v24, %v13368_v63  ;;  %9908 = vmatprep.subr.bf16.mxu1 %v13364_v15 }
0x1176   :  { %v8430_v5 = vcombine.low %v8415_v51, %v8422_v1  ;;  %v8444_v9 = vrot.slane %v8429_v52, %v13368_v63 }
0x1178   :  { %v8437_v35 = vrot.slane %v8430_v5, %v13368_v63 }
0x117a   :  { %v8445_v37 = vcombine.low %v8437_v35, %v8444_v9 }
0x117c   :  { %v8447_v11 = vsel %vm6578_vm9, %v8445_v37, 0.0 }
0x117d   :  { %8448 = vadd.xlane.f32.xlu0 %v8447_v11 }
0x120a   :  { %v8449_v45 = vpop.xlane.xlu0 %8448 }
0x120b   :  { %v8450_v29 = vmul.f32 0.03125, %v8449_v45 }
0x120d   :  { %v8455_v6 = vrot.slane %v8450_v29, %v11727_v58  ;;  %v8459_v43 = vrot.slane %v8450_v29, %v11730_v44  ;;  %v8463_v53 = vrot.slane %v8450_v29, %v11733_v34  ;;  %v8467_v54 = vrot.slane %v8450_v29, %v11736_v42 }
0x120e   :  { %v8471_v61 = vrot.slane %v8450_v29, %v11739_v13  ;;  %v8475_v41 = vrot.slane %v8450_v29, %v11742_v18 }
0x120f   :  { %v12989_v47 = vsub.f32 %v8390_v2, %v8455_v6  ;;  %v12991_v31 = vsub.f32 %v8391_v30, %v8459_v43  ;;  %v12993_v3 = vsub.f32 %v8392_v62, %v8463_v53  ;;  %v12995_v27 = vsub.f32 %v8393_v16, %v8467_v54 }
0x1210   :  { %v12997_v20 = vsub.f32 %v8394_v39, %v8471_v61  ;;  %v12999_v40 = vsub.f32 %v8395_v48, %v8475_v41  ;;  %v8589_v30 = vcombine.high %v9693_v55, %v9693_v55  ;;  %v8596_v62 = vrot.slane %v9693_v55, %v13368_v63 }
0x1211   :  { %v8488_v59 = vmul.f32 %v12989_v47, %v12989_v47  ;;  %v8489_v12 = vmul.f32 %v12991_v31, %v12991_v31  ;;  %v8490_v17 = vmul.f32 %v12993_v3, %v12993_v3  ;;  %v8491_v23 = vmul.f32 %v12995_v27, %v12995_v27 }
0x1212   :  { %v8492_v49 = vmul.f32 %v12997_v20, %v12997_v20  ;;  %v8493_v19 = vmul.f32 %v12999_v40, %v12999_v40  ;;  %v8660_v16 = vrot.slane %v9694_v10, %v13368_v63  ;;  %v8603_v39 = vrot.slane %v8589_v30, %v13368_v63 }
0x1213   :  { %v8500_v0 = vcombine.low %v8488_v59, %v8489_v12  ;;  %v8501_v46 = vcombine.low %v8490_v17, %v8491_v23  ;;  %v8604_v56 = vcombine.high %v8596_v62, %v8596_v62  ;;  %v8653_v48 = vcombine.high %v9694_v10, %v9694_v10 }
0x1214   :  { %v8502_v50 = vcombine.low %v8492_v49, %v8493_v19  ;;  %v8668_v25 = vcombine.high %v8660_v16, %v8660_v16  ;;  %v8605_v24 = vcombine.high %v8603_v39, %v8603_v39  ;;  %v8612_v51 = vrot.slane %v8596_v62, %v13368_v63 }
0x1215   :  { %v8509_v22 = vrot.slane %v8500_v0, %v13368_v63  ;;  %v8516_v60 = vrot.slane %v8501_v46, %v13368_v63  ;;  %v8626_v1 = vrot.slane %v8604_v56, %v13368_v63  ;;  %v8667_v52 = vrot.slane %v8653_v48, %v13368_v63 }
0x1216   :  { %v8523_v14 = vrot.slane %v8502_v50, %v13368_v63  ;;  %v8676_v5 = vrot.slane %v8660_v16, %v13368_v63  ;;  %v8690_v35 = vrot.slane %v8668_v25, %v13368_v63  ;;  %v8619_v9 = vrot.slane %v8603_v39, %v13368_v63 }
0x1217   :  { %v8524_v21 = vcombine.low %v8509_v22, %v8516_v60  ;;  %v8633_v11 = vrot.slane %v8605_v24, %v13368_v63  ;;  %v8634_v45 = vcombine.high %v8612_v51, %v8612_v51  ;;  %v8635_v29 = vcombine.high %v8626_v1, %v8626_v1 }
0x1218   :  { %v8538_v8 = vrot.slane %v8523_v14, %v13368_v63  ;;  %v8669_v6 = vcombine.high %v8667_v52, %v8667_v52  ;;  %v8698_v12 = vcombine.high %v8676_v5, %v8676_v5  ;;  %v8699_v17 = vcombine.high %v8690_v35, %v8690_v35 }
0x1219   :  { %v8531_v26 = vrot.slane %v8524_v21, %v13368_v63  ;;  %v8683_v22 = vrot.slane %v8667_v52, %v13368_v63 }
0x121a   :  { %v8697_v60 = vrot.slane %v8669_v6, %v13368_v63 }
0x121b   :  { %v8539_v57 = vcombine.low %v8531_v26, %v8538_v8 }
0x121d   :  { %v8541_v38 = vsel %vm6578_vm9, %v8539_v57, 0.0 }
0x121e   :  { %8542 = vadd.xlane.f32.xlu1 %v8541_v38 }
0x12ab   :  { %v8543_v36 = vpop.xlane.xlu1 %8542 }
0x12ac   :  { %v8544_v33 = vmul.f32 0.03125, %v8543_v36 }
0x12ae   :  { %v8545_v2 = vadd.f32 1e-05, %v8544_v33 }
0x12b0   :  { %10044 = vrsqrt.f32 %v8545_v2 }
0x12ba   :  { %v10045_v37 = vpop.eup %10044 }
0x12bb   :  { %v8551_v43 = vrot.slane %v10045_v37, %v11727_v58  ;;  %v8555_v53 = vrot.slane %v10045_v37, %v11730_v44  ;;  %v8559_v54 = vrot.slane %v10045_v37, %v11733_v34  ;;  %v8563_v61 = vrot.slane %v10045_v37, %v11736_v42 }
0x12bc   :  { %v8567_v41 = vrot.slane %v10045_v37, %v11739_v13  ;;  %v8571_v59 = vrot.slane %v10045_v37, %v11742_v18  ;;  %v9966_v37 = vld [vmem:[%s13193_s20 + $0x30] sm:$0xff]  }
0x12bd   :  { %v8578_v23 = vmul.f32 %v8551_v43, %v12989_v47  ;;  %v8579_v49 = vmul.f32 %v8555_v53, %v12991_v31  ;;  %v8580_v19 = vmul.f32 %v8559_v54, %v12993_v3  ;;  %v8581_v0 = vmul.f32 %v8563_v61, %v12995_v27  ;;  %9909 = vmatpush3.bf16.msra.mxu1 %v9966_v37 }
0x12be   :  { %v8582_v46 = vmul.f32 %v8567_v41, %v12997_v20  ;;  %v8583_v50 = vmul.f32 %v8571_v59, %v12999_v40  ;;  %9910 = vmatprep.subr.bf16.mxu1 %v13364_v15  ;;  %v9713_v59 = vld [vmem:[%s13197_s21 + $0x1] ss:$0 sm:$0xff] }
0x12bf   :  { %v8642_v14 = vmul.f32 %v8612_v51, %v8578_v23  ;;  %v8643_v21 = vmul.f32 %v8626_v1, %v8579_v49  ;;  %v8644_v26 = vmul.f32 %v8634_v45, %v8580_v19  ;;  %v8645_v8 = vmul.f32 %v8635_v29, %v8581_v0  ;;  %v9700_v45 = vld [vmem:[%s13196_s19 + $0x1] ss:$0 sm:$0xff] }
0x12c0   :  { %v8646_v57 = vmul.f32 %v8619_v9, %v8582_v46  ;;  %v8647_v47 = vmul.f32 %v8633_v11, %v8583_v50  ;;  %v9967_v11 = vld [vmem:[%s13193_s20 + $0x38] sm:$0xff]  }
0x12c1   :  { %v8706_v38 = vadd.f32 %v8676_v5, %v8642_v14  ;;  %v8707_v31 = vadd.f32 %v8690_v35, %v8643_v21  ;;  %v8708_v7 = vadd.f32 %v8698_v12, %v8644_v26  ;;  %v8709_v3 = vadd.f32 %v8699_v17, %v8645_v8  ;;  %9911 = vmatpush3.bf16.msra.mxu1 %v9967_v11 }
0x12c2   :  { %v8710_v32 = vadd.f32 %v8683_v22, %v8646_v57  ;;  %v8711_v27 = vadd.f32 %v8697_v60, %v8647_v47 }
0x12c3   :  { %v8712_v28 = vpack.c.bf16 %v8706_v38, %v8706_v38  ;;  %v8713_v20 = vpack.c.bf16 %v8707_v31, %v8707_v31  ;;  %v8714_v4 = vpack.c.bf16 %v8708_v7, %v8708_v7  ;;  %v8715_v40 = vpack.c.bf16 %v8709_v3, %v8709_v3 }
0x12c4   :  { %v8716_v36 = vpack.c.bf16 %v8710_v32, %v8710_v32  ;;  %v8717_v55 = vpack.c.bf16 %v8711_v27, %v8711_v27 }
0x12c5   :  { %v8738_v33 = vunpack.c.l.b16 %v8713_v20  ;;  %v8739_v10 = vunpack.c.l.b16 %v8714_v4  ;;  %v8740_v2 = vunpack.c.l.b16 %v8715_v40  ;;  %v8737_v62 = vunpack.c.l.b16 %v8712_v28 }
0x12c6   :  { %v8741_v30 = vunpack.c.l.b16 %v8716_v36  ;;  %v8742_v16 = vunpack.c.l.b16 %v8717_v55 }
0x12c7   :  { %v8743_v39 = vrot.slane %v8738_v33, 7  ;;  %v8745_v56 = vrot.slane %v8739_v10, 6  ;;  %v8747_v25 = vrot.slane %v8740_v2, 5 }
0x12c8   :  { %v8749_v51 = vrot.slane %v8741_v30, 4  ;;  %v8751_v52 = vrot.slane %v8742_v16, 3 }
0x12c9   :  { %v8744_v48 = vsel %vm4802_vm13, %v8743_v39, %v8737_v62 }
0x12ca   :  { %v8746_v24 = vsel %vm4805_vm14, %v8745_v56, %v8744_v48 }
0x12cb   :  { %v8748_v1 = vsel %vm4808_vm15, %v8747_v25, %v8746_v24 }
0x12cc   :  { %v8750_v5 = vsel %vm4811_vm0, %v8749_v51, %v8748_v1 }
0x12cd   :  { %v8752_v35 = vsel %vm4814_vm1, %v8751_v52, %v8750_v5 }
0x12ce   :  { %v8753_v9 = vpack.c.b16 %v8752_v35, %v8752_v35 }
0x12d0   :  { %9901 = vmatmul.mubr.msk.bf16.vlgmr.msra.gmra.mrb[20].mxu0 %vm5570_vm7, %v8753_v9 }
0x13a3   :  { %v8803_v29 = vpop.f32.mrb[20].mxu0 }
0x13a4   :  { %v8804_v6 = vadd.f32 %v9700_v45, %v8803_v29  ;;  %v9902_v43 = vpop.f32.mrb[21].mxu0 }
0x13a5   :  { %v8806_v53 = vpop.f32.mrb[22].mxu0 }
0x13a6   :  { %v8809_v54 = vmax.f32 %v8804_v6, 0.0  ;;  %v9903_v61 = vpop.f32.mrb[23].mxu0 }
0x13a8   :  { %v8810_v41 = vpack.c.bf16 %v8809_v54, %v8809_v54 }
0x13aa   :  { %9913 = vmatmul.mubr.msk.bf16.vlgmr.msra.gmra.mrb[32].mxu1 %vm6980_vm10, %v8810_v41 }
0x147d   :  { %v8889_v12 = vpop.f32.mrb[32].mxu1 }
0x147e   :  { %v8890_v15 = vadd.f32 %v9713_v59, %v8889_v12  ;;  %v9914_v17 = vpop.f32.mrb[33].mxu1 }
0x147f   :  { %v8892_v23 = vpop.f32.mrb[34].mxu1 }
0x1480   :  { %v8896_v49 = vcombine.high %v8890_v15, %v8890_v15  ;;  %v8903_v19 = vrot.slane %v8890_v15, %v13368_v63  ;;  %v9915_v0 = vpop.f32.mrb[35].mxu1 }
0x1482   :  { %v8910_v46 = vrot.slane %v8896_v49, %v13368_v63  ;;  %v8911_v50 = vcombine.high %v8903_v19, %v8903_v19  ;;  %v8919_v22 = vrot.slane %v8903_v19, %v13368_v63 }
0x1484   :  { %v8912_v60 = vcombine.high %v8910_v46, %v8910_v46  ;;  %v8926_v14 = vrot.slane %v8910_v46, %v13368_v63  ;;  %v8933_v21 = vrot.slane %v8911_v50, %v13368_v63  ;;  %v8941_v26 = vcombine.high %v8919_v22, %v8919_v22  ;;  %v9721_v50 = vld [vmem:[%s13198_s24 + $0x1] ss:$0 sm:$0xff] }
0x1485   :  { %v8949_v47 = vadd.f32 %v8919_v22, %v8706_v38 }
0x1486   :  { %v8940_v8 = vrot.slane %v8912_v60, %v13368_v63  ;;  %v8942_v57 = vcombine.high %v8933_v21, %v8933_v21  ;;  %v8950_v28 = vadd.f32 %v8933_v21, %v8707_v31  ;;  %v8951_v20 = vadd.f32 %v8941_v26, %v8708_v7  ;;  %v9722_v60 = vld [vmem:[%s13199_s25 + $0x1] ss:$0 sm:$0xff] }
0x1487   :  { %v8953_v40 = vadd.f32 %v8926_v14, %v8710_v32  ;;  %v9148_v21 = vcombine.high %v9721_v50, %v9721_v50  ;;  %v9155_v26 = vrot.slane %v9721_v50, %v13368_v63 }
0x1488   :  { %v8952_v4 = vadd.f32 %v8942_v57, %v8709_v3  ;;  %v8965_v36 = vcombine.low %v8949_v47, %v8950_v28  ;;  %v8954_v55 = vadd.f32 %v8940_v8, %v8711_v27  ;;  %v9219_v8 = vrot.slane %v9722_v60, %v13368_v63 }
0x1489   :  { %v9162_v57 = vrot.slane %v9148_v21, %v13368_v63 }
0x148a   :  { %v8966_v33 = vcombine.low %v8951_v20, %v8952_v4  ;;  %v8967_v10 = vcombine.low %v8953_v40, %v8954_v55  ;;  %v8974_v2 = vrot.slane %v8965_v36, %v13368_v63 }
0x148c   :  { %v8981_v30 = vrot.slane %v8966_v33, %v13368_v63  ;;  %v8988_v62 = vrot.slane %v8967_v10, %v13368_v63  ;;  %v9235_v33 = vrot.slane %v9219_v8, %v13368_v63 }
0x148e   :  { %v8989_v16 = vcombine.low %v8974_v2, %v8981_v30  ;;  %v9003_v56 = vrot.slane %v8988_v62, %v13368_v63  ;;  %v9178_v2 = vrot.slane %v9162_v57, %v13368_v63 }
0x1490   :  { %v8996_v39 = vrot.slane %v8989_v16, %v13368_v63 }
0x1492   :  { %v9004_v38 = vcombine.low %v8996_v39, %v9003_v56 }
0x1494   :  { %v9006_v31 = vsel %vm6578_vm9, %v9004_v38, 0.0 }
0x1495   :  { %9007 = vadd.xlane.f32.xlu0 %v9006_v31 }
0x1522   :  { %v9008_v7 = vpop.xlane.xlu0 %9007 }
0x1523   :  { %v9009_v3 = vmul.f32 0.03125, %v9008_v7 }
0x1525   :  { %v9014_v32 = vrot.slane %v9009_v3, %v11727_v58  ;;  %v9018_v27 = vrot.slane %v9009_v3, %v11730_v44  ;;  %v9022_v48 = vrot.slane %v9009_v3, %v11733_v34  ;;  %v9026_v25 = vrot.slane %v9009_v3, %v11736_v42 }
0x1526   :  { %v9030_v24 = vrot.slane %v9009_v3, %v11739_v13  ;;  %v9034_v51 = vrot.slane %v9009_v3, %v11742_v18 }
0x1527   :  { %v9041_v1 = vsub.f32 %v8949_v47, %v9014_v32  ;;  %v9042_v52 = vsub.f32 %v8950_v28, %v9018_v27  ;;  %v9043_v5 = vsub.f32 %v8951_v20, %v9022_v48  ;;  %v9044_v35 = vsub.f32 %v8952_v4, %v9026_v25 }
0x1528   :  { %v9045_v9 = vsub.f32 %v8953_v40, %v9030_v24  ;;  %v9046_v37 = vsub.f32 %v8954_v55, %v9034_v51  ;;  %v9163_v47 = vcombine.high %v9155_v26, %v9155_v26  ;;  %v9212_v28 = vcombine.high %v9722_v60, %v9722_v60 }
0x1529   :  { %v9047_v11 = vmul.f32 %v9041_v1, %v9041_v1  ;;  %v9048_v45 = vmul.f32 %v9042_v52, %v9042_v52  ;;  %v9049_v29 = vmul.f32 %v9043_v5, %v9043_v5  ;;  %v9050_v6 = vmul.f32 %v9044_v35, %v9044_v35 }
0x152a   :  { %v9051_v43 = vmul.f32 %v9045_v9, %v9045_v9  ;;  %v9052_v53 = vmul.f32 %v9046_v37, %v9046_v37  ;;  %v9227_v20 = vcombine.high %v9219_v8, %v9219_v8  ;;  %v9164_v4 = vcombine.high %v9162_v57, %v9162_v57 }
0x152b   :  { %v9059_v54 = vcombine.low %v9047_v11, %v9048_v45  ;;  %v9060_v61 = vcombine.low %v9049_v29, %v9050_v6  ;;  %v9171_v40 = vrot.slane %v9155_v26, %v13368_v63  ;;  %v9185_v36 = vrot.slane %v9163_v47, %v13368_v63 }
0x152c   :  { %v9061_v41 = vcombine.low %v9051_v43, %v9052_v53  ;;  %v9226_v55 = vrot.slane %v9212_v28, %v13368_v63  ;;  %v9249_v10 = vrot.slane %v9227_v20, %v13368_v63  ;;  %v9192_v62 = vrot.slane %v9164_v4, %v13368_v63 }
0x152d   :  { %v9068_v59 = vrot.slane %v9059_v54, %v13368_v63  ;;  %v9075_v12 = vrot.slane %v9060_v61, %v13368_v63  ;;  %v9193_v16 = vcombine.high %v9171_v40, %v9171_v40  ;;  %v9194_v39 = vcombine.high %v9185_v36, %v9185_v36 }
0x152e   :  { %v9082_v15 = vrot.slane %v9061_v41, %v13368_v63  ;;  %v9228_v56 = vcombine.high %v9226_v55, %v9226_v55  ;;  %v9257_v48 = vcombine.high %v9235_v33, %v9235_v33  ;;  %v9258_v25 = vcombine.high %v9249_v10, %v9249_v10 }
0x152f   :  { %v9083_v17 = vcombine.low %v9068_v59, %v9075_v12  ;;  %v9242_v43 = vrot.slane %v9226_v55, %v13368_v63 }
0x1530   :  { %v9097_v49 = vrot.slane %v9082_v15, %v13368_v63  ;;  %v9256_v53 = vrot.slane %v9228_v56, %v13368_v63 }
0x1531   :  { %v9090_v23 = vrot.slane %v9083_v17, %v13368_v63 }
0x1533   :  { %v9098_v19 = vcombine.low %v9090_v23, %v9097_v49 }
0x1535   :  { %v9100_v0 = vsel %vm6578_vm9, %v9098_v19, 0.0 }
0x1536   :  { %9101 = vadd.xlane.f32.xlu0 %v9100_v0 }
0x15c3   :  { %v9102_v46 = vpop.xlane.xlu0 %9101 }
0x15c4   :  { %v9103_v22 = vmul.f32 0.03125, %v9102_v46 }
0x15c6   :  { %v9104_v14 = vadd.f32 1e-05, %v9103_v22 }
0x15c8   :  { %10046 = vrsqrt.f32 %v9104_v14 }
0x15d2   :  { %v10047_v30 = vpop.eup %10046 }
0x15d3   :  { %v9110_v38 = vrot.slane %v10047_v30, %v11727_v58  ;;  %v9114_v31 = vrot.slane %v10047_v30, %v11730_v44  ;;  %v9118_v7 = vrot.slane %v10047_v30, %v11733_v34  ;;  %v9122_v3 = vrot.slane %v10047_v30, %v11736_v42 }
0x15d4   :  { %v9126_v32 = vrot.slane %v10047_v30, %v11739_v13  ;;  %v9130_v27 = vrot.slane %v10047_v30, %v11742_v18 }
0x15d5   :  { %v9137_v24 = vmul.f32 %v9110_v38, %v9041_v1  ;;  %v9138_v51 = vmul.f32 %v9114_v31, %v9042_v52  ;;  %v9139_v11 = vmul.f32 %v9118_v7, %v9043_v5  ;;  %v9140_v45 = vmul.f32 %v9122_v3, %v9044_v35 }
0x15d6   :  { %v9141_v29 = vmul.f32 %v9126_v32, %v9045_v9  ;;  %v9142_v6 = vmul.f32 %v9130_v27, %v9046_v37 }
0x15d7   :  { %v9201_v54 = vmul.f32 %v9171_v40, %v9137_v24  ;;  %v9202_v61 = vmul.f32 %v9185_v36, %v9138_v51  ;;  %v9203_v41 = vmul.f32 %v9193_v16, %v9139_v11  ;;  %v9204_v59 = vmul.f32 %v9194_v39, %v9140_v45 }
0x15d8   :  { %v9205_v12 = vmul.f32 %v9178_v2, %v9141_v29  ;;  %v9206_v15 = vmul.f32 %v9192_v62, %v9142_v6  ;;  %v33_v6 = vstv %s13200_s27 }
0x15d9   :  { %v9265_v17 = vadd.f32 %v9235_v33, %v9201_v54  ;;  %v9266_v23 = vadd.f32 %v9249_v10, %v9202_v61  ;;  %v9267_v49 = vadd.f32 %v9257_v48, %v9203_v41  ;;  %v9268_v19 = vadd.f32 %v9258_v25, %v9204_v59  ;;  %34 = vst [vmem:[#allocation2] sm:$0x1] %v33_v6 }
0x15da   :  { %v9269_v1 = vadd.f32 %v9242_v43, %v9205_v12  ;;  %v9270_v52 = vadd.f32 %v9256_v53, %v9206_v15 }
0x15db   :  { %v9277_v5 = vcombine.low %v9265_v17, %v9266_v23  ;;  %v9278_v35 = vcombine.low %v9267_v49, %v9268_v19 }
0x15dc   :  { %v9279_v9 = vcombine.low %v9269_v1, %v9270_v52 }
0x15dd   :  { %v9286_v37 = vrot.slane %v9277_v5, %v13368_v63  ;;  %v9293_v0 = vrot.slane %v9278_v35, %v13368_v63 }
0x15de   :  { %v9300_v46 = vrot.slane %v9279_v9, %v13368_v63 }
0x15df   :  { %v9301_v50 = vcombine.low %v9286_v37, %v9293_v0 }
0x15e0   :  { %v9315_v60 = vrot.slane %v9300_v46, %v13368_v63 }
0x15e1   :  { %v9308_v22 = vrot.slane %v9301_v50, %v13368_v63 }
0x15e3   :  { %v9316_v14 = vcombine.low %v9308_v22, %v9315_v60 }
0x15e5   :  { %v9318_v21 = vsel %vm6578_vm9, %v9316_v14, 0.0 }
0x15e6   :  { %9319 = vadd.xlane.f32.xlu1 %v9318_v21 }
0x1673   :  { %v9320_v26 = vpop.xlane.xlu1 %9319 }
0x1674   :  { %v9321_v8 = vmul.f32 0.03125, %v9320_v26 }
0x1676   :  { %v9326_v57 = vrot.slane %v9321_v8, %v11727_v58  ;;  %v9330_v47 = vrot.slane %v9321_v8, %v11730_v44  ;;  %v9334_v28 = vrot.slane %v9321_v8, %v11733_v34  ;;  %v9338_v20 = vrot.slane %v9321_v8, %v11736_v42 }
0x1677   :  { %v9342_v4 = vrot.slane %v9321_v8, %v11739_v13  ;;  %v9346_v40 = vrot.slane %v9321_v8, %v11742_v18 }
0x1678   :  { %v9353_v36 = vsub.f32 %v9265_v17, %v9326_v57  ;;  %v9354_v55 = vsub.f32 %v9266_v23, %v9330_v47  ;;  %v9355_v33 = vsub.f32 %v9267_v49, %v9334_v28  ;;  %v9356_v10 = vsub.f32 %v9268_v19, %v9338_v20 }
0x1679   :  { %v9357_v2 = vsub.f32 %v9269_v1, %v9342_v4  ;;  %v9358_v30 = vsub.f32 %v9270_v52, %v9346_v40 }
0x167a   :  { %v9359_v62 = vmul.f32 %v9353_v36, %v9353_v36  ;;  %v9360_v16 = vmul.f32 %v9354_v55, %v9354_v55  ;;  %v9361_v39 = vmul.f32 %v9355_v33, %v9355_v33  ;;  %v9362_v56 = vmul.f32 %v9356_v10, %v9356_v10 }
0x167b   :  { %v9363_v38 = vmul.f32 %v9357_v2, %v9357_v2  ;;  %v9364_v31 = vmul.f32 %v9358_v30, %v9358_v30 }
0x167c   :  { %v9371_v7 = vcombine.low %v9359_v62, %v9360_v16  ;;  %v9372_v3 = vcombine.low %v9361_v39, %v9362_v56  ;;  %v9724_v39 = vld [vmem:[#allocation2] ss:$0 sm:$0xff] }
0x167d   :  { %v9373_v32 = vcombine.low %v9363_v38, %v9364_v31 }
0x167e   :  { %v9380_v27 = vrot.slane %v9371_v7, %v13368_v63  ;;  %v9387_v48 = vrot.slane %v9372_v3, %v13368_v63 }
0x167f   :  { %v9394_v25 = vrot.slane %v9373_v32, %v13368_v63 }
0x1680   :  { %v9395_v24 = vcombine.low %v9380_v27, %v9387_v48 }
0x1681   :  { %v9409_v11 = vrot.slane %v9394_v25, %v13368_v63 }
0x1682   :  { %v9402_v51 = vrot.slane %v9395_v24, %v13368_v63 }
0x1684   :  { %v9410_v45 = vcombine.low %v9402_v51, %v9409_v11 }
0x1686   :  { %v9412_v29 = vsel %vm6578_vm9, %v9410_v45, 0.0 }
0x1687   :  { %9413 = vadd.xlane.f32.xlu0 %v9412_v29 }
0x1714   :  { %v9414_v43 = vpop.xlane.xlu0 %9413 }
0x1715   :  { %v9415_v53 = vmul.f32 0.03125, %v9414_v43 }
0x1717   :  { %v9416_v54 = vadd.f32 1e-05, %v9415_v53 }
0x1719   :  { %10048 = vrsqrt.f32 %v9416_v54 }
0x1723   :  { %v10049_v61 = vpop.eup %10048 }
0x1724   :  { %v9422_v41 = vrot.slane %v10049_v61, %v11727_v58  ;;  %v9426_v59 = vrot.slane %v10049_v61, %v11730_v44  ;;  %v9430_v12 = vrot.slane %v10049_v61, %v11733_v34  ;;  %v9434_v15 = vrot.slane %v10049_v61, %v11736_v42 }
0x1725   :  { %v9438_v17 = vrot.slane %v10049_v61, %v11739_v13  ;;  %v9442_v23 = vrot.slane %v10049_v61, %v11742_v18 }
0x1726   :  { %v9449_v49 = vmul.f32 %v9422_v41, %v9353_v36  ;;  %v9450_v19 = vmul.f32 %v9426_v59, %v9354_v55  ;;  %v9451_v1 = vmul.f32 %v9430_v12, %v9355_v33  ;;  %v9452_v52 = vmul.f32 %v9434_v15, %v9356_v10 }
0x1727   :  { %v9453_v5 = vmul.f32 %v9438_v17, %v9357_v2  ;;  %v9454_v35 = vmul.f32 %v9442_v23, %v9358_v30 }
0x1728   :  { %v9461_v9 = vcombine.low %v9449_v49, %v9450_v19  ;;  %v9475_v44 = vrot.slane %v9451_v1, %v13368_v63 }
0x1729   :  { %v9484_v37 = vcombine.low %v9452_v52, %v9453_v5  ;;  %v9498_v42 = vrot.slane %v9454_v35, %v13368_v63 }
0x172a   :  { %v9468_v58 = vrot.slane %v9461_v9, %v13368_v63 }
0x172b   :  { %v9491_v34 = vrot.slane %v9484_v37, %v13368_v63 }
0x172c   :  { %v9476_v0 = vcombine.low %v9468_v58, %v9475_v44 }
0x172d   :  { %v9499_v13 = vcombine.low %v9491_v34, %v9498_v42 }
0x172e   :  { %v9483_v18 = vrot.slane %v9476_v0, %v13368_v63 }
0x172f   :  { %v9506_v46 = vrot.slane %v9499_v13, %v13368_v63  ;;  %v9723_v63 = vld [vmem:[%s13201_s26] ss:$0 sm:$0xff] }
0x1730   :  { %v9509_v50 = vsel %vm5248_vm6, %v9483_v18, 0.0 }
0x1731   :  { %v9510_v22 = vrot.slane %v9509_v50, 4  ;;  %v9516_v60 = vsel %vm5248_vm6, %v9506_v46, 0.0 }
0x1732   :  { %v9517_v14 = vrot.slane %v9516_v60, 4 }
0x1733   :  { %v9511_v21 = vadd.f32 %v9510_v22, %v9509_v50 }
0x1734   :  { %v9518_v26 = vadd.f32 %v9517_v14, %v9516_v60 }
0x1735   :  { %v9512_v8 = vrot.slane %v9511_v21, 2 }
0x1736   :  { %v9519_v57 = vrot.slane %v9518_v26, 2 }
0x1737   :  { %v9513_v47 = vadd.f32 %v9512_v8, %v9511_v21 }
0x1738   :  { %v9520_v28 = vadd.f32 %v9519_v57, %v9518_v26 }
0x1739   :  { %v9514_v20 = vrot.slane %v9513_v47, 1 }
0x173a   :  { %v9521_v4 = vrot.slane %v9520_v28, 1 }
0x173b   :  { %v9515_v40 = vadd.f32 %v9514_v20, %v9513_v47 }
0x173c   :  { %v9522_v36 = vadd.f32 %v9521_v4, %v9520_v28 }
0x173d   :  { %v9524_v55 = vmul.f32 0.33333334, %v9515_v40 }
0x173e   :  { %v9525_v33 = vmul.f32 0.33333334, %v9522_v36 }
0x173f   :  { %v9533_v2 = vmul.f32 %v9723_v63, %v9524_v55 }
0x1740   :  { %v9534_v10 = vmul.f32 %v9723_v63, %v9525_v33 }
0x1742   :  { %v9537_v30 = vrot.slane %v9534_v10, 7 }
0x1744   :  { %v9538_v62 = vsel %vm4802_vm13, %v9537_v30, %v9533_v2 }
0x1745   :  { %v9541_v16 = vsel %vm9540_vm11, %v9538_v62, 0.0 }
0x1746   :  { %9542 = vadd.xlane.f32.xlu1 %v9541_v16 }
0x17d3   :  { %v9543_v56 = vpop.xlane.xlu1 %9542 }
0x17d4   :  { %v9551_v38 = vadd.f32 %v9724_v39, %v9543_v56 }
0x17d6   :  { %v9552_v31 = vsub.f32 0.0, %v9551_v38 }
0x17d8   :  { %v9553_v7 = vmul.f32 1.442695, %v9552_v31 }
0x17da   :  { %10050 = vpow2.f32 %v9553_v7 }
0x17e4   :  { %v10051_v3 = vpop.eup %10050 }
0x17e5   :  { %v9555_v32 = vadd.f32 1.0, %v10051_v3 }
0x17e7   :  { %10052 = vrcp.f32 %v9555_v32 }
0x17f1   :  { %v10053_v27 = vpop.eup %10052 }
0x17f2   :  { %9558 = vst.msk [vmem:[%s13202_s28] sm:$0x3] %vm9557_vm12, %v10053_v27 }

</bundles_post_ra>
